<compile_context>
chip_gen: v7x
topology: tpu7x:2x2x1
jax: 0.10.0
libtpu: 0.0.40
codegen_flags: <defaults>
</compile_context>

<pallas_src>
import numpy as np
import jax
import jax.numpy as jnp
from jax.experimental import pallas as pl
from jax.experimental.pallas import tpu as pltpu

# ----------------------------------------------------------------------------
# config
# ----------------------------------------------------------------------------
BATCH = 2
SEQ_LEN = 7
INPUT_SIZE = 6
N_HIDDENS = [32, 32]          # all equal (required by the reference forward)
NUM_LAYERS = len(N_HIDDENS)
OUTPUT_SIZE = 1
NUM_STEPS = 5
NUM_UNITS = 128               # MLPDiffusion hidden width
HIDDEN_STATE = N_HIDDENS[-1]  # MLPDiffusion in/out width
OUT_LANES = 128               # lane-dense packed output width

VMEM_SPEC = pl.BlockSpec(memory_space=pltpu.MemorySpace.VMEM)

# ----------------------------------------------------------------------------
# diffusion schedule (numpy; static-t coefficients are baked as Python floats)
# ----------------------------------------------------------------------------
_betas_raw = np.linspace(-6.0, 6.0, NUM_STEPS, dtype=np.float64)
_BETAS = 1.0 / (1.0 + np.exp(-_betas_raw)) * (0.005 - 1e-05) + 1e-05
_ALPHAS_PROD = np.cumprod(1.0 - _BETAS)
_ABAR_SQRT = np.sqrt(_ALPHAS_PROD)
_OM_ABAR_SQRT = np.sqrt(1.0 - _ALPHAS_PROD)

ABAR_LAST = float(_ABAR_SQRT[NUM_STEPS - 1])        # q_x / p_sample use t = num_steps-1
OMABAR_LAST = float(_OM_ABAR_SQRT[NUM_STEPS - 1])
BETA_LAST = float(_BETAS[NUM_STEPS - 1])

# (NUM_STEPS, 2) table [sqrt(abar), sqrt(1-abar)], fused with the step embeddings and
# gathered in-kernel via one one-hot matmul.
SCHED_TABLE = jnp.asarray(
    np.stack([_ABAR_SQRT, _OM_ABAR_SQRT], axis=1).astype(np.float32))


# ----------------------------------------------------------------------------
# fused forward kernel
# ----------------------------------------------------------------------------
def _fused_forward_kernel(*refs):
    (x_ref, t_ref, nqx_ref, el_ref, zps_ref, table_ref,
     e0_wih, e0_whh, e0_bih, e0_bhh,
     e1_wih, e1_whh, e1_bih, e1_bhh,
     d0_wih, d0_whh, d0_bih, d0_bhh,
     d1_wih, d1_whh, d1_bih, d1_bhh,
     w1, b1, w2, b2, w3, b3, w4, b4,
     hw, hb,
     out_ref) = refs

    f32 = jnp.float32
    B, H, T, S, U = BATCH, HIDDEN_STATE, SEQ_LEN, NUM_STEPS, NUM_UNITS

    def input_proj(x_flat, wih_r, bih_r):
        # hoisted per-layer input projection: (T*B, In) @ (In, 3H) + bias
        return jnp.dot(x_flat, wih_r[...], preferred_element_type=f32) + bih_r[...]

    def gru_recur(gx_all, h0, whh_r, bhh_r, need_seq, gx_delta=None):
        """GRU time recurrence on precomputed input gates.

        Weights are gate-concatenated [r|z|n]: whh (H,3H), bhh (1,3H).
        `gx_delta` (B,3H) is subtracted from every timestep's input gates (exact
        new_input_seq column-1 correction via linearity of the W_ih path).
        """
        whh = whh_r[...]
        bhh = bhh_r[...]
        h = h0
        outs = []
        for t in range(T):                       # T=7: static unroll (serial recurrence)
            gx = gx_all[t * B:(t + 1) * B, :]
            if gx_delta is not None:
                gx = gx - gx_delta
            gh = jnp.dot(h, whh, preferred_element_type=f32) + bhh
            rz = jax.nn.sigmoid(gx[:, 0:2 * H] + gh[:, 0:2 * H])   # r and z in one EUP pass
            r = rz[:, 0:H]
            z = rz[:, H:2 * H]
            n = jnp.tanh(gx[:, 2 * H:3 * H] + r * gh[:, 2 * H:3 * H])
            h = (1.0 - z) * n + z * h
            if need_seq:
                outs.append(h)
        seq = jnp.concatenate(outs, axis=0) if need_seq else None
        return seq, h

    x_flat = x_ref[...]                                        # (T*B, IN), time-major
    zeros_h = jnp.zeros((B, H), f32)

    # ---- encoder GRU stack (gru_features with self.features; zero h0 per layer) ----
    gx_e0 = input_proj(x_flat, e0_wih, e0_bih)                 # reused by decoder chain
    seq0, _ = gru_recur(gx_e0, zeros_h, e0_whh, e0_bhh, True)
    gx_e1 = input_proj(seq0, e1_wih, e1_bih)
    _, hidden = gru_recur(gx_e1, zeros_h, e1_whh, e1_bhh, False)

    # ---- q_x(hidden, t = num_steps - 1) ----
    hidden_bf = ABAR_LAST * hidden + OMABAR_LAST * nqx_ref[...]

    # ---- fused table gather: step embeddings (both MLP calls) + schedule coeffs ----
    # rows [0:B]  -> random loss t ;  rows [B:2B] -> t = num_steps-1 (p_sample)
    step_iota = jax.lax.broadcasted_iota(jnp.int32, (2 * B, S), 1)
    onehot = (step_iota == t_ref[...]).astype(f32)             # (2B, S)
    gathered = jnp.dot(onehot, table_ref[...], preferred_element_type=f32)  # (2B, 3U+2)
    t1 = gathered[:, 0:U]
    t2 = gathered[:, U:2 * U]
    t3 = gathered[:, 2 * U:3 * U]
    a = gathered[0:B, 3 * U:3 * U + 1]                         # sqrt(abar)[t_loss]
    aml = gathered[0:B, 3 * U + 1:3 * U + 2]                   # sqrt(1-abar)[t_loss]

    # ---- batched MLPDiffusion: diffusion-loss call and p_sample call in one pass ----
    e = el_ref[...]
    x_noised = hidden_bf * a + e * aml
    xm = jnp.concatenate([x_noised, hidden_bf], axis=0)        # (2B, H)
    hm = jnp.maximum(jnp.dot(xm, w1[...], preferred_element_type=f32) + b1[...] + t1, 0.0)
    hm = jnp.maximum(jnp.dot(hm, w2[...], preferred_element_type=f32) + b2[...] + t2, 0.0)
    hm = jnp.maximum(jnp.dot(hm, w3[...], preferred_element_type=f32) + b3[...] + t3, 0.0)
    eps = jnp.dot(hm, w4[...], preferred_element_type=f32) + b4[...]        # (2B, H)

    # diffusion loss (MSE over B*H elements)
    d = e - eps[0:B, :]
    diff_loss = jnp.sum(d * d, keepdims=True) * (1.0 / float(B * H))        # (1, 1)

    # p_sample at t = num_steps - 1
    eps_theta = eps[B:2 * B, :]
    mean = (1.0 / (1.0 - BETA_LAST) ** 0.5) * (hidden_bf - (BETA_LAST / OMABAR_LAST) * eps_theta)
    hidden_af = mean + (BETA_LAST ** 0.5) * zps_ref[...]

    # ---- decoder chain: reuses ENCODER weights (and gx_e0), chained hidden state ----
    seq0d, h_chain = gru_recur(gx_e0, hidden_af, e0_whh, e0_bhh, True)
    gx_e1d = input_proj(seq0d, e1_wih, e1_bih)
    _, hidden_dec = gru_recur(gx_e1d, h_chain, e1_whh, e1_bhh, False)

    # ---- fused scalar head on decoder-chain hidden: main value (column 0) ----
    head_dec = jnp.dot(hidden_dec, hw[...], preferred_element_type=f32) + hb[...]
    main_val = head_dec[:, 0:1]                                # (B, 1)

    # ---- second stack (self.decoder weights) on new_input_seq ----
    # new_input_seq[:, :, 1] -= main_value  applied exactly in layer 0's input gates.
    gx_delta0 = main_val * d0_wih[1:2, :]                      # (B, 3H)
    gx_d0 = input_proj(x_flat, d0_wih, d0_bih)
    seq0s, _ = gru_recur(gx_d0, zeros_h, d0_whh, d0_bhh, True, gx_delta=gx_delta0)
    gx_d1 = input_proj(seq0s, d1_wih, d1_bih)
    _, hidden2 = gru_recur(gx_d1, zeros_h, d1_whh, d1_bhh, False)

    # ---- mu / sigma heads (columns 1, 2 of the fused head weight) ----
    head2 = jnp.dot(hidden2, hw[...], preferred_element_type=f32) + hb[...]
    mu = head2[:, 1:2]
    sigma = jax.nn.softplus(head2[:, 2:3])

    # ---- single lane-dense output: [mu, sigma, main, diff_loss, 0 ...] ----
    lane = jax.lax.broadcasted_iota(jnp.int32, (B, OUT_LANES), 1)
    out = jnp.zeros((B, OUT_LANES), f32)
    out = jnp.where(lane == 0, mu, out)
    out = jnp.where(lane == 1, sigma, out)
    out = jnp.where(lane == 2, main_val, out)
    out = jnp.where(lane == 3, diff_loss, out)
    out_ref[...] = out


# ----------------------------------------------------------------------------
# wrapper
# ----------------------------------------------------------------------------
def _flat_param_list(params):
    lst = []
    for p in params["features"] + params["decoder"]:
        lst += [p["wih"], p["whh"], p["bih"], p["bhh"]]
    r = params["reverse"]
    lst += [r["w1"], r["b1"], r["w2"], r["b2"],
            r["w3"], r["b3"], r["w4"], r["b4"]]
    lst += [params["heads_w"], params["heads_b"]]
    return lst


@jax.jit
def gru_forward(params, input_seq, key):
    B, T, _ = input_seq.shape
    k_qx, k_t, k_e, k_z = jax.random.split(key, 4)

    # randomness of q_x / diffusion_loss_fn / p_sample stays in jax.random and is
    # fed to the kernel as data, keeping the kernel deterministic in its inputs.
    noise_qx = jax.random.normal(k_qx, (B, HIDDEN_STATE), jnp.float32)
    e_loss = jax.random.normal(k_e, (B, HIDDEN_STATE), jnp.float32)
    z_ps = jax.random.normal(k_z, (B, HIDDEN_STATE), jnp.float32)

    # loss-call t (random, antithetic) followed by p_sample t (= num_steps - 1)
    n_steps = NUM_STEPS - 1                       # forward passes num_steps - 1
    t_half = jax.random.randint(k_t, (B // 2,), 0, n_steps)
    t_loss = jnp.concatenate([t_half, n_steps - 1 - t_half], axis=0).astype(jnp.int32)
    t_ps = jnp.full((B,), NUM_STEPS - 1, jnp.int32)
    t_all = jnp.concatenate([t_loss, t_ps], axis=0).reshape(2 * B, 1)

    # fused gather table: [emb0 | emb1 | emb2 | sqrt(abar) | sqrt(1-abar)]  (S, 3U+2)
    r = params["reverse"]
    table = jnp.concatenate([r["emb0"], r["emb1"], r["emb2"], SCHED_TABLE], axis=1)

    # single transpose to time-major, flattened to (T*B, IN)
    x_flat = jnp.transpose(input_seq, (1, 0, 2)).reshape(T * B, INPUT_SIZE)

    inputs = [x_flat, t_all, noise_qx, e_loss, z_ps, table]
    inputs += _flat_param_list(params)

    out = pl.pallas_call(
        _fused_forward_kernel,
        out_shape=jax.ShapeDtypeStruct((B, OUT_LANES), jnp.float32),
        in_specs=[VMEM_SPEC] * len(inputs),
        out_specs=VMEM_SPEC,
    )(*inputs)

    mu = out[:, 0]
    sigma = out[:, 1]
    main0 = out[:, 2]
    diff_loss = out[0, 3]
    return mu, sigma, diff_loss, main0


# ----------------------------------------------------------------------------
# deterministic parameter init (gate-concatenated / head-concatenated layouts)
# ----------------------------------------------------------------------------
def _uniform(key, shape, scale):
    return jax.random.uniform(key, shape, jnp.float32, -scale, scale)


def init_gru_layer(key, in_size, hidden):
    # gate order [r | z | n], matching torch.nn.GRU's (W_ir; W_iz; W_in) rows.
    ks = jax.random.split(key, 4)
    s = 1.0 / (hidden ** 0.5)
    return {
        "wih": _uniform(ks[0], (in_size, 3 * hidden), s),
        "whh": _uniform(ks[1], (hidden, 3 * hidden), s),
        "bih": _uniform(ks[2], (1, 3 * hidden), s),
        "bhh": _uniform(ks[3], (1, 3 * hidden), s),
    }


def init_linear(key, in_f, out_f):
    k1, k2 = jax.random.split(key)
    s = 1.0 / (in_f ** 0.5)
    return _uniform(k1, (in_f, out_f), s), _uniform(k2, (1, out_f), s)


def init_params(key):
    keys = jax.random.split(key, 16)
    features, decoder = [], []
    in_sz = INPUT_SIZE
    for i, h in enumerate(N_HIDDENS):
        features.append(init_gru_layer(keys[i], in_sz, h))
        in_sz = h
    in_sz = INPUT_SIZE  # decoder stack hard-codes input_size = 6
    for i, h in enumerate(N_HIDDENS):
        decoder.append(init_gru_layer(keys[4 + i], in_sz, h))
        in_sz = h

    w1, b1 = init_linear(keys[8], HIDDEN_STATE, NUM_UNITS)
    w2, b2 = init_linear(keys[9], NUM_UNITS, NUM_UNITS)
    w3, b3 = init_linear(keys[10], NUM_UNITS, NUM_UNITS)
    w4, b4 = init_linear(keys[11], NUM_UNITS, HIDDEN_STATE)
    ek = jax.random.split(keys[12], 3)
    reverse = {
        "w1": w1, "b1": b1, "w2": w2, "b2": b2,
        "w3": w3, "b3": b3, "w4": w4, "b4": b4,
        "emb0": jax.random.normal(ek[0], (NUM_STEPS, NUM_UNITS), jnp.float32),
        "emb1": jax.random.normal(ek[1], (NUM_STEPS, NUM_UNITS), jnp.float32),
        "emb2": jax.random.normal(ek[2], (NUM_STEPS, NUM_UNITS), jnp.float32),
    }

    # fused scalar heads: columns [main, mu, presigma]
    main_w, main_b = init_linear(keys[13], HIDDEN_STATE, OUTPUT_SIZE)
    mu_w, mu_b = init_linear(keys[14], HIDDEN_STATE, OUTPUT_SIZE)
    ps_w, ps_b = init_linear(keys[15], HIDDEN_STATE, OUTPUT_SIZE)
    heads_w = jnp.concatenate([main_w, mu_w, ps_w], axis=1)   # (H, 3)
    heads_b = jnp.concatenate([main_b, mu_b, ps_b], axis=1)   # (1, 3)

    return {
        "features": features,
        "decoder": decoder,
        "reverse": reverse,
        "heads_w": heads_w,
        "heads_b": heads_b,
    }


# ----------------------------------------------------------------------------
if __name__ == "__main__":
    root = jax.random.PRNGKey(0)
    k_param, k_data, k_fwd = jax.random.split(root, 3)

    params = init_params(k_param)
    input_seq = jax.random.normal(k_data, (BATCH, SEQ_LEN, INPUT_SIZE), jnp.float32)

    mu, sigma, diff_loss, main0 = gru_forward(params, input_seq, k_fwd)
    jax.block_until_ready((mu, sigma, diff_loss, main0))

    assert mu.shape == (BATCH,)
    assert sigma.shape == (BATCH,)
    assert diff_loss.shape == ()
    assert main0.shape == (BATCH,)
    assert bool(jnp.all(jnp.isfinite(jnp.stack([mu, sigma, main0]))))
    assert bool(jnp.isfinite(diff_loss))
    assert bool(jnp.all(sigma >= 0.0))
    print("KERNEL_OK")
</pallas_src>

<mosaic_0001>
module attributes {stable_mosaic.version = 11 : i64} {
  func.func @_fused_forward_kernel(%arg0: memref<14x6xf32, #tpu.memory_space<vmem>>, %arg1: memref<4x1xi32, #tpu.memory_space<vmem>>, %arg2: memref<2x32xf32, #tpu.memory_space<vmem>>, %arg3: memref<2x32xf32, #tpu.memory_space<vmem>>, %arg4: memref<2x32xf32, #tpu.memory_space<vmem>>, %arg5: memref<5x386xf32, #tpu.memory_space<vmem>>, %arg6: memref<6x96xf32, #tpu.memory_space<vmem>>, %arg7: memref<32x96xf32, #tpu.memory_space<vmem>>, %arg8: memref<1x96xf32, #tpu.memory_space<vmem>>, %arg9: memref<1x96xf32, #tpu.memory_space<vmem>>, %arg10: memref<32x96xf32, #tpu.memory_space<vmem>>, %arg11: memref<32x96xf32, #tpu.memory_space<vmem>>, %arg12: memref<1x96xf32, #tpu.memory_space<vmem>>, %arg13: memref<1x96xf32, #tpu.memory_space<vmem>>, %arg14: memref<6x96xf32, #tpu.memory_space<vmem>>, %arg15: memref<32x96xf32, #tpu.memory_space<vmem>>, %arg16: memref<1x96xf32, #tpu.memory_space<vmem>>, %arg17: memref<1x96xf32, #tpu.memory_space<vmem>>, %arg18: memref<32x96xf32, #tpu.memory_space<vmem>>, %arg19: memref<32x96xf32, #tpu.memory_space<vmem>>, %arg20: memref<1x96xf32, #tpu.memory_space<vmem>>, %arg21: memref<1x96xf32, #tpu.memory_space<vmem>>, %arg22: memref<32x128xf32, #tpu.memory_space<vmem>>, %arg23: memref<1x128xf32, #tpu.memory_space<vmem>>, %arg24: memref<128x128xf32, #tpu.memory_space<vmem>>, %arg25: memref<1x128xf32, #tpu.memory_space<vmem>>, %arg26: memref<128x128xf32, #tpu.memory_space<vmem>>, %arg27: memref<1x128xf32, #tpu.memory_space<vmem>>, %arg28: memref<128x32xf32, #tpu.memory_space<vmem>>, %arg29: memref<1x32xf32, #tpu.memory_space<vmem>>, %arg30: memref<32x3xf32, #tpu.memory_space<vmem>>, %arg31: memref<1x3xf32, #tpu.memory_space<vmem>>, %arg32: memref<2x128xf32, #tpu.memory_space<vmem>>) attributes {dimension_semantics = [], scalar_prefetch = 0 : i64, scratch_operands = 0 : i64, tpu.core_type = #tpu.core_type<tc>} {
    %c0 = arith.constant 0 : index
    %c0_0 = arith.constant 0 : index
    %0 = vector.load %arg0[%c0, %c0_0] : memref<14x6xf32, #tpu.memory_space<vmem>>, vector<14x6xf32>
    %cst = arith.constant 0.000000e+00 : f32
    %1 = vector.broadcast %cst : f32 to vector<2x32xf32>
    %c0_1 = arith.constant 0 : index
    %c0_2 = arith.constant 0 : index
    %2 = vector.load %arg6[%c0_1, %c0_2] : memref<6x96xf32, #tpu.memory_space<vmem>>, vector<6x96xf32>
    %cst_3 = arith.constant dense<0.000000e+00> : vector<14x96xf32>
    %3 = tpu.matmul %0, %2, %cst_3 {dimension_numbers = #tpu.dot_dimension_numbers<[1], [0], [0], [1], [0, 0, 1, 1], [], []>} : vector<14x6xf32>, vector<6x96xf32>, vector<14x96xf32> -> vector<14x96xf32>
    %c0_4 = arith.constant 0 : index
    %c0_5 = arith.constant 0 : index
    %4 = vector.load %arg8[%c0_4, %c0_5] : memref<1x96xf32, #tpu.memory_space<vmem>>, vector<1x96xf32>
    %5 = vector.broadcast %4 : vector<1x96xf32> to vector<14x96xf32>
    %6 = arith.addf %3, %5 : vector<14x96xf32>
    %c0_6 = arith.constant 0 : index
    %c0_7 = arith.constant 0 : index
    %7 = vector.load %arg7[%c0_6, %c0_7] : memref<32x96xf32, #tpu.memory_space<vmem>>, vector<32x96xf32>
    %c0_8 = arith.constant 0 : index
    %c0_9 = arith.constant 0 : index
    %8 = vector.load %arg9[%c0_8, %c0_9] : memref<1x96xf32, #tpu.memory_space<vmem>>, vector<1x96xf32>
    %9 = vector.extract_strided_slice %6 {offsets = [0, 0], sizes = [2, 96], strides = [1, 1]} : vector<14x96xf32> to vector<2x96xf32>
    %cst_10 = arith.constant dense<0.000000e+00> : vector<2x96xf32>
    %10 = tpu.matmul %1, %7, %cst_10 {dimension_numbers = #tpu.dot_dimension_numbers<[1], [0], [0], [1], [0, 0, 1, 1], [], []>} : vector<2x32xf32>, vector<32x96xf32>, vector<2x96xf32> -> vector<2x96xf32>
    %11 = vector.broadcast %8 : vector<1x96xf32> to vector<2x96xf32>
    %12 = arith.addf %10, %11 : vector<2x96xf32>
    %13 = vector.extract_strided_slice %9 {offsets = [0, 0], sizes = [2, 64], strides = [1, 1]} : vector<2x96xf32> to vector<2x64xf32>
    %14 = vector.extract_strided_slice %12 {offsets = [0, 0], sizes = [2, 64], strides = [1, 1]} : vector<2x96xf32> to vector<2x64xf32>
    %15 = arith.addf %13, %14 : vector<2x64xf32>
    %16 = arith.negf %15 : vector<2x64xf32>
    %17 = math.exp %16 : vector<2x64xf32>
    %cst_11 = arith.constant 1.000000e+00 : f32
    %18 = vector.broadcast %cst_11 : f32 to vector<2x64xf32>
    %19 = arith.addf %18, %17 : vector<2x64xf32>
    %20 = arith.divf %18, %19 : vector<2x64xf32>
    %21 = vector.extract_strided_slice %20 {offsets = [0, 0], sizes = [2, 32], strides = [1, 1]} : vector<2x64xf32> to vector<2x32xf32>
    %22 = vector.extract_strided_slice %20 {offsets = [0, 32], sizes = [2, 32], strides = [1, 1]} : vector<2x64xf32> to vector<2x32xf32>
    %23 = vector.extract_strided_slice %9 {offsets = [0, 64], sizes = [2, 32], strides = [1, 1]} : vector<2x96xf32> to vector<2x32xf32>
    %24 = vector.extract_strided_slice %12 {offsets = [0, 64], sizes = [2, 32], strides = [1, 1]} : vector<2x96xf32> to vector<2x32xf32>
    %25 = arith.mulf %21, %24 : vector<2x32xf32>
    %26 = arith.addf %23, %25 : vector<2x32xf32>
    %27 = math.tanh %26 : vector<2x32xf32>
    %cst_12 = arith.constant 1.000000e+00 : f32
    %28 = vector.broadcast %cst_12 : f32 to vector<2x32xf32>
    %29 = arith.subf %28, %22 : vector<2x32xf32>
    %30 = arith.mulf %29, %27 : vector<2x32xf32>
    %31 = arith.mulf %22, %1 : vector<2x32xf32>
    %32 = arith.addf %30, %31 : vector<2x32xf32>
    %33 = vector.extract_strided_slice %6 {offsets = [2, 0], sizes = [2, 96], strides = [1, 1]} : vector<14x96xf32> to vector<2x96xf32>
    %cst_13 = arith.constant dense<0.000000e+00> : vector<2x96xf32>
    %34 = tpu.matmul %32, %7, %cst_13 {dimension_numbers = #tpu.dot_dimension_numbers<[1], [0], [0], [1], [0, 0, 1, 1], [], []>} : vector<2x32xf32>, vector<32x96xf32>, vector<2x96xf32> -> vector<2x96xf32>
    %35 = vector.broadcast %8 : vector<1x96xf32> to vector<2x96xf32>
    %36 = arith.addf %34, %35 : vector<2x96xf32>
    %37 = vector.extract_strided_slice %33 {offsets = [0, 0], sizes = [2, 64], strides = [1, 1]} : vector<2x96xf32> to vector<2x64xf32>
    %38 = vector.extract_strided_slice %36 {offsets = [0, 0], sizes = [2, 64], strides = [1, 1]} : vector<2x96xf32> to vector<2x64xf32>
    %39 = arith.addf %37, %38 : vector<2x64xf32>
    %40 = arith.negf %39 : vector<2x64xf32>
    %41 = math.exp %40 : vector<2x64xf32>
    %cst_14 = arith.constant 1.000000e+00 : f32
    %42 = vector.broadcast %cst_14 : f32 to vector<2x64xf32>
    %43 = arith.addf %42, %41 : vector<2x64xf32>
    %44 = arith.divf %42, %43 : vector<2x64xf32>
    %45 = vector.extract_strided_slice %44 {offsets = [0, 0], sizes = [2, 32], strides = [1, 1]} : vector<2x64xf32> to vector<2x32xf32>
    %46 = vector.extract_strided_slice %44 {offsets = [0, 32], sizes = [2, 32], strides = [1, 1]} : vector<2x64xf32> to vector<2x32xf32>
    %47 = vector.extract_strided_slice %33 {offsets = [0, 64], sizes = [2, 32], strides = [1, 1]} : vector<2x96xf32> to vector<2x32xf32>
    %48 = vector.extract_strided_slice %36 {offsets = [0, 64], sizes = [2, 32], strides = [1, 1]} : vector<2x96xf32> to vector<2x32xf32>
    %49 = arith.mulf %45, %48 : vector<2x32xf32>
    %50 = arith.addf %47, %49 : vector<2x32xf32>
    %51 = math.tanh %50 : vector<2x32xf32>
    %cst_15 = arith.constant 1.000000e+00 : f32
    %52 = vector.broadcast %cst_15 : f32 to vector<2x32xf32>
    %53 = arith.subf %52, %46 : vector<2x32xf32>
    %54 = arith.mulf %53, %51 : vector<2x32xf32>
    %55 = arith.mulf %46, %32 : vector<2x32xf32>
    %56 = arith.addf %54, %55 : vector<2x32xf32>
    %57 = vector.extract_strided_slice %6 {offsets = [4, 0], sizes = [2, 96], strides = [1, 1]} : vector<14x96xf32> to vector<2x96xf32>
    %cst_16 = arith.constant dense<0.000000e+00> : vector<2x96xf32>
    %58 = tpu.matmul %56, %7, %cst_16 {dimension_numbers = #tpu.dot_dimension_numbers<[1], [0], [0], [1], [0, 0, 1, 1], [], []>} : vector<2x32xf32>, vector<32x96xf32>, vector<2x96xf32> -> vector<2x96xf32>
    %59 = vector.broadcast %8 : vector<1x96xf32> to vector<2x96xf32>
    %60 = arith.addf %58, %59 : vector<2x96xf32>
    %61 = vector.extract_strided_slice %57 {offsets = [0, 0], sizes = [2, 64], strides = [1, 1]} : vector<2x96xf32> to vector<2x64xf32>
    %62 = vector.extract_strided_slice %60 {offsets = [0, 0], sizes = [2, 64], strides = [1, 1]} : vector<2x96xf32> to vector<2x64xf32>
    %63 = arith.addf %61, %62 : vector<2x64xf32>
    %64 = arith.negf %63 : vector<2x64xf32>
    %65 = math.exp %64 : vector<2x64xf32>
    %cst_17 = arith.constant 1.000000e+00 : f32
    %66 = vector.broadcast %cst_17 : f32 to vector<2x64xf32>
    %67 = arith.addf %66, %65 : vector<2x64xf32>
    %68 = arith.divf %66, %67 : vector<2x64xf32>
    %69 = vector.extract_strided_slice %68 {offsets = [0, 0], sizes = [2, 32], strides = [1, 1]} : vector<2x64xf32> to vector<2x32xf32>
    %70 = vector.extract_strided_slice %68 {offsets = [0, 32], sizes = [2, 32], strides = [1, 1]} : vector<2x64xf32> to vector<2x32xf32>
    %71 = vector.extract_strided_slice %57 {offsets = [0, 64], sizes = [2, 32], strides = [1, 1]} : vector<2x96xf32> to vector<2x32xf32>
    %72 = vector.extract_strided_slice %60 {offsets = [0, 64], sizes = [2, 32], strides = [1, 1]} : vector<2x96xf32> to vector<2x32xf32>
    %73 = arith.mulf %69, %72 : vector<2x32xf32>
    %74 = arith.addf %71, %73 : vector<2x32xf32>
    %75 = math.tanh %74 : vector<2x32xf32>
    %cst_18 = arith.constant 1.000000e+00 : f32
    %76 = vector.broadcast %cst_18 : f32 to vector<2x32xf32>
    %77 = arith.subf %76, %70 : vector<2x32xf32>
    %78 = arith.mulf %77, %75 : vector<2x32xf32>
    %79 = arith.mulf %70, %56 : vector<2x32xf32>
    %80 = arith.addf %78, %79 : vector<2x32xf32>
    %81 = vector.extract_strided_slice %6 {offsets = [6, 0], sizes = [2, 96], strides = [1, 1]} : vector<14x96xf32> to vector<2x96xf32>
    %cst_19 = arith.constant dense<0.000000e+00> : vector<2x96xf32>
    %82 = tpu.matmul %80, %7, %cst_19 {dimension_numbers = #tpu.dot_dimension_numbers<[1], [0], [0], [1], [0, 0, 1, 1], [], []>} : vector<2x32xf32>, vector<32x96xf32>, vector<2x96xf32> -> vector<2x96xf32>
    %83 = vector.broadcast %8 : vector<1x96xf32> to vector<2x96xf32>
    %84 = arith.addf %82, %83 : vector<2x96xf32>
    %85 = vector.extract_strided_slice %81 {offsets = [0, 0], sizes = [2, 64], strides = [1, 1]} : vector<2x96xf32> to vector<2x64xf32>
    %86 = vector.extract_strided_slice %84 {offsets = [0, 0], sizes = [2, 64], strides = [1, 1]} : vector<2x96xf32> to vector<2x64xf32>
    %87 = arith.addf %85, %86 : vector<2x64xf32>
    %88 = arith.negf %87 : vector<2x64xf32>
    %89 = math.exp %88 : vector<2x64xf32>
    %cst_20 = arith.constant 1.000000e+00 : f32
    %90 = vector.broadcast %cst_20 : f32 to vector<2x64xf32>
    %91 = arith.addf %90, %89 : vector<2x64xf32>
    %92 = arith.divf %90, %91 : vector<2x64xf32>
    %93 = vector.extract_strided_slice %92 {offsets = [0, 0], sizes = [2, 32], strides = [1, 1]} : vector<2x64xf32> to vector<2x32xf32>
    %94 = vector.extract_strided_slice %92 {offsets = [0, 32], sizes = [2, 32], strides = [1, 1]} : vector<2x64xf32> to vector<2x32xf32>
    %95 = vector.extract_strided_slice %81 {offsets = [0, 64], sizes = [2, 32], strides = [1, 1]} : vector<2x96xf32> to vector<2x32xf32>
    %96 = vector.extract_strided_slice %84 {offsets = [0, 64], sizes = [2, 32], strides = [1, 1]} : vector<2x96xf32> to vector<2x32xf32>
    %97 = arith.mulf %93, %96 : vector<2x32xf32>
    %98 = arith.addf %95, %97 : vector<2x32xf32>
    %99 = math.tanh %98 : vector<2x32xf32>
    %cst_21 = arith.constant 1.000000e+00 : f32
    %100 = vector.broadcast %cst_21 : f32 to vector<2x32xf32>
    %101 = arith.subf %100, %94 : vector<2x32xf32>
    %102 = arith.mulf %101, %99 : vector<2x32xf32>
    %103 = arith.mulf %94, %80 : vector<2x32xf32>
    %104 = arith.addf %102, %103 : vector<2x32xf32>
    %105 = vector.extract_strided_slice %6 {offsets = [8, 0], sizes = [2, 96], strides = [1, 1]} : vector<14x96xf32> to vector<2x96xf32>
    %cst_22 = arith.constant dense<0.000000e+00> : vector<2x96xf32>
    %106 = tpu.matmul %104, %7, %cst_22 {dimension_numbers = #tpu.dot_dimension_numbers<[1], [0], [0], [1], [0, 0, 1, 1], [], []>} : vector<2x32xf32>, vector<32x96xf32>, vector<2x96xf32> -> vector<2x96xf32>
    %107 = vector.broadcast %8 : vector<1x96xf32> to vector<2x96xf32>
    %108 = arith.addf %106, %107 : vector<2x96xf32>
    %109 = vector.extract_strided_slice %105 {offsets = [0, 0], sizes = [2, 64], strides = [1, 1]} : vector<2x96xf32> to vector<2x64xf32>
    %110 = vector.extract_strided_slice %108 {offsets = [0, 0], sizes = [2, 64], strides = [1, 1]} : vector<2x96xf32> to vector<2x64xf32>
    %111 = arith.addf %109, %110 : vector<2x64xf32>
    %112 = arith.negf %111 : vector<2x64xf32>
    %113 = math.exp %112 : vector<2x64xf32>
    %cst_23 = arith.constant 1.000000e+00 : f32
    %114 = vector.broadcast %cst_23 : f32 to vector<2x64xf32>
    %115 = arith.addf %114, %113 : vector<2x64xf32>
    %116 = arith.divf %114, %115 : vector<2x64xf32>
    %117 = vector.extract_strided_slice %116 {offsets = [0, 0], sizes = [2, 32], strides = [1, 1]} : vector<2x64xf32> to vector<2x32xf32>
    %118 = vector.extract_strided_slice %116 {offsets = [0, 32], sizes = [2, 32], strides = [1, 1]} : vector<2x64xf32> to vector<2x32xf32>
    %119 = vector.extract_strided_slice %105 {offsets = [0, 64], sizes = [2, 32], strides = [1, 1]} : vector<2x96xf32> to vector<2x32xf32>
    %120 = vector.extract_strided_slice %108 {offsets = [0, 64], sizes = [2, 32], strides = [1, 1]} : vector<2x96xf32> to vector<2x32xf32>
    %121 = arith.mulf %117, %120 : vector<2x32xf32>
    %122 = arith.addf %119, %121 : vector<2x32xf32>
    %123 = math.tanh %122 : vector<2x32xf32>
    %cst_24 = arith.constant 1.000000e+00 : f32
    %124 = vector.broadcast %cst_24 : f32 to vector<2x32xf32>
    %125 = arith.subf %124, %118 : vector<2x32xf32>
    %126 = arith.mulf %125, %123 : vector<2x32xf32>
    %127 = arith.mulf %118, %104 : vector<2x32xf32>
    %128 = arith.addf %126, %127 : vector<2x32xf32>
    %129 = vector.extract_strided_slice %6 {offsets = [10, 0], sizes = [2, 96], strides = [1, 1]} : vector<14x96xf32> to vector<2x96xf32>
    %cst_25 = arith.constant dense<0.000000e+00> : vector<2x96xf32>
    %130 = tpu.matmul %128, %7, %cst_25 {dimension_numbers = #tpu.dot_dimension_numbers<[1], [0], [0], [1], [0, 0, 1, 1], [], []>} : vector<2x32xf32>, vector<32x96xf32>, vector<2x96xf32> -> vector<2x96xf32>
    %131 = vector.broadcast %8 : vector<1x96xf32> to vector<2x96xf32>
    %132 = arith.addf %130, %131 : vector<2x96xf32>
    %133 = vector.extract_strided_slice %129 {offsets = [0, 0], sizes = [2, 64], strides = [1, 1]} : vector<2x96xf32> to vector<2x64xf32>
    %134 = vector.extract_strided_slice %132 {offsets = [0, 0], sizes = [2, 64], strides = [1, 1]} : vector<2x96xf32> to vector<2x64xf32>
    %135 = arith.addf %133, %134 : vector<2x64xf32>
    %136 = arith.negf %135 : vector<2x64xf32>
    %137 = math.exp %136 : vector<2x64xf32>
    %cst_26 = arith.constant 1.000000e+00 : f32
    %138 = vector.broadcast %cst_26 : f32 to vector<2x64xf32>
    %139 = arith.addf %138, %137 : vector<2x64xf32>
    %140 = arith.divf %138, %139 : vector<2x64xf32>
    %141 = vector.extract_strided_slice %140 {offsets = [0, 0], sizes = [2, 32], strides = [1, 1]} : vector<2x64xf32> to vector<2x32xf32>
    %142 = vector.extract_strided_slice %140 {offsets = [0, 32], sizes = [2, 32], strides = [1, 1]} : vector<2x64xf32> to vector<2x32xf32>
    %143 = vector.extract_strided_slice %129 {offsets = [0, 64], sizes = [2, 32], strides = [1, 1]} : vector<2x96xf32> to vector<2x32xf32>
    %144 = vector.extract_strided_slice %132 {offsets = [0, 64], sizes = [2, 32], strides = [1, 1]} : vector<2x96xf32> to vector<2x32xf32>
    %145 = arith.mulf %141, %144 : vector<2x32xf32>
    %146 = arith.addf %143, %145 : vector<2x32xf32>
    %147 = math.tanh %146 : vector<2x32xf32>
    %cst_27 = arith.constant 1.000000e+00 : f32
    %148 = vector.broadcast %cst_27 : f32 to vector<2x32xf32>
    %149 = arith.subf %148, %142 : vector<2x32xf32>
    %150 = arith.mulf %149, %147 : vector<2x32xf32>
    %151 = arith.mulf %142, %128 : vector<2x32xf32>
    %152 = arith.addf %150, %151 : vector<2x32xf32>
    %153 = vector.extract_strided_slice %6 {offsets = [12, 0], sizes = [2, 96], strides = [1, 1]} : vector<14x96xf32> to vector<2x96xf32>
    %cst_28 = arith.constant dense<0.000000e+00> : vector<2x96xf32>
    %154 = tpu.matmul %152, %7, %cst_28 {dimension_numbers = #tpu.dot_dimension_numbers<[1], [0], [0], [1], [0, 0, 1, 1], [], []>} : vector<2x32xf32>, vector<32x96xf32>, vector<2x96xf32> -> vector<2x96xf32>
    %155 = vector.broadcast %8 : vector<1x96xf32> to vector<2x96xf32>
    %156 = arith.addf %154, %155 : vector<2x96xf32>
    %157 = vector.extract_strided_slice %153 {offsets = [0, 0], sizes = [2, 64], strides = [1, 1]} : vector<2x96xf32> to vector<2x64xf32>
    %158 = vector.extract_strided_slice %156 {offsets = [0, 0], sizes = [2, 64], strides = [1, 1]} : vector<2x96xf32> to vector<2x64xf32>
    %159 = arith.addf %157, %158 : vector<2x64xf32>
    %160 = arith.negf %159 : vector<2x64xf32>
    %161 = math.exp %160 : vector<2x64xf32>
    %cst_29 = arith.constant 1.000000e+00 : f32
    %162 = vector.broadcast %cst_29 : f32 to vector<2x64xf32>
    %163 = arith.addf %162, %161 : vector<2x64xf32>
    %164 = arith.divf %162, %163 : vector<2x64xf32>
    %165 = vector.extract_strided_slice %164 {offsets = [0, 0], sizes = [2, 32], strides = [1, 1]} : vector<2x64xf32> to vector<2x32xf32>
    %166 = vector.extract_strided_slice %164 {offsets = [0, 32], sizes = [2, 32], strides = [1, 1]} : vector<2x64xf32> to vector<2x32xf32>
    %167 = vector.extract_strided_slice %153 {offsets = [0, 64], sizes = [2, 32], strides = [1, 1]} : vector<2x96xf32> to vector<2x32xf32>
    %168 = vector.extract_strided_slice %156 {offsets = [0, 64], sizes = [2, 32], strides = [1, 1]} : vector<2x96xf32> to vector<2x32xf32>
    %169 = arith.mulf %165, %168 : vector<2x32xf32>
    %170 = arith.addf %167, %169 : vector<2x32xf32>
    %171 = math.tanh %170 : vector<2x32xf32>
    %cst_30 = arith.constant 1.000000e+00 : f32
    %172 = vector.broadcast %cst_30 : f32 to vector<2x32xf32>
    %173 = arith.subf %172, %166 : vector<2x32xf32>
    %174 = arith.mulf %173, %171 : vector<2x32xf32>
    %175 = arith.mulf %166, %152 : vector<2x32xf32>
    %176 = arith.addf %174, %175 : vector<2x32xf32>
    %177 = tpu.concatenate %32, %56, %80, %104, %128, %152, %176 in 0 : vector<2x32xf32>, vector<2x32xf32>, vector<2x32xf32>, vector<2x32xf32>, vector<2x32xf32>, vector<2x32xf32>, vector<2x32xf32> -> vector<14x32xf32>
    %c0_31 = arith.constant 0 : index
    %c0_32 = arith.constant 0 : index
    %178 = vector.load %arg10[%c0_31, %c0_32] : memref<32x96xf32, #tpu.memory_space<vmem>>, vector<32x96xf32>
    %cst_33 = arith.constant dense<0.000000e+00> : vector<14x96xf32>
    %179 = tpu.matmul %177, %178, %cst_33 {dimension_numbers = #tpu.dot_dimension_numbers<[1], [0], [0], [1], [0, 0, 1, 1], [], []>} : vector<14x32xf32>, vector<32x96xf32>, vector<14x96xf32> -> vector<14x96xf32>
    %c0_34 = arith.constant 0 : index
    %c0_35 = arith.constant 0 : index
    %180 = vector.load %arg12[%c0_34, %c0_35] : memref<1x96xf32, #tpu.memory_space<vmem>>, vector<1x96xf32>
    %181 = vector.broadcast %180 : vector<1x96xf32> to vector<14x96xf32>
    %182 = arith.addf %179, %181 : vector<14x96xf32>
    %c0_36 = arith.constant 0 : index
    %c0_37 = arith.constant 0 : index
    %183 = vector.load %arg11[%c0_36, %c0_37] : memref<32x96xf32, #tpu.memory_space<vmem>>, vector<32x96xf32>
    %c0_38 = arith.constant 0 : index
    %c0_39 = arith.constant 0 : index
    %184 = vector.load %arg13[%c0_38, %c0_39] : memref<1x96xf32, #tpu.memory_space<vmem>>, vector<1x96xf32>
    %185 = vector.extract_strided_slice %182 {offsets = [0, 0], sizes = [2, 96], strides = [1, 1]} : vector<14x96xf32> to vector<2x96xf32>
    %cst_40 = arith.constant dense<0.000000e+00> : vector<2x96xf32>
    %186 = tpu.matmul %1, %183, %cst_40 {dimension_numbers = #tpu.dot_dimension_numbers<[1], [0], [0], [1], [0, 0, 1, 1], [], []>} : vector<2x32xf32>, vector<32x96xf32>, vector<2x96xf32> -> vector<2x96xf32>
    %187 = vector.broadcast %184 : vector<1x96xf32> to vector<2x96xf32>
    %188 = arith.addf %186, %187 : vector<2x96xf32>
    %189 = vector.extract_strided_slice %185 {offsets = [0, 0], sizes = [2, 64], strides = [1, 1]} : vector<2x96xf32> to vector<2x64xf32>
    %190 = vector.extract_strided_slice %188 {offsets = [0, 0], sizes = [2, 64], strides = [1, 1]} : vector<2x96xf32> to vector<2x64xf32>
    %191 = arith.addf %189, %190 : vector<2x64xf32>
    %192 = arith.negf %191 : vector<2x64xf32>
    %193 = math.exp %192 : vector<2x64xf32>
    %cst_41 = arith.constant 1.000000e+00 : f32
    %194 = vector.broadcast %cst_41 : f32 to vector<2x64xf32>
    %195 = arith.addf %194, %193 : vector<2x64xf32>
    %196 = arith.divf %194, %195 : vector<2x64xf32>
    %197 = vector.extract_strided_slice %196 {offsets = [0, 0], sizes = [2, 32], strides = [1, 1]} : vector<2x64xf32> to vector<2x32xf32>
    %198 = vector.extract_strided_slice %196 {offsets = [0, 32], sizes = [2, 32], strides = [1, 1]} : vector<2x64xf32> to vector<2x32xf32>
    %199 = vector.extract_strided_slice %185 {offsets = [0, 64], sizes = [2, 32], strides = [1, 1]} : vector<2x96xf32> to vector<2x32xf32>
    %200 = vector.extract_strided_slice %188 {offsets = [0, 64], sizes = [2, 32], strides = [1, 1]} : vector<2x96xf32> to vector<2x32xf32>
    %201 = arith.mulf %197, %200 : vector<2x32xf32>
    %202 = arith.addf %199, %201 : vector<2x32xf32>
    %203 = math.tanh %202 : vector<2x32xf32>
    %cst_42 = arith.constant 1.000000e+00 : f32
    %204 = vector.broadcast %cst_42 : f32 to vector<2x32xf32>
    %205 = arith.subf %204, %198 : vector<2x32xf32>
    %206 = arith.mulf %205, %203 : vector<2x32xf32>
    %207 = arith.mulf %198, %1 : vector<2x32xf32>
    %208 = arith.addf %206, %207 : vector<2x32xf32>
    %209 = vector.extract_strided_slice %182 {offsets = [2, 0], sizes = [2, 96], strides = [1, 1]} : vector<14x96xf32> to vector<2x96xf32>
    %cst_43 = arith.constant dense<0.000000e+00> : vector<2x96xf32>
    %210 = tpu.matmul %208, %183, %cst_43 {dimension_numbers = #tpu.dot_dimension_numbers<[1], [0], [0], [1], [0, 0, 1, 1], [], []>} : vector<2x32xf32>, vector<32x96xf32>, vector<2x96xf32> -> vector<2x96xf32>
    %211 = vector.broadcast %184 : vector<1x96xf32> to vector<2x96xf32>
    %212 = arith.addf %210, %211 : vector<2x96xf32>
    %213 = vector.extract_strided_slice %209 {offsets = [0, 0], sizes = [2, 64], strides = [1, 1]} : vector<2x96xf32> to vector<2x64xf32>
    %214 = vector.extract_strided_slice %212 {offsets = [0, 0], sizes = [2, 64], strides = [1, 1]} : vector<2x96xf32> to vector<2x64xf32>
    %215 = arith.addf %213, %214 : vector<2x64xf32>
    %216 = arith.negf %215 : vector<2x64xf32>
    %217 = math.exp %216 : vector<2x64xf32>
    %cst_44 = arith.constant 1.000000e+00 : f32
    %218 = vector.broadcast %cst_44 : f32 to vector<2x64xf32>
    %219 = arith.addf %218, %217 : vector<2x64xf32>
    %220 = arith.divf %218, %219 : vector<2x64xf32>
    %221 = vector.extract_strided_slice %220 {offsets = [0, 0], sizes = [2, 32], strides = [1, 1]} : vector<2x64xf32> to vector<2x32xf32>
    %222 = vector.extract_strided_slice %220 {offsets = [0, 32], sizes = [2, 32], strides = [1, 1]} : vector<2x64xf32> to vector<2x32xf32>
    %223 = vector.extract_strided_slice %209 {offsets = [0, 64], sizes = [2, 32], strides = [1, 1]} : vector<2x96xf32> to vector<2x32xf32>
    %224 = vector.extract_strided_slice %212 {offsets = [0, 64], sizes = [2, 32], strides = [1, 1]} : vector<2x96xf32> to vector<2x32xf32>
    %225 = arith.mulf %221, %224 : vector<2x32xf32>
    %226 = arith.addf %223, %225 : vector<2x32xf32>
    %227 = math.tanh %226 : vector<2x32xf32>
    %cst_45 = arith.constant 1.000000e+00 : f32
    %228 = vector.broadcast %cst_45 : f32 to vector<2x32xf32>
    %229 = arith.subf %228, %222 : vector<2x32xf32>
    %230 = arith.mulf %229, %227 : vector<2x32xf32>
    %231 = arith.mulf %222, %208 : vector<2x32xf32>
    %232 = arith.addf %230, %231 : vector<2x32xf32>
    %233 = vector.extract_strided_slice %182 {offsets = [4, 0], sizes = [2, 96], strides = [1, 1]} : vector<14x96xf32> to vector<2x96xf32>
    %cst_46 = arith.constant dense<0.000000e+00> : vector<2x96xf32>
    %234 = tpu.matmul %232, %183, %cst_46 {dimension_numbers = #tpu.dot_dimension_numbers<[1], [0], [0], [1], [0, 0, 1, 1], [], []>} : vector<2x32xf32>, vector<32x96xf32>, vector<2x96xf32> -> vector<2x96xf32>
    %235 = vector.broadcast %184 : vector<1x96xf32> to vector<2x96xf32>
    %236 = arith.addf %234, %235 : vector<2x96xf32>
    %237 = vector.extract_strided_slice %233 {offsets = [0, 0], sizes = [2, 64], strides = [1, 1]} : vector<2x96xf32> to vector<2x64xf32>
    %238 = vector.extract_strided_slice %236 {offsets = [0, 0], sizes = [2, 64], strides = [1, 1]} : vector<2x96xf32> to vector<2x64xf32>
    %239 = arith.addf %237, %238 : vector<2x64xf32>
    %240 = arith.negf %239 : vector<2x64xf32>
    %241 = math.exp %240 : vector<2x64xf32>
    %cst_47 = arith.constant 1.000000e+00 : f32
    %242 = vector.broadcast %cst_47 : f32 to vector<2x64xf32>
    %243 = arith.addf %242, %241 : vector<2x64xf32>
    %244 = arith.divf %242, %243 : vector<2x64xf32>
    %245 = vector.extract_strided_slice %244 {offsets = [0, 0], sizes = [2, 32], strides = [1, 1]} : vector<2x64xf32> to vector<2x32xf32>
    %246 = vector.extract_strided_slice %244 {offsets = [0, 32], sizes = [2, 32], strides = [1, 1]} : vector<2x64xf32> to vector<2x32xf32>
    %247 = vector.extract_strided_slice %233 {offsets = [0, 64], sizes = [2, 32], strides = [1, 1]} : vector<2x96xf32> to vector<2x32xf32>
    %248 = vector.extract_strided_slice %236 {offsets = [0, 64], sizes = [2, 32], strides = [1, 1]} : vector<2x96xf32> to vector<2x32xf32>
    %249 = arith.mulf %245, %248 : vector<2x32xf32>
    %250 = arith.addf %247, %249 : vector<2x32xf32>
    %251 = math.tanh %250 : vector<2x32xf32>
    %cst_48 = arith.constant 1.000000e+00 : f32
    %252 = vector.broadcast %cst_48 : f32 to vector<2x32xf32>
    %253 = arith.subf %252, %246 : vector<2x32xf32>
    %254 = arith.mulf %253, %251 : vector<2x32xf32>
    %255 = arith.mulf %246, %232 : vector<2x32xf32>
    %256 = arith.addf %254, %255 : vector<2x32xf32>
    %257 = vector.extract_strided_slice %182 {offsets = [6, 0], sizes = [2, 96], strides = [1, 1]} : vector<14x96xf32> to vector<2x96xf32>
    %cst_49 = arith.constant dense<0.000000e+00> : vector<2x96xf32>
    %258 = tpu.matmul %256, %183, %cst_49 {dimension_numbers = #tpu.dot_dimension_numbers<[1], [0], [0], [1], [0, 0, 1, 1], [], []>} : vector<2x32xf32>, vector<32x96xf32>, vector<2x96xf32> -> vector<2x96xf32>
    %259 = vector.broadcast %184 : vector<1x96xf32> to vector<2x96xf32>
    %260 = arith.addf %258, %259 : vector<2x96xf32>
    %261 = vector.extract_strided_slice %257 {offsets = [0, 0], sizes = [2, 64], strides = [1, 1]} : vector<2x96xf32> to vector<2x64xf32>
    %262 = vector.extract_strided_slice %260 {offsets = [0, 0], sizes = [2, 64], strides = [1, 1]} : vector<2x96xf32> to vector<2x64xf32>
    %263 = arith.addf %261, %262 : vector<2x64xf32>
    %264 = arith.negf %263 : vector<2x64xf32>
    %265 = math.exp %264 : vector<2x64xf32>
    %cst_50 = arith.constant 1.000000e+00 : f32
    %266 = vector.broadcast %cst_50 : f32 to vector<2x64xf32>
    %267 = arith.addf %266, %265 : vector<2x64xf32>
    %268 = arith.divf %266, %267 : vector<2x64xf32>
    %269 = vector.extract_strided_slice %268 {offsets = [0, 0], sizes = [2, 32], strides = [1, 1]} : vector<2x64xf32> to vector<2x32xf32>
    %270 = vector.extract_strided_slice %268 {offsets = [0, 32], sizes = [2, 32], strides = [1, 1]} : vector<2x64xf32> to vector<2x32xf32>
    %271 = vector.extract_strided_slice %257 {offsets = [0, 64], sizes = [2, 32], strides = [1, 1]} : vector<2x96xf32> to vector<2x32xf32>
    %272 = vector.extract_strided_slice %260 {offsets = [0, 64], sizes = [2, 32], strides = [1, 1]} : vector<2x96xf32> to vector<2x32xf32>
    %273 = arith.mulf %269, %272 : vector<2x32xf32>
    %274 = arith.addf %271, %273 : vector<2x32xf32>
    %275 = math.tanh %274 : vector<2x32xf32>
    %cst_51 = arith.constant 1.000000e+00 : f32
    %276 = vector.broadcast %cst_51 : f32 to vector<2x32xf32>
    %277 = arith.subf %276, %270 : vector<2x32xf32>
    %278 = arith.mulf %277, %275 : vector<2x32xf32>
    %279 = arith.mulf %270, %256 : vector<2x32xf32>
    %280 = arith.addf %278, %279 : vector<2x32xf32>
    %281 = vector.extract_strided_slice %182 {offsets = [8, 0], sizes = [2, 96], strides = [1, 1]} : vector<14x96xf32> to vector<2x96xf32>
    %cst_52 = arith.constant dense<0.000000e+00> : vector<2x96xf32>
    %282 = tpu.matmul %280, %183, %cst_52 {dimension_numbers = #tpu.dot_dimension_numbers<[1], [0], [0], [1], [0, 0, 1, 1], [], []>} : vector<2x32xf32>, vector<32x96xf32>, vector<2x96xf32> -> vector<2x96xf32>
    %283 = vector.broadcast %184 : vector<1x96xf32> to vector<2x96xf32>
    %284 = arith.addf %282, %283 : vector<2x96xf32>
    %285 = vector.extract_strided_slice %281 {offsets = [0, 0], sizes = [2, 64], strides = [1, 1]} : vector<2x96xf32> to vector<2x64xf32>
    %286 = vector.extract_strided_slice %284 {offsets = [0, 0], sizes = [2, 64], strides = [1, 1]} : vector<2x96xf32> to vector<2x64xf32>
    %287 = arith.addf %285, %286 : vector<2x64xf32>
    %288 = arith.negf %287 : vector<2x64xf32>
    %289 = math.exp %288 : vector<2x64xf32>
    %cst_53 = arith.constant 1.000000e+00 : f32
    %290 = vector.broadcast %cst_53 : f32 to vector<2x64xf32>
    %291 = arith.addf %290, %289 : vector<2x64xf32>
    %292 = arith.divf %290, %291 : vector<2x64xf32>
    %293 = vector.extract_strided_slice %292 {offsets = [0, 0], sizes = [2, 32], strides = [1, 1]} : vector<2x64xf32> to vector<2x32xf32>
    %294 = vector.extract_strided_slice %292 {offsets = [0, 32], sizes = [2, 32], strides = [1, 1]} : vector<2x64xf32> to vector<2x32xf32>
    %295 = vector.extract_strided_slice %281 {offsets = [0, 64], sizes = [2, 32], strides = [1, 1]} : vector<2x96xf32> to vector<2x32xf32>
    %296 = vector.extract_strided_slice %284 {offsets = [0, 64], sizes = [2, 32], strides = [1, 1]} : vector<2x96xf32> to vector<2x32xf32>
    %297 = arith.mulf %293, %296 : vector<2x32xf32>
    %298 = arith.addf %295, %297 : vector<2x32xf32>
    %299 = math.tanh %298 : vector<2x32xf32>
    %cst_54 = arith.constant 1.000000e+00 : f32
    %300 = vector.broadcast %cst_54 : f32 to vector<2x32xf32>
    %301 = arith.subf %300, %294 : vector<2x32xf32>
    %302 = arith.mulf %301, %299 : vector<2x32xf32>
    %303 = arith.mulf %294, %280 : vector<2x32xf32>
    %304 = arith.addf %302, %303 : vector<2x32xf32>
    %305 = vector.extract_strided_slice %182 {offsets = [10, 0], sizes = [2, 96], strides = [1, 1]} : vector<14x96xf32> to vector<2x96xf32>
    %cst_55 = arith.constant dense<0.000000e+00> : vector<2x96xf32>
    %306 = tpu.matmul %304, %183, %cst_55 {dimension_numbers = #tpu.dot_dimension_numbers<[1], [0], [0], [1], [0, 0, 1, 1], [], []>} : vector<2x32xf32>, vector<32x96xf32>, vector<2x96xf32> -> vector<2x96xf32>
    %307 = vector.broadcast %184 : vector<1x96xf32> to vector<2x96xf32>
    %308 = arith.addf %306, %307 : vector<2x96xf32>
    %309 = vector.extract_strided_slice %305 {offsets = [0, 0], sizes = [2, 64], strides = [1, 1]} : vector<2x96xf32> to vector<2x64xf32>
    %310 = vector.extract_strided_slice %308 {offsets = [0, 0], sizes = [2, 64], strides = [1, 1]} : vector<2x96xf32> to vector<2x64xf32>
    %311 = arith.addf %309, %310 : vector<2x64xf32>
    %312 = arith.negf %311 : vector<2x64xf32>
    %313 = math.exp %312 : vector<2x64xf32>
    %cst_56 = arith.constant 1.000000e+00 : f32
    %314 = vector.broadcast %cst_56 : f32 to vector<2x64xf32>
    %315 = arith.addf %314, %313 : vector<2x64xf32>
    %316 = arith.divf %314, %315 : vector<2x64xf32>
    %317 = vector.extract_strided_slice %316 {offsets = [0, 0], sizes = [2, 32], strides = [1, 1]} : vector<2x64xf32> to vector<2x32xf32>
    %318 = vector.extract_strided_slice %316 {offsets = [0, 32], sizes = [2, 32], strides = [1, 1]} : vector<2x64xf32> to vector<2x32xf32>
    %319 = vector.extract_strided_slice %305 {offsets = [0, 64], sizes = [2, 32], strides = [1, 1]} : vector<2x96xf32> to vector<2x32xf32>
    %320 = vector.extract_strided_slice %308 {offsets = [0, 64], sizes = [2, 32], strides = [1, 1]} : vector<2x96xf32> to vector<2x32xf32>
    %321 = arith.mulf %317, %320 : vector<2x32xf32>
    %322 = arith.addf %319, %321 : vector<2x32xf32>
    %323 = math.tanh %322 : vector<2x32xf32>
    %cst_57 = arith.constant 1.000000e+00 : f32
    %324 = vector.broadcast %cst_57 : f32 to vector<2x32xf32>
    %325 = arith.subf %324, %318 : vector<2x32xf32>
    %326 = arith.mulf %325, %323 : vector<2x32xf32>
    %327 = arith.mulf %318, %304 : vector<2x32xf32>
    %328 = arith.addf %326, %327 : vector<2x32xf32>
    %329 = vector.extract_strided_slice %182 {offsets = [12, 0], sizes = [2, 96], strides = [1, 1]} : vector<14x96xf32> to vector<2x96xf32>
    %cst_58 = arith.constant dense<0.000000e+00> : vector<2x96xf32>
    %330 = tpu.matmul %328, %183, %cst_58 {dimension_numbers = #tpu.dot_dimension_numbers<[1], [0], [0], [1], [0, 0, 1, 1], [], []>} : vector<2x32xf32>, vector<32x96xf32>, vector<2x96xf32> -> vector<2x96xf32>
    %331 = vector.broadcast %184 : vector<1x96xf32> to vector<2x96xf32>
    %332 = arith.addf %330, %331 : vector<2x96xf32>
    %333 = vector.extract_strided_slice %329 {offsets = [0, 0], sizes = [2, 64], strides = [1, 1]} : vector<2x96xf32> to vector<2x64xf32>
    %334 = vector.extract_strided_slice %332 {offsets = [0, 0], sizes = [2, 64], strides = [1, 1]} : vector<2x96xf32> to vector<2x64xf32>
    %335 = arith.addf %333, %334 : vector<2x64xf32>
    %336 = arith.negf %335 : vector<2x64xf32>
    %337 = math.exp %336 : vector<2x64xf32>
    %cst_59 = arith.constant 1.000000e+00 : f32
    %338 = vector.broadcast %cst_59 : f32 to vector<2x64xf32>
    %339 = arith.addf %338, %337 : vector<2x64xf32>
    %340 = arith.divf %338, %339 : vector<2x64xf32>
    %341 = vector.extract_strided_slice %340 {offsets = [0, 0], sizes = [2, 32], strides = [1, 1]} : vector<2x64xf32> to vector<2x32xf32>
    %342 = vector.extract_strided_slice %340 {offsets = [0, 32], sizes = [2, 32], strides = [1, 1]} : vector<2x64xf32> to vector<2x32xf32>
    %343 = vector.extract_strided_slice %329 {offsets = [0, 64], sizes = [2, 32], strides = [1, 1]} : vector<2x96xf32> to vector<2x32xf32>
    %344 = vector.extract_strided_slice %332 {offsets = [0, 64], sizes = [2, 32], strides = [1, 1]} : vector<2x96xf32> to vector<2x32xf32>
    %345 = arith.mulf %341, %344 : vector<2x32xf32>
    %346 = arith.addf %343, %345 : vector<2x32xf32>
    %347 = math.tanh %346 : vector<2x32xf32>
    %cst_60 = arith.constant 1.000000e+00 : f32
    %348 = vector.broadcast %cst_60 : f32 to vector<2x32xf32>
    %349 = arith.subf %348, %342 : vector<2x32xf32>
    %350 = arith.mulf %349, %347 : vector<2x32xf32>
    %351 = arith.mulf %342, %328 : vector<2x32xf32>
    %352 = arith.addf %350, %351 : vector<2x32xf32>
    %cst_61 = arith.constant 0.993743658 : f32
    %353 = vector.broadcast %cst_61 : f32 to vector<2x32xf32>
    %354 = arith.mulf %353, %352 : vector<2x32xf32>
    %c0_62 = arith.constant 0 : index
    %c0_63 = arith.constant 0 : index
    %355 = vector.load %arg2[%c0_62, %c0_63] : memref<2x32xf32, #tpu.memory_space<vmem>>, vector<2x32xf32>
    %cst_64 = arith.constant 0.111685209 : f32
    %356 = vector.broadcast %cst_64 : f32 to vector<2x32xf32>
    %357 = arith.mulf %356, %355 : vector<2x32xf32>
    %358 = arith.addf %354, %357 : vector<2x32xf32>
    %359 = tpu.iota {dimensions = array<i32: 1>} : vector<4x5xi32>
    %c0_65 = arith.constant 0 : index
    %c0_66 = arith.constant 0 : index
    %360 = vector.load %arg1[%c0_65, %c0_66] : memref<4x1xi32, #tpu.memory_space<vmem>>, vector<4x1xi32>
    %361 = vector.broadcast %360 : vector<4x1xi32> to vector<4x5xi32>
    %362 = arith.cmpi eq, %359, %361 : vector<4x5xi32>
    %363 = arith.extui %362 : vector<4x5xi1> to vector<4x5xi32>
    %364 = arith.sitofp %363 : vector<4x5xi32> to vector<4x5xf32>
    %c0_67 = arith.constant 0 : index
    %c0_68 = arith.constant 0 : index
    %365 = vector.load %arg5[%c0_67, %c0_68] : memref<5x386xf32, #tpu.memory_space<vmem>>, vector<5x386xf32>
    %cst_69 = arith.constant dense<0.000000e+00> : vector<4x386xf32>
    %366 = tpu.matmul %364, %365, %cst_69 {dimension_numbers = #tpu.dot_dimension_numbers<[1], [0], [0], [1], [0, 0, 1, 1], [], []>} : vector<4x5xf32>, vector<5x386xf32>, vector<4x386xf32> -> vector<4x386xf32>
    %367 = vector.extract_strided_slice %366 {offsets = [0, 0], sizes = [4, 128], strides = [1, 1]} : vector<4x386xf32> to vector<4x128xf32>
    %368 = vector.extract_strided_slice %366 {offsets = [0, 128], sizes = [4, 128], strides = [1, 1]} : vector<4x386xf32> to vector<4x128xf32>
    %369 = vector.extract_strided_slice %366 {offsets = [0, 256], sizes = [4, 128], strides = [1, 1]} : vector<4x386xf32> to vector<4x128xf32>
    %370 = vector.extract_strided_slice %366 {offsets = [0, 384], sizes = [2, 1], strides = [1, 1]} : vector<4x386xf32> to vector<2x1xf32>
    %371 = vector.extract_strided_slice %366 {offsets = [0, 385], sizes = [2, 1], strides = [1, 1]} : vector<4x386xf32> to vector<2x1xf32>
    %c0_70 = arith.constant 0 : index
    %c0_71 = arith.constant 0 : index
    %372 = vector.load %arg3[%c0_70, %c0_71] : memref<2x32xf32, #tpu.memory_space<vmem>>, vector<2x32xf32>
    %373 = vector.broadcast %370 : vector<2x1xf32> to vector<2x32xf32>
    %374 = arith.mulf %358, %373 : vector<2x32xf32>
    %375 = vector.broadcast %371 : vector<2x1xf32> to vector<2x32xf32>
    %376 = arith.mulf %372, %375 : vector<2x32xf32>
    %377 = arith.addf %374, %376 : vector<2x32xf32>
    %378 = tpu.concatenate %377, %358 in 0 : vector<2x32xf32>, vector<2x32xf32> -> vector<4x32xf32>
    %c0_72 = arith.constant 0 : index
    %c0_73 = arith.constant 0 : index
    %379 = vector.load %arg22[%c0_72, %c0_73] : memref<32x128xf32, #tpu.memory_space<vmem>>, vector<32x128xf32>
    %cst_74 = arith.constant dense<0.000000e+00> : vector<4x128xf32>
    %380 = tpu.matmul %378, %379, %cst_74 {dimension_numbers = #tpu.dot_dimension_numbers<[1], [0], [0], [1], [0, 0, 1, 1], [], []>} : vector<4x32xf32>, vector<32x128xf32>, vector<4x128xf32> -> vector<4x128xf32>
    %c0_75 = arith.constant 0 : index
    %c0_76 = arith.constant 0 : index
    %381 = vector.load %arg23[%c0_75, %c0_76] : memref<1x128xf32, #tpu.memory_space<vmem>>, vector<1x128xf32>
    %382 = vector.broadcast %381 : vector<1x128xf32> to vector<4x128xf32>
    %383 = arith.addf %380, %382 : vector<4x128xf32>
    %384 = arith.addf %383, %367 : vector<4x128xf32>
    %cst_77 = arith.constant 0.000000e+00 : f32
    %385 = vector.broadcast %cst_77 : f32 to vector<4x128xf32>
    %386 = arith.maximumf %384, %385 : vector<4x128xf32>
    %c0_78 = arith.constant 0 : index
    %c0_79 = arith.constant 0 : index
    %387 = vector.load %arg24[%c0_78, %c0_79] : memref<128x128xf32, #tpu.memory_space<vmem>>, vector<128x128xf32>
    %cst_80 = arith.constant dense<0.000000e+00> : vector<4x128xf32>
    %388 = tpu.matmul %386, %387, %cst_80 {dimension_numbers = #tpu.dot_dimension_numbers<[1], [0], [0], [1], [0, 0, 1, 1], [], []>} : vector<4x128xf32>, vector<128x128xf32>, vector<4x128xf32> -> vector<4x128xf32>
    %c0_81 = arith.constant 0 : index
    %c0_82 = arith.constant 0 : index
    %389 = vector.load %arg25[%c0_81, %c0_82] : memref<1x128xf32, #tpu.memory_space<vmem>>, vector<1x128xf32>
    %390 = vector.broadcast %389 : vector<1x128xf32> to vector<4x128xf32>
    %391 = arith.addf %388, %390 : vector<4x128xf32>
    %392 = arith.addf %391, %368 : vector<4x128xf32>
    %cst_83 = arith.constant 0.000000e+00 : f32
    %393 = vector.broadcast %cst_83 : f32 to vector<4x128xf32>
    %394 = arith.maximumf %392, %393 : vector<4x128xf32>
    %c0_84 = arith.constant 0 : index
    %c0_85 = arith.constant 0 : index
    %395 = vector.load %arg26[%c0_84, %c0_85] : memref<128x128xf32, #tpu.memory_space<vmem>>, vector<128x128xf32>
    %cst_86 = arith.constant dense<0.000000e+00> : vector<4x128xf32>
    %396 = tpu.matmul %394, %395, %cst_86 {dimension_numbers = #tpu.dot_dimension_numbers<[1], [0], [0], [1], [0, 0, 1, 1], [], []>} : vector<4x128xf32>, vector<128x128xf32>, vector<4x128xf32> -> vector<4x128xf32>
    %c0_87 = arith.constant 0 : index
    %c0_88 = arith.constant 0 : index
    %397 = vector.load %arg27[%c0_87, %c0_88] : memref<1x128xf32, #tpu.memory_space<vmem>>, vector<1x128xf32>
    %398 = vector.broadcast %397 : vector<1x128xf32> to vector<4x128xf32>
    %399 = arith.addf %396, %398 : vector<4x128xf32>
    %400 = arith.addf %399, %369 : vector<4x128xf32>
    %cst_89 = arith.constant 0.000000e+00 : f32
    %401 = vector.broadcast %cst_89 : f32 to vector<4x128xf32>
    %402 = arith.maximumf %400, %401 : vector<4x128xf32>
    %c0_90 = arith.constant 0 : index
    %c0_91 = arith.constant 0 : index
    %403 = vector.load %arg28[%c0_90, %c0_91] : memref<128x32xf32, #tpu.memory_space<vmem>>, vector<128x32xf32>
    %cst_92 = arith.constant dense<0.000000e+00> : vector<4x32xf32>
    %404 = tpu.matmul %402, %403, %cst_92 {dimension_numbers = #tpu.dot_dimension_numbers<[1], [0], [0], [1], [0, 0, 1, 1], [], []>} : vector<4x128xf32>, vector<128x32xf32>, vector<4x32xf32> -> vector<4x32xf32>
    %c0_93 = arith.constant 0 : index
    %c0_94 = arith.constant 0 : index
    %405 = vector.load %arg29[%c0_93, %c0_94] : memref<1x32xf32, #tpu.memory_space<vmem>>, vector<1x32xf32>
    %406 = vector.broadcast %405 : vector<1x32xf32> to vector<4x32xf32>
    %407 = arith.addf %404, %406 : vector<4x32xf32>
    %408 = vector.extract_strided_slice %407 {offsets = [0, 0], sizes = [2, 32], strides = [1, 1]} : vector<4x32xf32> to vector<2x32xf32>
    %409 = arith.subf %372, %408 : vector<2x32xf32>
    %410 = arith.mulf %409, %409 : vector<2x32xf32>
    %411 = vector.shape_cast %410 : vector<2x32xf32> to vector<1x2x32xf32>
    %cst_95 = arith.constant dense<0.000000e+00> : vector<1xf32>
    %412 = vector.multi_reduction <add>, %411, %cst_95 [1, 2] : vector<1x2x32xf32> to vector<1xf32>
    %413 = vector.shape_cast %412 : vector<1xf32> to vector<1x1x1xf32>
    %414 = vector.extract %413[0, 0, 0] : f32 from vector<1x1x1xf32>
    %415 = vector.broadcast %414 : f32 to vector<1x1xf32>
    %cst_96 = arith.constant 1.562500e-02 : f32
    %416 = vector.broadcast %cst_96 : f32 to vector<1x1xf32>
    %417 = arith.mulf %415, %416 : vector<1x1xf32>
    %418 = vector.extract_strided_slice %407 {offsets = [2, 0], sizes = [2, 32], strides = [1, 1]} : vector<4x32xf32> to vector<2x32xf32>
    %cst_97 = arith.constant 0.0446582101 : f32
    %419 = vector.broadcast %cst_97 : f32 to vector<2x32xf32>
    %420 = arith.mulf %419, %418 : vector<2x32xf32>
    %421 = arith.subf %358, %420 : vector<2x32xf32>
    %cst_98 = arith.constant 1.00250316 : f32
    %422 = vector.broadcast %cst_98 : f32 to vector<2x32xf32>
    %423 = arith.mulf %422, %421 : vector<2x32xf32>
    %c0_99 = arith.constant 0 : index
    %c0_100 = arith.constant 0 : index
    %424 = vector.load %arg4[%c0_99, %c0_100] : memref<2x32xf32, #tpu.memory_space<vmem>>, vector<2x32xf32>
    %cst_101 = arith.constant 0.0706233755 : f32
    %425 = vector.broadcast %cst_101 : f32 to vector<2x32xf32>
    %426 = arith.mulf %425, %424 : vector<2x32xf32>
    %427 = arith.addf %423, %426 : vector<2x32xf32>
    %c0_102 = arith.constant 0 : index
    %c0_103 = arith.constant 0 : index
    %428 = vector.load %arg7[%c0_102, %c0_103] : memref<32x96xf32, #tpu.memory_space<vmem>>, vector<32x96xf32>
    %c0_104 = arith.constant 0 : index
    %c0_105 = arith.constant 0 : index
    %429 = vector.load %arg9[%c0_104, %c0_105] : memref<1x96xf32, #tpu.memory_space<vmem>>, vector<1x96xf32>
    %430 = vector.extract_strided_slice %6 {offsets = [0, 0], sizes = [2, 96], strides = [1, 1]} : vector<14x96xf32> to vector<2x96xf32>
    %cst_106 = arith.constant dense<0.000000e+00> : vector<2x96xf32>
    %431 = tpu.matmul %427, %428, %cst_106 {dimension_numbers = #tpu.dot_dimension_numbers<[1], [0], [0], [1], [0, 0, 1, 1], [], []>} : vector<2x32xf32>, vector<32x96xf32>, vector<2x96xf32> -> vector<2x96xf32>
    %432 = vector.broadcast %429 : vector<1x96xf32> to vector<2x96xf32>
    %433 = arith.addf %431, %432 : vector<2x96xf32>
    %434 = vector.extract_strided_slice %430 {offsets = [0, 0], sizes = [2, 64], strides = [1, 1]} : vector<2x96xf32> to vector<2x64xf32>
    %435 = vector.extract_strided_slice %433 {offsets = [0, 0], sizes = [2, 64], strides = [1, 1]} : vector<2x96xf32> to vector<2x64xf32>
    %436 = arith.addf %434, %435 : vector<2x64xf32>
    %437 = arith.negf %436 : vector<2x64xf32>
    %438 = math.exp %437 : vector<2x64xf32>
    %cst_107 = arith.constant 1.000000e+00 : f32
    %439 = vector.broadcast %cst_107 : f32 to vector<2x64xf32>
    %440 = arith.addf %439, %438 : vector<2x64xf32>
    %441 = arith.divf %439, %440 : vector<2x64xf32>
    %442 = vector.extract_strided_slice %441 {offsets = [0, 0], sizes = [2, 32], strides = [1, 1]} : vector<2x64xf32> to vector<2x32xf32>
    %443 = vector.extract_strided_slice %441 {offsets = [0, 32], sizes = [2, 32], strides = [1, 1]} : vector<2x64xf32> to vector<2x32xf32>
    %444 = vector.extract_strided_slice %430 {offsets = [0, 64], sizes = [2, 32], strides = [1, 1]} : vector<2x96xf32> to vector<2x32xf32>
    %445 = vector.extract_strided_slice %433 {offsets = [0, 64], sizes = [2, 32], strides = [1, 1]} : vector<2x96xf32> to vector<2x32xf32>
    %446 = arith.mulf %442, %445 : vector<2x32xf32>
    %447 = arith.addf %444, %446 : vector<2x32xf32>
    %448 = math.tanh %447 : vector<2x32xf32>
    %cst_108 = arith.constant 1.000000e+00 : f32
    %449 = vector.broadcast %cst_108 : f32 to vector<2x32xf32>
    %450 = arith.subf %449, %443 : vector<2x32xf32>
    %451 = arith.mulf %450, %448 : vector<2x32xf32>
    %452 = arith.mulf %443, %427 : vector<2x32xf32>
    %453 = arith.addf %451, %452 : vector<2x32xf32>
    %454 = vector.extract_strided_slice %6 {offsets = [2, 0], sizes = [2, 96], strides = [1, 1]} : vector<14x96xf32> to vector<2x96xf32>
    %cst_109 = arith.constant dense<0.000000e+00> : vector<2x96xf32>
    %455 = tpu.matmul %453, %428, %cst_109 {dimension_numbers = #tpu.dot_dimension_numbers<[1], [0], [0], [1], [0, 0, 1, 1], [], []>} : vector<2x32xf32>, vector<32x96xf32>, vector<2x96xf32> -> vector<2x96xf32>
    %456 = vector.broadcast %429 : vector<1x96xf32> to vector<2x96xf32>
    %457 = arith.addf %455, %456 : vector<2x96xf32>
    %458 = vector.extract_strided_slice %454 {offsets = [0, 0], sizes = [2, 64], strides = [1, 1]} : vector<2x96xf32> to vector<2x64xf32>
    %459 = vector.extract_strided_slice %457 {offsets = [0, 0], sizes = [2, 64], strides = [1, 1]} : vector<2x96xf32> to vector<2x64xf32>
    %460 = arith.addf %458, %459 : vector<2x64xf32>
    %461 = arith.negf %460 : vector<2x64xf32>
    %462 = math.exp %461 : vector<2x64xf32>
    %cst_110 = arith.constant 1.000000e+00 : f32
    %463 = vector.broadcast %cst_110 : f32 to vector<2x64xf32>
    %464 = arith.addf %463, %462 : vector<2x64xf32>
    %465 = arith.divf %463, %464 : vector<2x64xf32>
    %466 = vector.extract_strided_slice %465 {offsets = [0, 0], sizes = [2, 32], strides = [1, 1]} : vector<2x64xf32> to vector<2x32xf32>
    %467 = vector.extract_strided_slice %465 {offsets = [0, 32], sizes = [2, 32], strides = [1, 1]} : vector<2x64xf32> to vector<2x32xf32>
    %468 = vector.extract_strided_slice %454 {offsets = [0, 64], sizes = [2, 32], strides = [1, 1]} : vector<2x96xf32> to vector<2x32xf32>
    %469 = vector.extract_strided_slice %457 {offsets = [0, 64], sizes = [2, 32], strides = [1, 1]} : vector<2x96xf32> to vector<2x32xf32>
    %470 = arith.mulf %466, %469 : vector<2x32xf32>
    %471 = arith.addf %468, %470 : vector<2x32xf32>
    %472 = math.tanh %471 : vector<2x32xf32>
    %cst_111 = arith.constant 1.000000e+00 : f32
    %473 = vector.broadcast %cst_111 : f32 to vector<2x32xf32>
    %474 = arith.subf %473, %467 : vector<2x32xf32>
    %475 = arith.mulf %474, %472 : vector<2x32xf32>
    %476 = arith.mulf %467, %453 : vector<2x32xf32>
    %477 = arith.addf %475, %476 : vector<2x32xf32>
    %478 = vector.extract_strided_slice %6 {offsets = [4, 0], sizes = [2, 96], strides = [1, 1]} : vector<14x96xf32> to vector<2x96xf32>
    %cst_112 = arith.constant dense<0.000000e+00> : vector<2x96xf32>
    %479 = tpu.matmul %477, %428, %cst_112 {dimension_numbers = #tpu.dot_dimension_numbers<[1], [0], [0], [1], [0, 0, 1, 1], [], []>} : vector<2x32xf32>, vector<32x96xf32>, vector<2x96xf32> -> vector<2x96xf32>
    %480 = vector.broadcast %429 : vector<1x96xf32> to vector<2x96xf32>
    %481 = arith.addf %479, %480 : vector<2x96xf32>
    %482 = vector.extract_strided_slice %478 {offsets = [0, 0], sizes = [2, 64], strides = [1, 1]} : vector<2x96xf32> to vector<2x64xf32>
    %483 = vector.extract_strided_slice %481 {offsets = [0, 0], sizes = [2, 64], strides = [1, 1]} : vector<2x96xf32> to vector<2x64xf32>
    %484 = arith.addf %482, %483 : vector<2x64xf32>
    %485 = arith.negf %484 : vector<2x64xf32>
    %486 = math.exp %485 : vector<2x64xf32>
    %cst_113 = arith.constant 1.000000e+00 : f32
    %487 = vector.broadcast %cst_113 : f32 to vector<2x64xf32>
    %488 = arith.addf %487, %486 : vector<2x64xf32>
    %489 = arith.divf %487, %488 : vector<2x64xf32>
    %490 = vector.extract_strided_slice %489 {offsets = [0, 0], sizes = [2, 32], strides = [1, 1]} : vector<2x64xf32> to vector<2x32xf32>
    %491 = vector.extract_strided_slice %489 {offsets = [0, 32], sizes = [2, 32], strides = [1, 1]} : vector<2x64xf32> to vector<2x32xf32>
    %492 = vector.extract_strided_slice %478 {offsets = [0, 64], sizes = [2, 32], strides = [1, 1]} : vector<2x96xf32> to vector<2x32xf32>
    %493 = vector.extract_strided_slice %481 {offsets = [0, 64], sizes = [2, 32], strides = [1, 1]} : vector<2x96xf32> to vector<2x32xf32>
    %494 = arith.mulf %490, %493 : vector<2x32xf32>
    %495 = arith.addf %492, %494 : vector<2x32xf32>
    %496 = math.tanh %495 : vector<2x32xf32>
    %cst_114 = arith.constant 1.000000e+00 : f32
    %497 = vector.broadcast %cst_114 : f32 to vector<2x32xf32>
    %498 = arith.subf %497, %491 : vector<2x32xf32>
    %499 = arith.mulf %498, %496 : vector<2x32xf32>
    %500 = arith.mulf %491, %477 : vector<2x32xf32>
    %501 = arith.addf %499, %500 : vector<2x32xf32>
    %502 = vector.extract_strided_slice %6 {offsets = [6, 0], sizes = [2, 96], strides = [1, 1]} : vector<14x96xf32> to vector<2x96xf32>
    %cst_115 = arith.constant dense<0.000000e+00> : vector<2x96xf32>
    %503 = tpu.matmul %501, %428, %cst_115 {dimension_numbers = #tpu.dot_dimension_numbers<[1], [0], [0], [1], [0, 0, 1, 1], [], []>} : vector<2x32xf32>, vector<32x96xf32>, vector<2x96xf32> -> vector<2x96xf32>
    %504 = vector.broadcast %429 : vector<1x96xf32> to vector<2x96xf32>
    %505 = arith.addf %503, %504 : vector<2x96xf32>
    %506 = vector.extract_strided_slice %502 {offsets = [0, 0], sizes = [2, 64], strides = [1, 1]} : vector<2x96xf32> to vector<2x64xf32>
    %507 = vector.extract_strided_slice %505 {offsets = [0, 0], sizes = [2, 64], strides = [1, 1]} : vector<2x96xf32> to vector<2x64xf32>
    %508 = arith.addf %506, %507 : vector<2x64xf32>
    %509 = arith.negf %508 : vector<2x64xf32>
    %510 = math.exp %509 : vector<2x64xf32>
    %cst_116 = arith.constant 1.000000e+00 : f32
    %511 = vector.broadcast %cst_116 : f32 to vector<2x64xf32>
    %512 = arith.addf %511, %510 : vector<2x64xf32>
    %513 = arith.divf %511, %512 : vector<2x64xf32>
    %514 = vector.extract_strided_slice %513 {offsets = [0, 0], sizes = [2, 32], strides = [1, 1]} : vector<2x64xf32> to vector<2x32xf32>
    %515 = vector.extract_strided_slice %513 {offsets = [0, 32], sizes = [2, 32], strides = [1, 1]} : vector<2x64xf32> to vector<2x32xf32>
    %516 = vector.extract_strided_slice %502 {offsets = [0, 64], sizes = [2, 32], strides = [1, 1]} : vector<2x96xf32> to vector<2x32xf32>
    %517 = vector.extract_strided_slice %505 {offsets = [0, 64], sizes = [2, 32], strides = [1, 1]} : vector<2x96xf32> to vector<2x32xf32>
    %518 = arith.mulf %514, %517 : vector<2x32xf32>
    %519 = arith.addf %516, %518 : vector<2x32xf32>
    %520 = math.tanh %519 : vector<2x32xf32>
    %cst_117 = arith.constant 1.000000e+00 : f32
    %521 = vector.broadcast %cst_117 : f32 to vector<2x32xf32>
    %522 = arith.subf %521, %515 : vector<2x32xf32>
    %523 = arith.mulf %522, %520 : vector<2x32xf32>
    %524 = arith.mulf %515, %501 : vector<2x32xf32>
    %525 = arith.addf %523, %524 : vector<2x32xf32>
    %526 = vector.extract_strided_slice %6 {offsets = [8, 0], sizes = [2, 96], strides = [1, 1]} : vector<14x96xf32> to vector<2x96xf32>
    %cst_118 = arith.constant dense<0.000000e+00> : vector<2x96xf32>
    %527 = tpu.matmul %525, %428, %cst_118 {dimension_numbers = #tpu.dot_dimension_numbers<[1], [0], [0], [1], [0, 0, 1, 1], [], []>} : vector<2x32xf32>, vector<32x96xf32>, vector<2x96xf32> -> vector<2x96xf32>
    %528 = vector.broadcast %429 : vector<1x96xf32> to vector<2x96xf32>
    %529 = arith.addf %527, %528 : vector<2x96xf32>
    %530 = vector.extract_strided_slice %526 {offsets = [0, 0], sizes = [2, 64], strides = [1, 1]} : vector<2x96xf32> to vector<2x64xf32>
    %531 = vector.extract_strided_slice %529 {offsets = [0, 0], sizes = [2, 64], strides = [1, 1]} : vector<2x96xf32> to vector<2x64xf32>
    %532 = arith.addf %530, %531 : vector<2x64xf32>
    %533 = arith.negf %532 : vector<2x64xf32>
    %534 = math.exp %533 : vector<2x64xf32>
    %cst_119 = arith.constant 1.000000e+00 : f32
    %535 = vector.broadcast %cst_119 : f32 to vector<2x64xf32>
    %536 = arith.addf %535, %534 : vector<2x64xf32>
    %537 = arith.divf %535, %536 : vector<2x64xf32>
    %538 = vector.extract_strided_slice %537 {offsets = [0, 0], sizes = [2, 32], strides = [1, 1]} : vector<2x64xf32> to vector<2x32xf32>
    %539 = vector.extract_strided_slice %537 {offsets = [0, 32], sizes = [2, 32], strides = [1, 1]} : vector<2x64xf32> to vector<2x32xf32>
    %540 = vector.extract_strided_slice %526 {offsets = [0, 64], sizes = [2, 32], strides = [1, 1]} : vector<2x96xf32> to vector<2x32xf32>
    %541 = vector.extract_strided_slice %529 {offsets = [0, 64], sizes = [2, 32], strides = [1, 1]} : vector<2x96xf32> to vector<2x32xf32>
    %542 = arith.mulf %538, %541 : vector<2x32xf32>
    %543 = arith.addf %540, %542 : vector<2x32xf32>
    %544 = math.tanh %543 : vector<2x32xf32>
    %cst_120 = arith.constant 1.000000e+00 : f32
    %545 = vector.broadcast %cst_120 : f32 to vector<2x32xf32>
    %546 = arith.subf %545, %539 : vector<2x32xf32>
    %547 = arith.mulf %546, %544 : vector<2x32xf32>
    %548 = arith.mulf %539, %525 : vector<2x32xf32>
    %549 = arith.addf %547, %548 : vector<2x32xf32>
    %550 = vector.extract_strided_slice %6 {offsets = [10, 0], sizes = [2, 96], strides = [1, 1]} : vector<14x96xf32> to vector<2x96xf32>
    %cst_121 = arith.constant dense<0.000000e+00> : vector<2x96xf32>
    %551 = tpu.matmul %549, %428, %cst_121 {dimension_numbers = #tpu.dot_dimension_numbers<[1], [0], [0], [1], [0, 0, 1, 1], [], []>} : vector<2x32xf32>, vector<32x96xf32>, vector<2x96xf32> -> vector<2x96xf32>
    %552 = vector.broadcast %429 : vector<1x96xf32> to vector<2x96xf32>
    %553 = arith.addf %551, %552 : vector<2x96xf32>
    %554 = vector.extract_strided_slice %550 {offsets = [0, 0], sizes = [2, 64], strides = [1, 1]} : vector<2x96xf32> to vector<2x64xf32>
    %555 = vector.extract_strided_slice %553 {offsets = [0, 0], sizes = [2, 64], strides = [1, 1]} : vector<2x96xf32> to vector<2x64xf32>
    %556 = arith.addf %554, %555 : vector<2x64xf32>
    %557 = arith.negf %556 : vector<2x64xf32>
    %558 = math.exp %557 : vector<2x64xf32>
    %cst_122 = arith.constant 1.000000e+00 : f32
    %559 = vector.broadcast %cst_122 : f32 to vector<2x64xf32>
    %560 = arith.addf %559, %558 : vector<2x64xf32>
    %561 = arith.divf %559, %560 : vector<2x64xf32>
    %562 = vector.extract_strided_slice %561 {offsets = [0, 0], sizes = [2, 32], strides = [1, 1]} : vector<2x64xf32> to vector<2x32xf32>
    %563 = vector.extract_strided_slice %561 {offsets = [0, 32], sizes = [2, 32], strides = [1, 1]} : vector<2x64xf32> to vector<2x32xf32>
    %564 = vector.extract_strided_slice %550 {offsets = [0, 64], sizes = [2, 32], strides = [1, 1]} : vector<2x96xf32> to vector<2x32xf32>
    %565 = vector.extract_strided_slice %553 {offsets = [0, 64], sizes = [2, 32], strides = [1, 1]} : vector<2x96xf32> to vector<2x32xf32>
    %566 = arith.mulf %562, %565 : vector<2x32xf32>
    %567 = arith.addf %564, %566 : vector<2x32xf32>
    %568 = math.tanh %567 : vector<2x32xf32>
    %cst_123 = arith.constant 1.000000e+00 : f32
    %569 = vector.broadcast %cst_123 : f32 to vector<2x32xf32>
    %570 = arith.subf %569, %563 : vector<2x32xf32>
    %571 = arith.mulf %570, %568 : vector<2x32xf32>
    %572 = arith.mulf %563, %549 : vector<2x32xf32>
    %573 = arith.addf %571, %572 : vector<2x32xf32>
    %574 = vector.extract_strided_slice %6 {offsets = [12, 0], sizes = [2, 96], strides = [1, 1]} : vector<14x96xf32> to vector<2x96xf32>
    %cst_124 = arith.constant dense<0.000000e+00> : vector<2x96xf32>
    %575 = tpu.matmul %573, %428, %cst_124 {dimension_numbers = #tpu.dot_dimension_numbers<[1], [0], [0], [1], [0, 0, 1, 1], [], []>} : vector<2x32xf32>, vector<32x96xf32>, vector<2x96xf32> -> vector<2x96xf32>
    %576 = vector.broadcast %429 : vector<1x96xf32> to vector<2x96xf32>
    %577 = arith.addf %575, %576 : vector<2x96xf32>
    %578 = vector.extract_strided_slice %574 {offsets = [0, 0], sizes = [2, 64], strides = [1, 1]} : vector<2x96xf32> to vector<2x64xf32>
    %579 = vector.extract_strided_slice %577 {offsets = [0, 0], sizes = [2, 64], strides = [1, 1]} : vector<2x96xf32> to vector<2x64xf32>
    %580 = arith.addf %578, %579 : vector<2x64xf32>
    %581 = arith.negf %580 : vector<2x64xf32>
    %582 = math.exp %581 : vector<2x64xf32>
    %cst_125 = arith.constant 1.000000e+00 : f32
    %583 = vector.broadcast %cst_125 : f32 to vector<2x64xf32>
    %584 = arith.addf %583, %582 : vector<2x64xf32>
    %585 = arith.divf %583, %584 : vector<2x64xf32>
    %586 = vector.extract_strided_slice %585 {offsets = [0, 0], sizes = [2, 32], strides = [1, 1]} : vector<2x64xf32> to vector<2x32xf32>
    %587 = vector.extract_strided_slice %585 {offsets = [0, 32], sizes = [2, 32], strides = [1, 1]} : vector<2x64xf32> to vector<2x32xf32>
    %588 = vector.extract_strided_slice %574 {offsets = [0, 64], sizes = [2, 32], strides = [1, 1]} : vector<2x96xf32> to vector<2x32xf32>
    %589 = vector.extract_strided_slice %577 {offsets = [0, 64], sizes = [2, 32], strides = [1, 1]} : vector<2x96xf32> to vector<2x32xf32>
    %590 = arith.mulf %586, %589 : vector<2x32xf32>
    %591 = arith.addf %588, %590 : vector<2x32xf32>
    %592 = math.tanh %591 : vector<2x32xf32>
    %cst_126 = arith.constant 1.000000e+00 : f32
    %593 = vector.broadcast %cst_126 : f32 to vector<2x32xf32>
    %594 = arith.subf %593, %587 : vector<2x32xf32>
    %595 = arith.mulf %594, %592 : vector<2x32xf32>
    %596 = arith.mulf %587, %573 : vector<2x32xf32>
    %597 = arith.addf %595, %596 : vector<2x32xf32>
    %598 = tpu.concatenate %453, %477, %501, %525, %549, %573, %597 in 0 : vector<2x32xf32>, vector<2x32xf32>, vector<2x32xf32>, vector<2x32xf32>, vector<2x32xf32>, vector<2x32xf32>, vector<2x32xf32> -> vector<14x32xf32>
    %c0_127 = arith.constant 0 : index
    %c0_128 = arith.constant 0 : index
    %599 = vector.load %arg10[%c0_127, %c0_128] : memref<32x96xf32, #tpu.memory_space<vmem>>, vector<32x96xf32>
    %cst_129 = arith.constant dense<0.000000e+00> : vector<14x96xf32>
    %600 = tpu.matmul %598, %599, %cst_129 {dimension_numbers = #tpu.dot_dimension_numbers<[1], [0], [0], [1], [0, 0, 1, 1], [], []>} : vector<14x32xf32>, vector<32x96xf32>, vector<14x96xf32> -> vector<14x96xf32>
    %c0_130 = arith.constant 0 : index
    %c0_131 = arith.constant 0 : index
    %601 = vector.load %arg12[%c0_130, %c0_131] : memref<1x96xf32, #tpu.memory_space<vmem>>, vector<1x96xf32>
    %602 = vector.broadcast %601 : vector<1x96xf32> to vector<14x96xf32>
    %603 = arith.addf %600, %602 : vector<14x96xf32>
    %c0_132 = arith.constant 0 : index
    %c0_133 = arith.constant 0 : index
    %604 = vector.load %arg11[%c0_132, %c0_133] : memref<32x96xf32, #tpu.memory_space<vmem>>, vector<32x96xf32>
    %c0_134 = arith.constant 0 : index
    %c0_135 = arith.constant 0 : index
    %605 = vector.load %arg13[%c0_134, %c0_135] : memref<1x96xf32, #tpu.memory_space<vmem>>, vector<1x96xf32>
    %606 = vector.extract_strided_slice %603 {offsets = [0, 0], sizes = [2, 96], strides = [1, 1]} : vector<14x96xf32> to vector<2x96xf32>
    %cst_136 = arith.constant dense<0.000000e+00> : vector<2x96xf32>
    %607 = tpu.matmul %597, %604, %cst_136 {dimension_numbers = #tpu.dot_dimension_numbers<[1], [0], [0], [1], [0, 0, 1, 1], [], []>} : vector<2x32xf32>, vector<32x96xf32>, vector<2x96xf32> -> vector<2x96xf32>
    %608 = vector.broadcast %605 : vector<1x96xf32> to vector<2x96xf32>
    %609 = arith.addf %607, %608 : vector<2x96xf32>
    %610 = vector.extract_strided_slice %606 {offsets = [0, 0], sizes = [2, 64], strides = [1, 1]} : vector<2x96xf32> to vector<2x64xf32>
    %611 = vector.extract_strided_slice %609 {offsets = [0, 0], sizes = [2, 64], strides = [1, 1]} : vector<2x96xf32> to vector<2x64xf32>
    %612 = arith.addf %610, %611 : vector<2x64xf32>
    %613 = arith.negf %612 : vector<2x64xf32>
    %614 = math.exp %613 : vector<2x64xf32>
    %cst_137 = arith.constant 1.000000e+00 : f32
    %615 = vector.broadcast %cst_137 : f32 to vector<2x64xf32>
    %616 = arith.addf %615, %614 : vector<2x64xf32>
    %617 = arith.divf %615, %616 : vector<2x64xf32>
    %618 = vector.extract_strided_slice %617 {offsets = [0, 0], sizes = [2, 32], strides = [1, 1]} : vector<2x64xf32> to vector<2x32xf32>
    %619 = vector.extract_strided_slice %617 {offsets = [0, 32], sizes = [2, 32], strides = [1, 1]} : vector<2x64xf32> to vector<2x32xf32>
    %620 = vector.extract_strided_slice %606 {offsets = [0, 64], sizes = [2, 32], strides = [1, 1]} : vector<2x96xf32> to vector<2x32xf32>
    %621 = vector.extract_strided_slice %609 {offsets = [0, 64], sizes = [2, 32], strides = [1, 1]} : vector<2x96xf32> to vector<2x32xf32>
    %622 = arith.mulf %618, %621 : vector<2x32xf32>
    %623 = arith.addf %620, %622 : vector<2x32xf32>
    %624 = math.tanh %623 : vector<2x32xf32>
    %cst_138 = arith.constant 1.000000e+00 : f32
    %625 = vector.broadcast %cst_138 : f32 to vector<2x32xf32>
    %626 = arith.subf %625, %619 : vector<2x32xf32>
    %627 = arith.mulf %626, %624 : vector<2x32xf32>
    %628 = arith.mulf %619, %597 : vector<2x32xf32>
    %629 = arith.addf %627, %628 : vector<2x32xf32>
    %630 = vector.extract_strided_slice %603 {offsets = [2, 0], sizes = [2, 96], strides = [1, 1]} : vector<14x96xf32> to vector<2x96xf32>
    %cst_139 = arith.constant dense<0.000000e+00> : vector<2x96xf32>
    %631 = tpu.matmul %629, %604, %cst_139 {dimension_numbers = #tpu.dot_dimension_numbers<[1], [0], [0], [1], [0, 0, 1, 1], [], []>} : vector<2x32xf32>, vector<32x96xf32>, vector<2x96xf32> -> vector<2x96xf32>
    %632 = vector.broadcast %605 : vector<1x96xf32> to vector<2x96xf32>
    %633 = arith.addf %631, %632 : vector<2x96xf32>
    %634 = vector.extract_strided_slice %630 {offsets = [0, 0], sizes = [2, 64], strides = [1, 1]} : vector<2x96xf32> to vector<2x64xf32>
    %635 = vector.extract_strided_slice %633 {offsets = [0, 0], sizes = [2, 64], strides = [1, 1]} : vector<2x96xf32> to vector<2x64xf32>
    %636 = arith.addf %634, %635 : vector<2x64xf32>
    %637 = arith.negf %636 : vector<2x64xf32>
    %638 = math.exp %637 : vector<2x64xf32>
    %cst_140 = arith.constant 1.000000e+00 : f32
    %639 = vector.broadcast %cst_140 : f32 to vector<2x64xf32>
    %640 = arith.addf %639, %638 : vector<2x64xf32>
    %641 = arith.divf %639, %640 : vector<2x64xf32>
    %642 = vector.extract_strided_slice %641 {offsets = [0, 0], sizes = [2, 32], strides = [1, 1]} : vector<2x64xf32> to vector<2x32xf32>
    %643 = vector.extract_strided_slice %641 {offsets = [0, 32], sizes = [2, 32], strides = [1, 1]} : vector<2x64xf32> to vector<2x32xf32>
    %644 = vector.extract_strided_slice %630 {offsets = [0, 64], sizes = [2, 32], strides = [1, 1]} : vector<2x96xf32> to vector<2x32xf32>
    %645 = vector.extract_strided_slice %633 {offsets = [0, 64], sizes = [2, 32], strides = [1, 1]} : vector<2x96xf32> to vector<2x32xf32>
    %646 = arith.mulf %642, %645 : vector<2x32xf32>
    %647 = arith.addf %644, %646 : vector<2x32xf32>
    %648 = math.tanh %647 : vector<2x32xf32>
    %cst_141 = arith.constant 1.000000e+00 : f32
    %649 = vector.broadcast %cst_141 : f32 to vector<2x32xf32>
    %650 = arith.subf %649, %643 : vector<2x32xf32>
    %651 = arith.mulf %650, %648 : vector<2x32xf32>
    %652 = arith.mulf %643, %629 : vector<2x32xf32>
    %653 = arith.addf %651, %652 : vector<2x32xf32>
    %654 = vector.extract_strided_slice %603 {offsets = [4, 0], sizes = [2, 96], strides = [1, 1]} : vector<14x96xf32> to vector<2x96xf32>
    %cst_142 = arith.constant dense<0.000000e+00> : vector<2x96xf32>
    %655 = tpu.matmul %653, %604, %cst_142 {dimension_numbers = #tpu.dot_dimension_numbers<[1], [0], [0], [1], [0, 0, 1, 1], [], []>} : vector<2x32xf32>, vector<32x96xf32>, vector<2x96xf32> -> vector<2x96xf32>
    %656 = vector.broadcast %605 : vector<1x96xf32> to vector<2x96xf32>
    %657 = arith.addf %655, %656 : vector<2x96xf32>
    %658 = vector.extract_strided_slice %654 {offsets = [0, 0], sizes = [2, 64], strides = [1, 1]} : vector<2x96xf32> to vector<2x64xf32>
    %659 = vector.extract_strided_slice %657 {offsets = [0, 0], sizes = [2, 64], strides = [1, 1]} : vector<2x96xf32> to vector<2x64xf32>
    %660 = arith.addf %658, %659 : vector<2x64xf32>
    %661 = arith.negf %660 : vector<2x64xf32>
    %662 = math.exp %661 : vector<2x64xf32>
    %cst_143 = arith.constant 1.000000e+00 : f32
    %663 = vector.broadcast %cst_143 : f32 to vector<2x64xf32>
    %664 = arith.addf %663, %662 : vector<2x64xf32>
    %665 = arith.divf %663, %664 : vector<2x64xf32>
    %666 = vector.extract_strided_slice %665 {offsets = [0, 0], sizes = [2, 32], strides = [1, 1]} : vector<2x64xf32> to vector<2x32xf32>
    %667 = vector.extract_strided_slice %665 {offsets = [0, 32], sizes = [2, 32], strides = [1, 1]} : vector<2x64xf32> to vector<2x32xf32>
    %668 = vector.extract_strided_slice %654 {offsets = [0, 64], sizes = [2, 32], strides = [1, 1]} : vector<2x96xf32> to vector<2x32xf32>
    %669 = vector.extract_strided_slice %657 {offsets = [0, 64], sizes = [2, 32], strides = [1, 1]} : vector<2x96xf32> to vector<2x32xf32>
    %670 = arith.mulf %666, %669 : vector<2x32xf32>
    %671 = arith.addf %668, %670 : vector<2x32xf32>
    %672 = math.tanh %671 : vector<2x32xf32>
    %cst_144 = arith.constant 1.000000e+00 : f32
    %673 = vector.broadcast %cst_144 : f32 to vector<2x32xf32>
    %674 = arith.subf %673, %667 : vector<2x32xf32>
    %675 = arith.mulf %674, %672 : vector<2x32xf32>
    %676 = arith.mulf %667, %653 : vector<2x32xf32>
    %677 = arith.addf %675, %676 : vector<2x32xf32>
    %678 = vector.extract_strided_slice %603 {offsets = [6, 0], sizes = [2, 96], strides = [1, 1]} : vector<14x96xf32> to vector<2x96xf32>
    %cst_145 = arith.constant dense<0.000000e+00> : vector<2x96xf32>
    %679 = tpu.matmul %677, %604, %cst_145 {dimension_numbers = #tpu.dot_dimension_numbers<[1], [0], [0], [1], [0, 0, 1, 1], [], []>} : vector<2x32xf32>, vector<32x96xf32>, vector<2x96xf32> -> vector<2x96xf32>
    %680 = vector.broadcast %605 : vector<1x96xf32> to vector<2x96xf32>
    %681 = arith.addf %679, %680 : vector<2x96xf32>
    %682 = vector.extract_strided_slice %678 {offsets = [0, 0], sizes = [2, 64], strides = [1, 1]} : vector<2x96xf32> to vector<2x64xf32>
    %683 = vector.extract_strided_slice %681 {offsets = [0, 0], sizes = [2, 64], strides = [1, 1]} : vector<2x96xf32> to vector<2x64xf32>
    %684 = arith.addf %682, %683 : vector<2x64xf32>
    %685 = arith.negf %684 : vector<2x64xf32>
    %686 = math.exp %685 : vector<2x64xf32>
    %cst_146 = arith.constant 1.000000e+00 : f32
    %687 = vector.broadcast %cst_146 : f32 to vector<2x64xf32>
    %688 = arith.addf %687, %686 : vector<2x64xf32>
    %689 = arith.divf %687, %688 : vector<2x64xf32>
    %690 = vector.extract_strided_slice %689 {offsets = [0, 0], sizes = [2, 32], strides = [1, 1]} : vector<2x64xf32> to vector<2x32xf32>
    %691 = vector.extract_strided_slice %689 {offsets = [0, 32], sizes = [2, 32], strides = [1, 1]} : vector<2x64xf32> to vector<2x32xf32>
    %692 = vector.extract_strided_slice %678 {offsets = [0, 64], sizes = [2, 32], strides = [1, 1]} : vector<2x96xf32> to vector<2x32xf32>
    %693 = vector.extract_strided_slice %681 {offsets = [0, 64], sizes = [2, 32], strides = [1, 1]} : vector<2x96xf32> to vector<2x32xf32>
    %694 = arith.mulf %690, %693 : vector<2x32xf32>
    %695 = arith.addf %692, %694 : vector<2x32xf32>
    %696 = math.tanh %695 : vector<2x32xf32>
    %cst_147 = arith.constant 1.000000e+00 : f32
    %697 = vector.broadcast %cst_147 : f32 to vector<2x32xf32>
    %698 = arith.subf %697, %691 : vector<2x32xf32>
    %699 = arith.mulf %698, %696 : vector<2x32xf32>
    %700 = arith.mulf %691, %677 : vector<2x32xf32>
    %701 = arith.addf %699, %700 : vector<2x32xf32>
    %702 = vector.extract_strided_slice %603 {offsets = [8, 0], sizes = [2, 96], strides = [1, 1]} : vector<14x96xf32> to vector<2x96xf32>
    %cst_148 = arith.constant dense<0.000000e+00> : vector<2x96xf32>
    %703 = tpu.matmul %701, %604, %cst_148 {dimension_numbers = #tpu.dot_dimension_numbers<[1], [0], [0], [1], [0, 0, 1, 1], [], []>} : vector<2x32xf32>, vector<32x96xf32>, vector<2x96xf32> -> vector<2x96xf32>
    %704 = vector.broadcast %605 : vector<1x96xf32> to vector<2x96xf32>
    %705 = arith.addf %703, %704 : vector<2x96xf32>
    %706 = vector.extract_strided_slice %702 {offsets = [0, 0], sizes = [2, 64], strides = [1, 1]} : vector<2x96xf32> to vector<2x64xf32>
    %707 = vector.extract_strided_slice %705 {offsets = [0, 0], sizes = [2, 64], strides = [1, 1]} : vector<2x96xf32> to vector<2x64xf32>
    %708 = arith.addf %706, %707 : vector<2x64xf32>
    %709 = arith.negf %708 : vector<2x64xf32>
    %710 = math.exp %709 : vector<2x64xf32>
    %cst_149 = arith.constant 1.000000e+00 : f32
    %711 = vector.broadcast %cst_149 : f32 to vector<2x64xf32>
    %712 = arith.addf %711, %710 : vector<2x64xf32>
    %713 = arith.divf %711, %712 : vector<2x64xf32>
    %714 = vector.extract_strided_slice %713 {offsets = [0, 0], sizes = [2, 32], strides = [1, 1]} : vector<2x64xf32> to vector<2x32xf32>
    %715 = vector.extract_strided_slice %713 {offsets = [0, 32], sizes = [2, 32], strides = [1, 1]} : vector<2x64xf32> to vector<2x32xf32>
    %716 = vector.extract_strided_slice %702 {offsets = [0, 64], sizes = [2, 32], strides = [1, 1]} : vector<2x96xf32> to vector<2x32xf32>
    %717 = vector.extract_strided_slice %705 {offsets = [0, 64], sizes = [2, 32], strides = [1, 1]} : vector<2x96xf32> to vector<2x32xf32>
    %718 = arith.mulf %714, %717 : vector<2x32xf32>
    %719 = arith.addf %716, %718 : vector<2x32xf32>
    %720 = math.tanh %719 : vector<2x32xf32>
    %cst_150 = arith.constant 1.000000e+00 : f32
    %721 = vector.broadcast %cst_150 : f32 to vector<2x32xf32>
    %722 = arith.subf %721, %715 : vector<2x32xf32>
    %723 = arith.mulf %722, %720 : vector<2x32xf32>
    %724 = arith.mulf %715, %701 : vector<2x32xf32>
    %725 = arith.addf %723, %724 : vector<2x32xf32>
    %726 = vector.extract_strided_slice %603 {offsets = [10, 0], sizes = [2, 96], strides = [1, 1]} : vector<14x96xf32> to vector<2x96xf32>
    %cst_151 = arith.constant dense<0.000000e+00> : vector<2x96xf32>
    %727 = tpu.matmul %725, %604, %cst_151 {dimension_numbers = #tpu.dot_dimension_numbers<[1], [0], [0], [1], [0, 0, 1, 1], [], []>} : vector<2x32xf32>, vector<32x96xf32>, vector<2x96xf32> -> vector<2x96xf32>
    %728 = vector.broadcast %605 : vector<1x96xf32> to vector<2x96xf32>
    %729 = arith.addf %727, %728 : vector<2x96xf32>
    %730 = vector.extract_strided_slice %726 {offsets = [0, 0], sizes = [2, 64], strides = [1, 1]} : vector<2x96xf32> to vector<2x64xf32>
    %731 = vector.extract_strided_slice %729 {offsets = [0, 0], sizes = [2, 64], strides = [1, 1]} : vector<2x96xf32> to vector<2x64xf32>
    %732 = arith.addf %730, %731 : vector<2x64xf32>
    %733 = arith.negf %732 : vector<2x64xf32>
    %734 = math.exp %733 : vector<2x64xf32>
    %cst_152 = arith.constant 1.000000e+00 : f32
    %735 = vector.broadcast %cst_152 : f32 to vector<2x64xf32>
    %736 = arith.addf %735, %734 : vector<2x64xf32>
    %737 = arith.divf %735, %736 : vector<2x64xf32>
    %738 = vector.extract_strided_slice %737 {offsets = [0, 0], sizes = [2, 32], strides = [1, 1]} : vector<2x64xf32> to vector<2x32xf32>
    %739 = vector.extract_strided_slice %737 {offsets = [0, 32], sizes = [2, 32], strides = [1, 1]} : vector<2x64xf32> to vector<2x32xf32>
    %740 = vector.extract_strided_slice %726 {offsets = [0, 64], sizes = [2, 32], strides = [1, 1]} : vector<2x96xf32> to vector<2x32xf32>
    %741 = vector.extract_strided_slice %729 {offsets = [0, 64], sizes = [2, 32], strides = [1, 1]} : vector<2x96xf32> to vector<2x32xf32>
    %742 = arith.mulf %738, %741 : vector<2x32xf32>
    %743 = arith.addf %740, %742 : vector<2x32xf32>
    %744 = math.tanh %743 : vector<2x32xf32>
    %cst_153 = arith.constant 1.000000e+00 : f32
    %745 = vector.broadcast %cst_153 : f32 to vector<2x32xf32>
    %746 = arith.subf %745, %739 : vector<2x32xf32>
    %747 = arith.mulf %746, %744 : vector<2x32xf32>
    %748 = arith.mulf %739, %725 : vector<2x32xf32>
    %749 = arith.addf %747, %748 : vector<2x32xf32>
    %750 = vector.extract_strided_slice %603 {offsets = [12, 0], sizes = [2, 96], strides = [1, 1]} : vector<14x96xf32> to vector<2x96xf32>
    %cst_154 = arith.constant dense<0.000000e+00> : vector<2x96xf32>
    %751 = tpu.matmul %749, %604, %cst_154 {dimension_numbers = #tpu.dot_dimension_numbers<[1], [0], [0], [1], [0, 0, 1, 1], [], []>} : vector<2x32xf32>, vector<32x96xf32>, vector<2x96xf32> -> vector<2x96xf32>
    %752 = vector.broadcast %605 : vector<1x96xf32> to vector<2x96xf32>
    %753 = arith.addf %751, %752 : vector<2x96xf32>
    %754 = vector.extract_strided_slice %750 {offsets = [0, 0], sizes = [2, 64], strides = [1, 1]} : vector<2x96xf32> to vector<2x64xf32>
    %755 = vector.extract_strided_slice %753 {offsets = [0, 0], sizes = [2, 64], strides = [1, 1]} : vector<2x96xf32> to vector<2x64xf32>
    %756 = arith.addf %754, %755 : vector<2x64xf32>
    %757 = arith.negf %756 : vector<2x64xf32>
    %758 = math.exp %757 : vector<2x64xf32>
    %cst_155 = arith.constant 1.000000e+00 : f32
    %759 = vector.broadcast %cst_155 : f32 to vector<2x64xf32>
    %760 = arith.addf %759, %758 : vector<2x64xf32>
    %761 = arith.divf %759, %760 : vector<2x64xf32>
    %762 = vector.extract_strided_slice %761 {offsets = [0, 0], sizes = [2, 32], strides = [1, 1]} : vector<2x64xf32> to vector<2x32xf32>
    %763 = vector.extract_strided_slice %761 {offsets = [0, 32], sizes = [2, 32], strides = [1, 1]} : vector<2x64xf32> to vector<2x32xf32>
    %764 = vector.extract_strided_slice %750 {offsets = [0, 64], sizes = [2, 32], strides = [1, 1]} : vector<2x96xf32> to vector<2x32xf32>
    %765 = vector.extract_strided_slice %753 {offsets = [0, 64], sizes = [2, 32], strides = [1, 1]} : vector<2x96xf32> to vector<2x32xf32>
    %766 = arith.mulf %762, %765 : vector<2x32xf32>
    %767 = arith.addf %764, %766 : vector<2x32xf32>
    %768 = math.tanh %767 : vector<2x32xf32>
    %cst_156 = arith.constant 1.000000e+00 : f32
    %769 = vector.broadcast %cst_156 : f32 to vector<2x32xf32>
    %770 = arith.subf %769, %763 : vector<2x32xf32>
    %771 = arith.mulf %770, %768 : vector<2x32xf32>
    %772 = arith.mulf %763, %749 : vector<2x32xf32>
    %773 = arith.addf %771, %772 : vector<2x32xf32>
    %c0_157 = arith.constant 0 : index
    %c0_158 = arith.constant 0 : index
    %774 = vector.load %arg30[%c0_157, %c0_158] : memref<32x3xf32, #tpu.memory_space<vmem>>, vector<32x3xf32>
    %cst_159 = arith.constant dense<0.000000e+00> : vector<2x3xf32>
    %775 = tpu.matmul %773, %774, %cst_159 {dimension_numbers = #tpu.dot_dimension_numbers<[1], [0], [0], [1], [0, 0, 1, 1], [], []>} : vector<2x32xf32>, vector<32x3xf32>, vector<2x3xf32> -> vector<2x3xf32>
    %c0_160 = arith.constant 0 : index
    %c0_161 = arith.constant 0 : index
    %776 = vector.load %arg31[%c0_160, %c0_161] : memref<1x3xf32, #tpu.memory_space<vmem>>, vector<1x3xf32>
    %777 = vector.broadcast %776 : vector<1x3xf32> to vector<2x3xf32>
    %778 = arith.addf %775, %777 : vector<2x3xf32>
    %779 = vector.extract_strided_slice %778 {offsets = [0, 0], sizes = [2, 1], strides = [1, 1]} : vector<2x3xf32> to vector<2x1xf32>
    %c1 = arith.constant 1 : index
    %c0_162 = arith.constant 0 : index
    %780 = vector.load %arg14[%c1, %c0_162] : memref<6x96xf32, #tpu.memory_space<vmem>>, vector<1x96xf32>
    %781 = vector.broadcast %779 : vector<2x1xf32> to vector<2x96xf32>
    %782 = vector.broadcast %780 : vector<1x96xf32> to vector<2x96xf32>
    %783 = arith.mulf %781, %782 : vector<2x96xf32>
    %c0_163 = arith.constant 0 : index
    %c0_164 = arith.constant 0 : index
    %784 = vector.load %arg14[%c0_163, %c0_164] : memref<6x96xf32, #tpu.memory_space<vmem>>, vector<6x96xf32>
    %cst_165 = arith.constant dense<0.000000e+00> : vector<14x96xf32>
    %785 = tpu.matmul %0, %784, %cst_165 {dimension_numbers = #tpu.dot_dimension_numbers<[1], [0], [0], [1], [0, 0, 1, 1], [], []>} : vector<14x6xf32>, vector<6x96xf32>, vector<14x96xf32> -> vector<14x96xf32>
    %c0_166 = arith.constant 0 : index
    %c0_167 = arith.constant 0 : index
    %786 = vector.load %arg16[%c0_166, %c0_167] : memref<1x96xf32, #tpu.memory_space<vmem>>, vector<1x96xf32>
    %787 = vector.broadcast %786 : vector<1x96xf32> to vector<14x96xf32>
    %788 = arith.addf %785, %787 : vector<14x96xf32>
    %c0_168 = arith.constant 0 : index
    %c0_169 = arith.constant 0 : index
    %789 = vector.load %arg15[%c0_168, %c0_169] : memref<32x96xf32, #tpu.memory_space<vmem>>, vector<32x96xf32>
    %c0_170 = arith.constant 0 : index
    %c0_171 = arith.constant 0 : index
    %790 = vector.load %arg17[%c0_170, %c0_171] : memref<1x96xf32, #tpu.memory_space<vmem>>, vector<1x96xf32>
    %791 = vector.extract_strided_slice %788 {offsets = [0, 0], sizes = [2, 96], strides = [1, 1]} : vector<14x96xf32> to vector<2x96xf32>
    %792 = arith.subf %791, %783 : vector<2x96xf32>
    %cst_172 = arith.constant dense<0.000000e+00> : vector<2x96xf32>
    %793 = tpu.matmul %1, %789, %cst_172 {dimension_numbers = #tpu.dot_dimension_numbers<[1], [0], [0], [1], [0, 0, 1, 1], [], []>} : vector<2x32xf32>, vector<32x96xf32>, vector<2x96xf32> -> vector<2x96xf32>
    %794 = vector.broadcast %790 : vector<1x96xf32> to vector<2x96xf32>
    %795 = arith.addf %793, %794 : vector<2x96xf32>
    %796 = vector.extract_strided_slice %792 {offsets = [0, 0], sizes = [2, 64], strides = [1, 1]} : vector<2x96xf32> to vector<2x64xf32>
    %797 = vector.extract_strided_slice %795 {offsets = [0, 0], sizes = [2, 64], strides = [1, 1]} : vector<2x96xf32> to vector<2x64xf32>
    %798 = arith.addf %796, %797 : vector<2x64xf32>
    %799 = arith.negf %798 : vector<2x64xf32>
    %800 = math.exp %799 : vector<2x64xf32>
    %cst_173 = arith.constant 1.000000e+00 : f32
    %801 = vector.broadcast %cst_173 : f32 to vector<2x64xf32>
    %802 = arith.addf %801, %800 : vector<2x64xf32>
    %803 = arith.divf %801, %802 : vector<2x64xf32>
    %804 = vector.extract_strided_slice %803 {offsets = [0, 0], sizes = [2, 32], strides = [1, 1]} : vector<2x64xf32> to vector<2x32xf32>
    %805 = vector.extract_strided_slice %803 {offsets = [0, 32], sizes = [2, 32], strides = [1, 1]} : vector<2x64xf32> to vector<2x32xf32>
    %806 = vector.extract_strided_slice %792 {offsets = [0, 64], sizes = [2, 32], strides = [1, 1]} : vector<2x96xf32> to vector<2x32xf32>
    %807 = vector.extract_strided_slice %795 {offsets = [0, 64], sizes = [2, 32], strides = [1, 1]} : vector<2x96xf32> to vector<2x32xf32>
    %808 = arith.mulf %804, %807 : vector<2x32xf32>
    %809 = arith.addf %806, %808 : vector<2x32xf32>
    %810 = math.tanh %809 : vector<2x32xf32>
    %cst_174 = arith.constant 1.000000e+00 : f32
    %811 = vector.broadcast %cst_174 : f32 to vector<2x32xf32>
    %812 = arith.subf %811, %805 : vector<2x32xf32>
    %813 = arith.mulf %812, %810 : vector<2x32xf32>
    %814 = arith.mulf %805, %1 : vector<2x32xf32>
    %815 = arith.addf %813, %814 : vector<2x32xf32>
    %816 = vector.extract_strided_slice %788 {offsets = [2, 0], sizes = [2, 96], strides = [1, 1]} : vector<14x96xf32> to vector<2x96xf32>
    %817 = arith.subf %816, %783 : vector<2x96xf32>
    %cst_175 = arith.constant dense<0.000000e+00> : vector<2x96xf32>
    %818 = tpu.matmul %815, %789, %cst_175 {dimension_numbers = #tpu.dot_dimension_numbers<[1], [0], [0], [1], [0, 0, 1, 1], [], []>} : vector<2x32xf32>, vector<32x96xf32>, vector<2x96xf32> -> vector<2x96xf32>
    %819 = vector.broadcast %790 : vector<1x96xf32> to vector<2x96xf32>
    %820 = arith.addf %818, %819 : vector<2x96xf32>
    %821 = vector.extract_strided_slice %817 {offsets = [0, 0], sizes = [2, 64], strides = [1, 1]} : vector<2x96xf32> to vector<2x64xf32>
    %822 = vector.extract_strided_slice %820 {offsets = [0, 0], sizes = [2, 64], strides = [1, 1]} : vector<2x96xf32> to vector<2x64xf32>
    %823 = arith.addf %821, %822 : vector<2x64xf32>
    %824 = arith.negf %823 : vector<2x64xf32>
    %825 = math.exp %824 : vector<2x64xf32>
    %cst_176 = arith.constant 1.000000e+00 : f32
    %826 = vector.broadcast %cst_176 : f32 to vector<2x64xf32>
    %827 = arith.addf %826, %825 : vector<2x64xf32>
    %828 = arith.divf %826, %827 : vector<2x64xf32>
    %829 = vector.extract_strided_slice %828 {offsets = [0, 0], sizes = [2, 32], strides = [1, 1]} : vector<2x64xf32> to vector<2x32xf32>
    %830 = vector.extract_strided_slice %828 {offsets = [0, 32], sizes = [2, 32], strides = [1, 1]} : vector<2x64xf32> to vector<2x32xf32>
    %831 = vector.extract_strided_slice %817 {offsets = [0, 64], sizes = [2, 32], strides = [1, 1]} : vector<2x96xf32> to vector<2x32xf32>
    %832 = vector.extract_strided_slice %820 {offsets = [0, 64], sizes = [2, 32], strides = [1, 1]} : vector<2x96xf32> to vector<2x32xf32>
    %833 = arith.mulf %829, %832 : vector<2x32xf32>
    %834 = arith.addf %831, %833 : vector<2x32xf32>
    %835 = math.tanh %834 : vector<2x32xf32>
    %cst_177 = arith.constant 1.000000e+00 : f32
    %836 = vector.broadcast %cst_177 : f32 to vector<2x32xf32>
    %837 = arith.subf %836, %830 : vector<2x32xf32>
    %838 = arith.mulf %837, %835 : vector<2x32xf32>
    %839 = arith.mulf %830, %815 : vector<2x32xf32>
    %840 = arith.addf %838, %839 : vector<2x32xf32>
    %841 = vector.extract_strided_slice %788 {offsets = [4, 0], sizes = [2, 96], strides = [1, 1]} : vector<14x96xf32> to vector<2x96xf32>
    %842 = arith.subf %841, %783 : vector<2x96xf32>
    %cst_178 = arith.constant dense<0.000000e+00> : vector<2x96xf32>
    %843 = tpu.matmul %840, %789, %cst_178 {dimension_numbers = #tpu.dot_dimension_numbers<[1], [0], [0], [1], [0, 0, 1, 1], [], []>} : vector<2x32xf32>, vector<32x96xf32>, vector<2x96xf32> -> vector<2x96xf32>
    %844 = vector.broadcast %790 : vector<1x96xf32> to vector<2x96xf32>
    %845 = arith.addf %843, %844 : vector<2x96xf32>
    %846 = vector.extract_strided_slice %842 {offsets = [0, 0], sizes = [2, 64], strides = [1, 1]} : vector<2x96xf32> to vector<2x64xf32>
    %847 = vector.extract_strided_slice %845 {offsets = [0, 0], sizes = [2, 64], strides = [1, 1]} : vector<2x96xf32> to vector<2x64xf32>
    %848 = arith.addf %846, %847 : vector<2x64xf32>
    %849 = arith.negf %848 : vector<2x64xf32>
    %850 = math.exp %849 : vector<2x64xf32>
    %cst_179 = arith.constant 1.000000e+00 : f32
    %851 = vector.broadcast %cst_179 : f32 to vector<2x64xf32>
    %852 = arith.addf %851, %850 : vector<2x64xf32>
    %853 = arith.divf %851, %852 : vector<2x64xf32>
    %854 = vector.extract_strided_slice %853 {offsets = [0, 0], sizes = [2, 32], strides = [1, 1]} : vector<2x64xf32> to vector<2x32xf32>
    %855 = vector.extract_strided_slice %853 {offsets = [0, 32], sizes = [2, 32], strides = [1, 1]} : vector<2x64xf32> to vector<2x32xf32>
    %856 = vector.extract_strided_slice %842 {offsets = [0, 64], sizes = [2, 32], strides = [1, 1]} : vector<2x96xf32> to vector<2x32xf32>
    %857 = vector.extract_strided_slice %845 {offsets = [0, 64], sizes = [2, 32], strides = [1, 1]} : vector<2x96xf32> to vector<2x32xf32>
    %858 = arith.mulf %854, %857 : vector<2x32xf32>
    %859 = arith.addf %856, %858 : vector<2x32xf32>
    %860 = math.tanh %859 : vector<2x32xf32>
    %cst_180 = arith.constant 1.000000e+00 : f32
    %861 = vector.broadcast %cst_180 : f32 to vector<2x32xf32>
    %862 = arith.subf %861, %855 : vector<2x32xf32>
    %863 = arith.mulf %862, %860 : vector<2x32xf32>
    %864 = arith.mulf %855, %840 : vector<2x32xf32>
    %865 = arith.addf %863, %864 : vector<2x32xf32>
    %866 = vector.extract_strided_slice %788 {offsets = [6, 0], sizes = [2, 96], strides = [1, 1]} : vector<14x96xf32> to vector<2x96xf32>
    %867 = arith.subf %866, %783 : vector<2x96xf32>
    %cst_181 = arith.constant dense<0.000000e+00> : vector<2x96xf32>
    %868 = tpu.matmul %865, %789, %cst_181 {dimension_numbers = #tpu.dot_dimension_numbers<[1], [0], [0], [1], [0, 0, 1, 1], [], []>} : vector<2x32xf32>, vector<32x96xf32>, vector<2x96xf32> -> vector<2x96xf32>
    %869 = vector.broadcast %790 : vector<1x96xf32> to vector<2x96xf32>
    %870 = arith.addf %868, %869 : vector<2x96xf32>
    %871 = vector.extract_strided_slice %867 {offsets = [0, 0], sizes = [2, 64], strides = [1, 1]} : vector<2x96xf32> to vector<2x64xf32>
    %872 = vector.extract_strided_slice %870 {offsets = [0, 0], sizes = [2, 64], strides = [1, 1]} : vector<2x96xf32> to vector<2x64xf32>
    %873 = arith.addf %871, %872 : vector<2x64xf32>
    %874 = arith.negf %873 : vector<2x64xf32>
    %875 = math.exp %874 : vector<2x64xf32>
    %cst_182 = arith.constant 1.000000e+00 : f32
    %876 = vector.broadcast %cst_182 : f32 to vector<2x64xf32>
    %877 = arith.addf %876, %875 : vector<2x64xf32>
    %878 = arith.divf %876, %877 : vector<2x64xf32>
    %879 = vector.extract_strided_slice %878 {offsets = [0, 0], sizes = [2, 32], strides = [1, 1]} : vector<2x64xf32> to vector<2x32xf32>
    %880 = vector.extract_strided_slice %878 {offsets = [0, 32], sizes = [2, 32], strides = [1, 1]} : vector<2x64xf32> to vector<2x32xf32>
    %881 = vector.extract_strided_slice %867 {offsets = [0, 64], sizes = [2, 32], strides = [1, 1]} : vector<2x96xf32> to vector<2x32xf32>
    %882 = vector.extract_strided_slice %870 {offsets = [0, 64], sizes = [2, 32], strides = [1, 1]} : vector<2x96xf32> to vector<2x32xf32>
    %883 = arith.mulf %879, %882 : vector<2x32xf32>
    %884 = arith.addf %881, %883 : vector<2x32xf32>
    %885 = math.tanh %884 : vector<2x32xf32>
    %cst_183 = arith.constant 1.000000e+00 : f32
    %886 = vector.broadcast %cst_183 : f32 to vector<2x32xf32>
    %887 = arith.subf %886, %880 : vector<2x32xf32>
    %888 = arith.mulf %887, %885 : vector<2x32xf32>
    %889 = arith.mulf %880, %865 : vector<2x32xf32>
    %890 = arith.addf %888, %889 : vector<2x32xf32>
    %891 = vector.extract_strided_slice %788 {offsets = [8, 0], sizes = [2, 96], strides = [1, 1]} : vector<14x96xf32> to vector<2x96xf32>
    %892 = arith.subf %891, %783 : vector<2x96xf32>
    %cst_184 = arith.constant dense<0.000000e+00> : vector<2x96xf32>
    %893 = tpu.matmul %890, %789, %cst_184 {dimension_numbers = #tpu.dot_dimension_numbers<[1], [0], [0], [1], [0, 0, 1, 1], [], []>} : vector<2x32xf32>, vector<32x96xf32>, vector<2x96xf32> -> vector<2x96xf32>
    %894 = vector.broadcast %790 : vector<1x96xf32> to vector<2x96xf32>
    %895 = arith.addf %893, %894 : vector<2x96xf32>
    %896 = vector.extract_strided_slice %892 {offsets = [0, 0], sizes = [2, 64], strides = [1, 1]} : vector<2x96xf32> to vector<2x64xf32>
    %897 = vector.extract_strided_slice %895 {offsets = [0, 0], sizes = [2, 64], strides = [1, 1]} : vector<2x96xf32> to vector<2x64xf32>
    %898 = arith.addf %896, %897 : vector<2x64xf32>
    %899 = arith.negf %898 : vector<2x64xf32>
    %900 = math.exp %899 : vector<2x64xf32>
    %cst_185 = arith.constant 1.000000e+00 : f32
    %901 = vector.broadcast %cst_185 : f32 to vector<2x64xf32>
    %902 = arith.addf %901, %900 : vector<2x64xf32>
    %903 = arith.divf %901, %902 : vector<2x64xf32>
    %904 = vector.extract_strided_slice %903 {offsets = [0, 0], sizes = [2, 32], strides = [1, 1]} : vector<2x64xf32> to vector<2x32xf32>
    %905 = vector.extract_strided_slice %903 {offsets = [0, 32], sizes = [2, 32], strides = [1, 1]} : vector<2x64xf32> to vector<2x32xf32>
    %906 = vector.extract_strided_slice %892 {offsets = [0, 64], sizes = [2, 32], strides = [1, 1]} : vector<2x96xf32> to vector<2x32xf32>
    %907 = vector.extract_strided_slice %895 {offsets = [0, 64], sizes = [2, 32], strides = [1, 1]} : vector<2x96xf32> to vector<2x32xf32>
    %908 = arith.mulf %904, %907 : vector<2x32xf32>
    %909 = arith.addf %906, %908 : vector<2x32xf32>
    %910 = math.tanh %909 : vector<2x32xf32>
    %cst_186 = arith.constant 1.000000e+00 : f32
    %911 = vector.broadcast %cst_186 : f32 to vector<2x32xf32>
    %912 = arith.subf %911, %905 : vector<2x32xf32>
    %913 = arith.mulf %912, %910 : vector<2x32xf32>
    %914 = arith.mulf %905, %890 : vector<2x32xf32>
    %915 = arith.addf %913, %914 : vector<2x32xf32>
    %916 = vector.extract_strided_slice %788 {offsets = [10, 0], sizes = [2, 96], strides = [1, 1]} : vector<14x96xf32> to vector<2x96xf32>
    %917 = arith.subf %916, %783 : vector<2x96xf32>
    %cst_187 = arith.constant dense<0.000000e+00> : vector<2x96xf32>
    %918 = tpu.matmul %915, %789, %cst_187 {dimension_numbers = #tpu.dot_dimension_numbers<[1], [0], [0], [1], [0, 0, 1, 1], [], []>} : vector<2x32xf32>, vector<32x96xf32>, vector<2x96xf32> -> vector<2x96xf32>
    %919 = vector.broadcast %790 : vector<1x96xf32> to vector<2x96xf32>
    %920 = arith.addf %918, %919 : vector<2x96xf32>
    %921 = vector.extract_strided_slice %917 {offsets = [0, 0], sizes = [2, 64], strides = [1, 1]} : vector<2x96xf32> to vector<2x64xf32>
    %922 = vector.extract_strided_slice %920 {offsets = [0, 0], sizes = [2, 64], strides = [1, 1]} : vector<2x96xf32> to vector<2x64xf32>
    %923 = arith.addf %921, %922 : vector<2x64xf32>
    %924 = arith.negf %923 : vector<2x64xf32>
    %925 = math.exp %924 : vector<2x64xf32>
    %cst_188 = arith.constant 1.000000e+00 : f32
    %926 = vector.broadcast %cst_188 : f32 to vector<2x64xf32>
    %927 = arith.addf %926, %925 : vector<2x64xf32>
    %928 = arith.divf %926, %927 : vector<2x64xf32>
    %929 = vector.extract_strided_slice %928 {offsets = [0, 0], sizes = [2, 32], strides = [1, 1]} : vector<2x64xf32> to vector<2x32xf32>
    %930 = vector.extract_strided_slice %928 {offsets = [0, 32], sizes = [2, 32], strides = [1, 1]} : vector<2x64xf32> to vector<2x32xf32>
    %931 = vector.extract_strided_slice %917 {offsets = [0, 64], sizes = [2, 32], strides = [1, 1]} : vector<2x96xf32> to vector<2x32xf32>
    %932 = vector.extract_strided_slice %920 {offsets = [0, 64], sizes = [2, 32], strides = [1, 1]} : vector<2x96xf32> to vector<2x32xf32>
    %933 = arith.mulf %929, %932 : vector<2x32xf32>
    %934 = arith.addf %931, %933 : vector<2x32xf32>
    %935 = math.tanh %934 : vector<2x32xf32>
    %cst_189 = arith.constant 1.000000e+00 : f32
    %936 = vector.broadcast %cst_189 : f32 to vector<2x32xf32>
    %937 = arith.subf %936, %930 : vector<2x32xf32>
    %938 = arith.mulf %937, %935 : vector<2x32xf32>
    %939 = arith.mulf %930, %915 : vector<2x32xf32>
    %940 = arith.addf %938, %939 : vector<2x32xf32>
    %941 = vector.extract_strided_slice %788 {offsets = [12, 0], sizes = [2, 96], strides = [1, 1]} : vector<14x96xf32> to vector<2x96xf32>
    %942 = arith.subf %941, %783 : vector<2x96xf32>
    %cst_190 = arith.constant dense<0.000000e+00> : vector<2x96xf32>
    %943 = tpu.matmul %940, %789, %cst_190 {dimension_numbers = #tpu.dot_dimension_numbers<[1], [0], [0], [1], [0, 0, 1, 1], [], []>} : vector<2x32xf32>, vector<32x96xf32>, vector<2x96xf32> -> vector<2x96xf32>
    %944 = vector.broadcast %790 : vector<1x96xf32> to vector<2x96xf32>
    %945 = arith.addf %943, %944 : vector<2x96xf32>
    %946 = vector.extract_strided_slice %942 {offsets = [0, 0], sizes = [2, 64], strides = [1, 1]} : vector<2x96xf32> to vector<2x64xf32>
    %947 = vector.extract_strided_slice %945 {offsets = [0, 0], sizes = [2, 64], strides = [1, 1]} : vector<2x96xf32> to vector<2x64xf32>
    %948 = arith.addf %946, %947 : vector<2x64xf32>
    %949 = arith.negf %948 : vector<2x64xf32>
    %950 = math.exp %949 : vector<2x64xf32>
    %cst_191 = arith.constant 1.000000e+00 : f32
    %951 = vector.broadcast %cst_191 : f32 to vector<2x64xf32>
    %952 = arith.addf %951, %950 : vector<2x64xf32>
    %953 = arith.divf %951, %952 : vector<2x64xf32>
    %954 = vector.extract_strided_slice %953 {offsets = [0, 0], sizes = [2, 32], strides = [1, 1]} : vector<2x64xf32> to vector<2x32xf32>
    %955 = vector.extract_strided_slice %953 {offsets = [0, 32], sizes = [2, 32], strides = [1, 1]} : vector<2x64xf32> to vector<2x32xf32>
    %956 = vector.extract_strided_slice %942 {offsets = [0, 64], sizes = [2, 32], strides = [1, 1]} : vector<2x96xf32> to vector<2x32xf32>
    %957 = vector.extract_strided_slice %945 {offsets = [0, 64], sizes = [2, 32], strides = [1, 1]} : vector<2x96xf32> to vector<2x32xf32>
    %958 = arith.mulf %954, %957 : vector<2x32xf32>
    %959 = arith.addf %956, %958 : vector<2x32xf32>
    %960 = math.tanh %959 : vector<2x32xf32>
    %cst_192 = arith.constant 1.000000e+00 : f32
    %961 = vector.broadcast %cst_192 : f32 to vector<2x32xf32>
    %962 = arith.subf %961, %955 : vector<2x32xf32>
    %963 = arith.mulf %962, %960 : vector<2x32xf32>
    %964 = arith.mulf %955, %940 : vector<2x32xf32>
    %965 = arith.addf %963, %964 : vector<2x32xf32>
    %966 = tpu.concatenate %815, %840, %865, %890, %915, %940, %965 in 0 : vector<2x32xf32>, vector<2x32xf32>, vector<2x32xf32>, vector<2x32xf32>, vector<2x32xf32>, vector<2x32xf32>, vector<2x32xf32> -> vector<14x32xf32>
    %c0_193 = arith.constant 0 : index
    %c0_194 = arith.constant 0 : index
    %967 = vector.load %arg18[%c0_193, %c0_194] : memref<32x96xf32, #tpu.memory_space<vmem>>, vector<32x96xf32>
    %cst_195 = arith.constant dense<0.000000e+00> : vector<14x96xf32>
    %968 = tpu.matmul %966, %967, %cst_195 {dimension_numbers = #tpu.dot_dimension_numbers<[1], [0], [0], [1], [0, 0, 1, 1], [], []>} : vector<14x32xf32>, vector<32x96xf32>, vector<14x96xf32> -> vector<14x96xf32>
    %c0_196 = arith.constant 0 : index
    %c0_197 = arith.constant 0 : index
    %969 = vector.load %arg20[%c0_196, %c0_197] : memref<1x96xf32, #tpu.memory_space<vmem>>, vector<1x96xf32>
    %970 = vector.broadcast %969 : vector<1x96xf32> to vector<14x96xf32>
    %971 = arith.addf %968, %970 : vector<14x96xf32>
    %c0_198 = arith.constant 0 : index
    %c0_199 = arith.constant 0 : index
    %972 = vector.load %arg19[%c0_198, %c0_199] : memref<32x96xf32, #tpu.memory_space<vmem>>, vector<32x96xf32>
    %c0_200 = arith.constant 0 : index
    %c0_201 = arith.constant 0 : index
    %973 = vector.load %arg21[%c0_200, %c0_201] : memref<1x96xf32, #tpu.memory_space<vmem>>, vector<1x96xf32>
    %974 = vector.extract_strided_slice %971 {offsets = [0, 0], sizes = [2, 96], strides = [1, 1]} : vector<14x96xf32> to vector<2x96xf32>
    %cst_202 = arith.constant dense<0.000000e+00> : vector<2x96xf32>
    %975 = tpu.matmul %1, %972, %cst_202 {dimension_numbers = #tpu.dot_dimension_numbers<[1], [0], [0], [1], [0, 0, 1, 1], [], []>} : vector<2x32xf32>, vector<32x96xf32>, vector<2x96xf32> -> vector<2x96xf32>
    %976 = vector.broadcast %973 : vector<1x96xf32> to vector<2x96xf32>
    %977 = arith.addf %975, %976 : vector<2x96xf32>
    %978 = vector.extract_strided_slice %974 {offsets = [0, 0], sizes = [2, 64], strides = [1, 1]} : vector<2x96xf32> to vector<2x64xf32>
    %979 = vector.extract_strided_slice %977 {offsets = [0, 0], sizes = [2, 64], strides = [1, 1]} : vector<2x96xf32> to vector<2x64xf32>
    %980 = arith.addf %978, %979 : vector<2x64xf32>
    %981 = arith.negf %980 : vector<2x64xf32>
    %982 = math.exp %981 : vector<2x64xf32>
    %cst_203 = arith.constant 1.000000e+00 : f32
    %983 = vector.broadcast %cst_203 : f32 to vector<2x64xf32>
    %984 = arith.addf %983, %982 : vector<2x64xf32>
    %985 = arith.divf %983, %984 : vector<2x64xf32>
    %986 = vector.extract_strided_slice %985 {offsets = [0, 0], sizes = [2, 32], strides = [1, 1]} : vector<2x64xf32> to vector<2x32xf32>
    %987 = vector.extract_strided_slice %985 {offsets = [0, 32], sizes = [2, 32], strides = [1, 1]} : vector<2x64xf32> to vector<2x32xf32>
    %988 = vector.extract_strided_slice %974 {offsets = [0, 64], sizes = [2, 32], strides = [1, 1]} : vector<2x96xf32> to vector<2x32xf32>
    %989 = vector.extract_strided_slice %977 {offsets = [0, 64], sizes = [2, 32], strides = [1, 1]} : vector<2x96xf32> to vector<2x32xf32>
    %990 = arith.mulf %986, %989 : vector<2x32xf32>
    %991 = arith.addf %988, %990 : vector<2x32xf32>
    %992 = math.tanh %991 : vector<2x32xf32>
    %cst_204 = arith.constant 1.000000e+00 : f32
    %993 = vector.broadcast %cst_204 : f32 to vector<2x32xf32>
    %994 = arith.subf %993, %987 : vector<2x32xf32>
    %995 = arith.mulf %994, %992 : vector<2x32xf32>
    %996 = arith.mulf %987, %1 : vector<2x32xf32>
    %997 = arith.addf %995, %996 : vector<2x32xf32>
    %998 = vector.extract_strided_slice %971 {offsets = [2, 0], sizes = [2, 96], strides = [1, 1]} : vector<14x96xf32> to vector<2x96xf32>
    %cst_205 = arith.constant dense<0.000000e+00> : vector<2x96xf32>
    %999 = tpu.matmul %997, %972, %cst_205 {dimension_numbers = #tpu.dot_dimension_numbers<[1], [0], [0], [1], [0, 0, 1, 1], [], []>} : vector<2x32xf32>, vector<32x96xf32>, vector<2x96xf32> -> vector<2x96xf32>
    %1000 = vector.broadcast %973 : vector<1x96xf32> to vector<2x96xf32>
    %1001 = arith.addf %999, %1000 : vector<2x96xf32>
    %1002 = vector.extract_strided_slice %998 {offsets = [0, 0], sizes = [2, 64], strides = [1, 1]} : vector<2x96xf32> to vector<2x64xf32>
    %1003 = vector.extract_strided_slice %1001 {offsets = [0, 0], sizes = [2, 64], strides = [1, 1]} : vector<2x96xf32> to vector<2x64xf32>
    %1004 = arith.addf %1002, %1003 : vector<2x64xf32>
    %1005 = arith.negf %1004 : vector<2x64xf32>
    %1006 = math.exp %1005 : vector<2x64xf32>
    %cst_206 = arith.constant 1.000000e+00 : f32
    %1007 = vector.broadcast %cst_206 : f32 to vector<2x64xf32>
    %1008 = arith.addf %1007, %1006 : vector<2x64xf32>
    %1009 = arith.divf %1007, %1008 : vector<2x64xf32>
    %1010 = vector.extract_strided_slice %1009 {offsets = [0, 0], sizes = [2, 32], strides = [1, 1]} : vector<2x64xf32> to vector<2x32xf32>
    %1011 = vector.extract_strided_slice %1009 {offsets = [0, 32], sizes = [2, 32], strides = [1, 1]} : vector<2x64xf32> to vector<2x32xf32>
    %1012 = vector.extract_strided_slice %998 {offsets = [0, 64], sizes = [2, 32], strides = [1, 1]} : vector<2x96xf32> to vector<2x32xf32>
    %1013 = vector.extract_strided_slice %1001 {offsets = [0, 64], sizes = [2, 32], strides = [1, 1]} : vector<2x96xf32> to vector<2x32xf32>
    %1014 = arith.mulf %1010, %1013 : vector<2x32xf32>
    %1015 = arith.addf %1012, %1014 : vector<2x32xf32>
    %1016 = math.tanh %1015 : vector<2x32xf32>
    %cst_207 = arith.constant 1.000000e+00 : f32
    %1017 = vector.broadcast %cst_207 : f32 to vector<2x32xf32>
    %1018 = arith.subf %1017, %1011 : vector<2x32xf32>
    %1019 = arith.mulf %1018, %1016 : vector<2x32xf32>
    %1020 = arith.mulf %1011, %997 : vector<2x32xf32>
    %1021 = arith.addf %1019, %1020 : vector<2x32xf32>
    %1022 = vector.extract_strided_slice %971 {offsets = [4, 0], sizes = [2, 96], strides = [1, 1]} : vector<14x96xf32> to vector<2x96xf32>
    %cst_208 = arith.constant dense<0.000000e+00> : vector<2x96xf32>
    %1023 = tpu.matmul %1021, %972, %cst_208 {dimension_numbers = #tpu.dot_dimension_numbers<[1], [0], [0], [1], [0, 0, 1, 1], [], []>} : vector<2x32xf32>, vector<32x96xf32>, vector<2x96xf32> -> vector<2x96xf32>
    %1024 = vector.broadcast %973 : vector<1x96xf32> to vector<2x96xf32>
    %1025 = arith.addf %1023, %1024 : vector<2x96xf32>
    %1026 = vector.extract_strided_slice %1022 {offsets = [0, 0], sizes = [2, 64], strides = [1, 1]} : vector<2x96xf32> to vector<2x64xf32>
    %1027 = vector.extract_strided_slice %1025 {offsets = [0, 0], sizes = [2, 64], strides = [1, 1]} : vector<2x96xf32> to vector<2x64xf32>
    %1028 = arith.addf %1026, %1027 : vector<2x64xf32>
    %1029 = arith.negf %1028 : vector<2x64xf32>
    %1030 = math.exp %1029 : vector<2x64xf32>
    %cst_209 = arith.constant 1.000000e+00 : f32
    %1031 = vector.broadcast %cst_209 : f32 to vector<2x64xf32>
    %1032 = arith.addf %1031, %1030 : vector<2x64xf32>
    %1033 = arith.divf %1031, %1032 : vector<2x64xf32>
    %1034 = vector.extract_strided_slice %1033 {offsets = [0, 0], sizes = [2, 32], strides = [1, 1]} : vector<2x64xf32> to vector<2x32xf32>
    %1035 = vector.extract_strided_slice %1033 {offsets = [0, 32], sizes = [2, 32], strides = [1, 1]} : vector<2x64xf32> to vector<2x32xf32>
    %1036 = vector.extract_strided_slice %1022 {offsets = [0, 64], sizes = [2, 32], strides = [1, 1]} : vector<2x96xf32> to vector<2x32xf32>
    %1037 = vector.extract_strided_slice %1025 {offsets = [0, 64], sizes = [2, 32], strides = [1, 1]} : vector<2x96xf32> to vector<2x32xf32>
    %1038 = arith.mulf %1034, %1037 : vector<2x32xf32>
    %1039 = arith.addf %1036, %1038 : vector<2x32xf32>
    %1040 = math.tanh %1039 : vector<2x32xf32>
    %cst_210 = arith.constant 1.000000e+00 : f32
    %1041 = vector.broadcast %cst_210 : f32 to vector<2x32xf32>
    %1042 = arith.subf %1041, %1035 : vector<2x32xf32>
    %1043 = arith.mulf %1042, %1040 : vector<2x32xf32>
    %1044 = arith.mulf %1035, %1021 : vector<2x32xf32>
    %1045 = arith.addf %1043, %1044 : vector<2x32xf32>
    %1046 = vector.extract_strided_slice %971 {offsets = [6, 0], sizes = [2, 96], strides = [1, 1]} : vector<14x96xf32> to vector<2x96xf32>
    %cst_211 = arith.constant dense<0.000000e+00> : vector<2x96xf32>
    %1047 = tpu.matmul %1045, %972, %cst_211 {dimension_numbers = #tpu.dot_dimension_numbers<[1], [0], [0], [1], [0, 0, 1, 1], [], []>} : vector<2x32xf32>, vector<32x96xf32>, vector<2x96xf32> -> vector<2x96xf32>
    %1048 = vector.broadcast %973 : vector<1x96xf32> to vector<2x96xf32>
    %1049 = arith.addf %1047, %1048 : vector<2x96xf32>
    %1050 = vector.extract_strided_slice %1046 {offsets = [0, 0], sizes = [2, 64], strides = [1, 1]} : vector<2x96xf32> to vector<2x64xf32>
    %1051 = vector.extract_strided_slice %1049 {offsets = [0, 0], sizes = [2, 64], strides = [1, 1]} : vector<2x96xf32> to vector<2x64xf32>
    %1052 = arith.addf %1050, %1051 : vector<2x64xf32>
    %1053 = arith.negf %1052 : vector<2x64xf32>
    %1054 = math.exp %1053 : vector<2x64xf32>
    %cst_212 = arith.constant 1.000000e+00 : f32
    %1055 = vector.broadcast %cst_212 : f32 to vector<2x64xf32>
    %1056 = arith.addf %1055, %1054 : vector<2x64xf32>
    %1057 = arith.divf %1055, %1056 : vector<2x64xf32>
    %1058 = vector.extract_strided_slice %1057 {offsets = [0, 0], sizes = [2, 32], strides = [1, 1]} : vector<2x64xf32> to vector<2x32xf32>
    %1059 = vector.extract_strided_slice %1057 {offsets = [0, 32], sizes = [2, 32], strides = [1, 1]} : vector<2x64xf32> to vector<2x32xf32>
    %1060 = vector.extract_strided_slice %1046 {offsets = [0, 64], sizes = [2, 32], strides = [1, 1]} : vector<2x96xf32> to vector<2x32xf32>
    %1061 = vector.extract_strided_slice %1049 {offsets = [0, 64], sizes = [2, 32], strides = [1, 1]} : vector<2x96xf32> to vector<2x32xf32>
    %1062 = arith.mulf %1058, %1061 : vector<2x32xf32>
    %1063 = arith.addf %1060, %1062 : vector<2x32xf32>
    %1064 = math.tanh %1063 : vector<2x32xf32>
    %cst_213 = arith.constant 1.000000e+00 : f32
    %1065 = vector.broadcast %cst_213 : f32 to vector<2x32xf32>
    %1066 = arith.subf %1065, %1059 : vector<2x32xf32>
    %1067 = arith.mulf %1066, %1064 : vector<2x32xf32>
    %1068 = arith.mulf %1059, %1045 : vector<2x32xf32>
    %1069 = arith.addf %1067, %1068 : vector<2x32xf32>
    %1070 = vector.extract_strided_slice %971 {offsets = [8, 0], sizes = [2, 96], strides = [1, 1]} : vector<14x96xf32> to vector<2x96xf32>
    %cst_214 = arith.constant dense<0.000000e+00> : vector<2x96xf32>
    %1071 = tpu.matmul %1069, %972, %cst_214 {dimension_numbers = #tpu.dot_dimension_numbers<[1], [0], [0], [1], [0, 0, 1, 1], [], []>} : vector<2x32xf32>, vector<32x96xf32>, vector<2x96xf32> -> vector<2x96xf32>
    %1072 = vector.broadcast %973 : vector<1x96xf32> to vector<2x96xf32>
    %1073 = arith.addf %1071, %1072 : vector<2x96xf32>
    %1074 = vector.extract_strided_slice %1070 {offsets = [0, 0], sizes = [2, 64], strides = [1, 1]} : vector<2x96xf32> to vector<2x64xf32>
    %1075 = vector.extract_strided_slice %1073 {offsets = [0, 0], sizes = [2, 64], strides = [1, 1]} : vector<2x96xf32> to vector<2x64xf32>
    %1076 = arith.addf %1074, %1075 : vector<2x64xf32>
    %1077 = arith.negf %1076 : vector<2x64xf32>
    %1078 = math.exp %1077 : vector<2x64xf32>
    %cst_215 = arith.constant 1.000000e+00 : f32
    %1079 = vector.broadcast %cst_215 : f32 to vector<2x64xf32>
    %1080 = arith.addf %1079, %1078 : vector<2x64xf32>
    %1081 = arith.divf %1079, %1080 : vector<2x64xf32>
    %1082 = vector.extract_strided_slice %1081 {offsets = [0, 0], sizes = [2, 32], strides = [1, 1]} : vector<2x64xf32> to vector<2x32xf32>
    %1083 = vector.extract_strided_slice %1081 {offsets = [0, 32], sizes = [2, 32], strides = [1, 1]} : vector<2x64xf32> to vector<2x32xf32>
    %1084 = vector.extract_strided_slice %1070 {offsets = [0, 64], sizes = [2, 32], strides = [1, 1]} : vector<2x96xf32> to vector<2x32xf32>
    %1085 = vector.extract_strided_slice %1073 {offsets = [0, 64], sizes = [2, 32], strides = [1, 1]} : vector<2x96xf32> to vector<2x32xf32>
    %1086 = arith.mulf %1082, %1085 : vector<2x32xf32>
    %1087 = arith.addf %1084, %1086 : vector<2x32xf32>
    %1088 = math.tanh %1087 : vector<2x32xf32>
    %cst_216 = arith.constant 1.000000e+00 : f32
    %1089 = vector.broadcast %cst_216 : f32 to vector<2x32xf32>
    %1090 = arith.subf %1089, %1083 : vector<2x32xf32>
    %1091 = arith.mulf %1090, %1088 : vector<2x32xf32>
    %1092 = arith.mulf %1083, %1069 : vector<2x32xf32>
    %1093 = arith.addf %1091, %1092 : vector<2x32xf32>
    %1094 = vector.extract_strided_slice %971 {offsets = [10, 0], sizes = [2, 96], strides = [1, 1]} : vector<14x96xf32> to vector<2x96xf32>
    %cst_217 = arith.constant dense<0.000000e+00> : vector<2x96xf32>
    %1095 = tpu.matmul %1093, %972, %cst_217 {dimension_numbers = #tpu.dot_dimension_numbers<[1], [0], [0], [1], [0, 0, 1, 1], [], []>} : vector<2x32xf32>, vector<32x96xf32>, vector<2x96xf32> -> vector<2x96xf32>
    %1096 = vector.broadcast %973 : vector<1x96xf32> to vector<2x96xf32>
    %1097 = arith.addf %1095, %1096 : vector<2x96xf32>
    %1098 = vector.extract_strided_slice %1094 {offsets = [0, 0], sizes = [2, 64], strides = [1, 1]} : vector<2x96xf32> to vector<2x64xf32>
    %1099 = vector.extract_strided_slice %1097 {offsets = [0, 0], sizes = [2, 64], strides = [1, 1]} : vector<2x96xf32> to vector<2x64xf32>
    %1100 = arith.addf %1098, %1099 : vector<2x64xf32>
    %1101 = arith.negf %1100 : vector<2x64xf32>
    %1102 = math.exp %1101 : vector<2x64xf32>
    %cst_218 = arith.constant 1.000000e+00 : f32
    %1103 = vector.broadcast %cst_218 : f32 to vector<2x64xf32>
    %1104 = arith.addf %1103, %1102 : vector<2x64xf32>
    %1105 = arith.divf %1103, %1104 : vector<2x64xf32>
    %1106 = vector.extract_strided_slice %1105 {offsets = [0, 0], sizes = [2, 32], strides = [1, 1]} : vector<2x64xf32> to vector<2x32xf32>
    %1107 = vector.extract_strided_slice %1105 {offsets = [0, 32], sizes = [2, 32], strides = [1, 1]} : vector<2x64xf32> to vector<2x32xf32>
    %1108 = vector.extract_strided_slice %1094 {offsets = [0, 64], sizes = [2, 32], strides = [1, 1]} : vector<2x96xf32> to vector<2x32xf32>
    %1109 = vector.extract_strided_slice %1097 {offsets = [0, 64], sizes = [2, 32], strides = [1, 1]} : vector<2x96xf32> to vector<2x32xf32>
    %1110 = arith.mulf %1106, %1109 : vector<2x32xf32>
    %1111 = arith.addf %1108, %1110 : vector<2x32xf32>
    %1112 = math.tanh %1111 : vector<2x32xf32>
    %cst_219 = arith.constant 1.000000e+00 : f32
    %1113 = vector.broadcast %cst_219 : f32 to vector<2x32xf32>
    %1114 = arith.subf %1113, %1107 : vector<2x32xf32>
    %1115 = arith.mulf %1114, %1112 : vector<2x32xf32>
    %1116 = arith.mulf %1107, %1093 : vector<2x32xf32>
    %1117 = arith.addf %1115, %1116 : vector<2x32xf32>
    %1118 = vector.extract_strided_slice %971 {offsets = [12, 0], sizes = [2, 96], strides = [1, 1]} : vector<14x96xf32> to vector<2x96xf32>
    %cst_220 = arith.constant dense<0.000000e+00> : vector<2x96xf32>
    %1119 = tpu.matmul %1117, %972, %cst_220 {dimension_numbers = #tpu.dot_dimension_numbers<[1], [0], [0], [1], [0, 0, 1, 1], [], []>} : vector<2x32xf32>, vector<32x96xf32>, vector<2x96xf32> -> vector<2x96xf32>
    %1120 = vector.broadcast %973 : vector<1x96xf32> to vector<2x96xf32>
    %1121 = arith.addf %1119, %1120 : vector<2x96xf32>
    %1122 = vector.extract_strided_slice %1118 {offsets = [0, 0], sizes = [2, 64], strides = [1, 1]} : vector<2x96xf32> to vector<2x64xf32>
    %1123 = vector.extract_strided_slice %1121 {offsets = [0, 0], sizes = [2, 64], strides = [1, 1]} : vector<2x96xf32> to vector<2x64xf32>
    %1124 = arith.addf %1122, %1123 : vector<2x64xf32>
    %1125 = arith.negf %1124 : vector<2x64xf32>
    %1126 = math.exp %1125 : vector<2x64xf32>
    %cst_221 = arith.constant 1.000000e+00 : f32
    %1127 = vector.broadcast %cst_221 : f32 to vector<2x64xf32>
    %1128 = arith.addf %1127, %1126 : vector<2x64xf32>
    %1129 = arith.divf %1127, %1128 : vector<2x64xf32>
    %1130 = vector.extract_strided_slice %1129 {offsets = [0, 0], sizes = [2, 32], strides = [1, 1]} : vector<2x64xf32> to vector<2x32xf32>
    %1131 = vector.extract_strided_slice %1129 {offsets = [0, 32], sizes = [2, 32], strides = [1, 1]} : vector<2x64xf32> to vector<2x32xf32>
    %1132 = vector.extract_strided_slice %1118 {offsets = [0, 64], sizes = [2, 32], strides = [1, 1]} : vector<2x96xf32> to vector<2x32xf32>
    %1133 = vector.extract_strided_slice %1121 {offsets = [0, 64], sizes = [2, 32], strides = [1, 1]} : vector<2x96xf32> to vector<2x32xf32>
    %1134 = arith.mulf %1130, %1133 : vector<2x32xf32>
    %1135 = arith.addf %1132, %1134 : vector<2x32xf32>
    %1136 = math.tanh %1135 : vector<2x32xf32>
    %cst_222 = arith.constant 1.000000e+00 : f32
    %1137 = vector.broadcast %cst_222 : f32 to vector<2x32xf32>
    %1138 = arith.subf %1137, %1131 : vector<2x32xf32>
    %1139 = arith.mulf %1138, %1136 : vector<2x32xf32>
    %1140 = arith.mulf %1131, %1117 : vector<2x32xf32>
    %1141 = arith.addf %1139, %1140 : vector<2x32xf32>
    %c0_223 = arith.constant 0 : index
    %c0_224 = arith.constant 0 : index
    %1142 = vector.load %arg30[%c0_223, %c0_224] : memref<32x3xf32, #tpu.memory_space<vmem>>, vector<32x3xf32>
    %cst_225 = arith.constant dense<0.000000e+00> : vector<2x3xf32>
    %1143 = tpu.matmul %1141, %1142, %cst_225 {dimension_numbers = #tpu.dot_dimension_numbers<[1], [0], [0], [1], [0, 0, 1, 1], [], []>} : vector<2x32xf32>, vector<32x3xf32>, vector<2x3xf32> -> vector<2x3xf32>
    %c0_226 = arith.constant 0 : index
    %c0_227 = arith.constant 0 : index
    %1144 = vector.load %arg31[%c0_226, %c0_227] : memref<1x3xf32, #tpu.memory_space<vmem>>, vector<1x3xf32>
    %1145 = vector.broadcast %1144 : vector<1x3xf32> to vector<2x3xf32>
    %1146 = arith.addf %1143, %1145 : vector<2x3xf32>
    %1147 = vector.extract_strided_slice %1146 {offsets = [0, 1], sizes = [2, 1], strides = [1, 1]} : vector<2x3xf32> to vector<2x1xf32>
    %1148 = vector.extract_strided_slice %1146 {offsets = [0, 2], sizes = [2, 1], strides = [1, 1]} : vector<2x3xf32> to vector<2x1xf32>
    %cst_228 = arith.constant 0.000000e+00 : f32
    %1149 = vector.broadcast %cst_228 : f32 to vector<2x1xf32>
    %1150 = arith.maximumf %1148, %1149 : vector<2x1xf32>
    %1151 = vector.broadcast %cst_228 : f32 to vector<2x1xf32>
    %1152 = arith.subf %1148, %1151 : vector<2x1xf32>
    %1153 = arith.cmpf one, %1152, %1152 : vector<2x1xf32>
    %1154 = vector.broadcast %cst_228 : f32 to vector<2x1xf32>
    %1155 = arith.addf %1148, %1154 : vector<2x1xf32>
    %1156 = math.absf %1152 : vector<2x1xf32>
    %cst_229 = arith.constant 0.000000e+00 : f32
    %1157 = vector.broadcast %cst_229 : f32 to vector<2x1xf32>
    %1158 = arith.subf %1157, %1156 : vector<2x1xf32>
    %1159 = math.exp %1158 : vector<2x1xf32>
    %1160 = math.log1p %1159 : vector<2x1xf32>
    %1161 = arith.addf %1150, %1160 : vector<2x1xf32>
    %1162 = arith.select %1153, %1155, %1161 : vector<2x1xi1>, vector<2x1xf32>
    %1163 = tpu.iota {dimensions = array<i32: 1>} : vector<2x128xi32>
    %cst_230 = arith.constant 0.000000e+00 : f32
    %1164 = vector.broadcast %cst_230 : f32 to vector<2x128xf32>
    %c0_i32 = arith.constant 0 : i32
    %1165 = vector.broadcast %c0_i32 : i32 to vector<2x128xi32>
    %1166 = arith.cmpi eq, %1163, %1165 : vector<2x128xi32>
    %1167 = vector.shape_cast %1147 : vector<2x1xf32> to vector<2x1xf32>
    %1168 = vector.broadcast %1167 : vector<2x1xf32> to vector<2x128xf32>
    %1169 = arith.select %1166, %1168, %1164 : vector<2x128xi1>, vector<2x128xf32>
    %c1_i32 = arith.constant 1 : i32
    %1170 = vector.broadcast %c1_i32 : i32 to vector<2x128xi32>
    %1171 = arith.cmpi eq, %1163, %1170 : vector<2x128xi32>
    %1172 = vector.shape_cast %1162 : vector<2x1xf32> to vector<2x1xf32>
    %1173 = vector.broadcast %1172 : vector<2x1xf32> to vector<2x128xf32>
    %1174 = arith.select %1171, %1173, %1169 : vector<2x128xi1>, vector<2x128xf32>
    %c2_i32 = arith.constant 2 : i32
    %1175 = vector.broadcast %c2_i32 : i32 to vector<2x128xi32>
    %1176 = arith.cmpi eq, %1163, %1175 : vector<2x128xi32>
    %1177 = vector.shape_cast %779 : vector<2x1xf32> to vector<2x1xf32>
    %1178 = vector.broadcast %1177 : vector<2x1xf32> to vector<2x128xf32>
    %1179 = arith.select %1176, %1178, %1174 : vector<2x128xi1>, vector<2x128xf32>
    %c3_i32 = arith.constant 3 : i32
    %1180 = vector.broadcast %c3_i32 : i32 to vector<2x128xi32>
    %1181 = arith.cmpi eq, %1163, %1180 : vector<2x128xi32>
    %1182 = vector.shape_cast %417 : vector<1x1xf32> to vector<1x1xf32>
    %1183 = vector.broadcast %1182 : vector<1x1xf32> to vector<2x128xf32>
    %1184 = arith.select %1181, %1183, %1179 : vector<2x128xi1>, vector<2x128xf32>
    %c0_231 = arith.constant 0 : index
    %c0_232 = arith.constant 0 : index
    %1185 = vector.load %arg32[%c0_231, %c0_232] : memref<2x128xf32, #tpu.memory_space<vmem>>, vector<2x128xf32>
    tpu.vector_store %arg32[%c0_231, %c0_232], %1184 {strides = array<i32>} : memref<2x128xf32, #tpu.memory_space<vmem>>, vector<2x128xf32>,
    return
  }
}

</mosaic_0001>

<bundles_post_ra>
// kernel: gru_forward.3
= control target key start
LH: loop header
LB: loop body
LE: loop exit
PB: predicated region body
PF: predicated region fallthrough
CT: control target
= control target key end

     0   :  { %v7639_v0 = vmov 0.0|0.0   ;;  %s7640_s3 = smov 7   ;;  %s7641_s7 = smov 6   ;;  %vm7642_vm0 = vmmov 0   ;;  %v7643_v1 = vmov 0.0   ;;  %vm151_vm1 = vcmask 1045504   ;;  %s8715_s0 = inlined_call_operand.smem [shape: u32[33], index: -1, kind: input, shape index: {}] }
   0x1   :  { %6963 = vmatprep.subr.bf16.mxu1 %v7639_v0  ;;  %s5878_s6 = sld [smem:[%s8715_s0 + %s7640_s3]]   ;;  %6333 = vmatprep.mubr.msk.f32.mxu1 %vm7642_vm0, %v7643_v1  ;;  %vm144_vm2 = vcmask 48128   ;;  %s7644_s14 = smov 8   ;;  %vm241_vm3 = vcmask 261120   ;;  %vm972_vm4 = vcmask 1041408   ;;  %vm974_vm5 = vcmask 1043456  }
   0x2   :  { %s5877_s10 = sld [smem:[%s8715_s0 + %s7641_s7]]   ;;  %s7645_s18 = smov 9   ;;  %vm1839_vm6 = vcmask 1044480   ;;  %vm1835_vm7 = vcmask 39936   ;;  %vm2393_vm9 = vcmask 254976  }
   0x3   :  { %s7694_s13 = sld [smem:[%s8715_s0]]   ;;  %s7646_s22 = smov 64  }
   0x4   :  { %s5879_s17 = sld [smem:[%s8715_s0 + %s7644_s14]]   ;;  %s7647_s23 = smov 96  }
   0x5   :  { %s7732_s21 = sld [smem:[%s8715_s0 + %s7645_s18]]   ;;  %s7648_s24 = smov 11  }
   0x6   :  { %s5882_s27 = sld [smem:[%s8715_s0 + %s7648_s24]]   ;;  %s7649_s28 = smov 10  }
   0x7   :  { %v230_v2 = vld [vmem:[%s5878_s6] sm:$0xff]  ;;  %v231_v3 = vld [vmem:[%s5878_s6 + $0x8] sm:$0xff]  ;;  %v232_v6 = vld [vmem:[%s5878_s6 + $0x10] sm:$0xff]  ;;  %s5881_s1 = sld [smem:[%s8715_s0 + %s7649_s28]]   ;;  %s7650_s2 = smov 13  }
   0x8   :  { %v136_v4 = vld [vmem:[%s5877_s10] sm:$0x3f]  ;;  %v7698_v5 = vpack.c.bf16 %v231_v3, %v230_v2  ;;  %v233_v7 = vld [vmem:[%s5878_s6 + $0x18] sm:$0xff]  ;;  %s7879_s5 = sld [smem:[%s8715_s0 + %s7650_s2]]   ;;  %s7651_s6 = smov 12  }
   0x9   :  { %6320 = vmatprep.subr.msk.mxu0 %vm151_vm1, %v136_v4  ;;  %v134_v8 = vld [vmem:[%s7694_s13] sm:$0xff]  ;;  %v135_v9 = vld [vmem:[%s7694_s13 + $0x8] sm:$0x3f]  ;;  %v7706_v10 = vpack.c.bf16 %v233_v7, %v232_v6  ;;  %s7896_s9 = sld [smem:[%s8715_s0 + %s7651_s6]]   ;;  %s7653_s10 = smov 1  }
   0xa   :  { %6321 = vmatpush3.msk.msra.mxu0 %vm151_vm1, %v136_v4  ;;  %6322 = vmatprep.mubr.msk.f32.mxu0 %vm144_vm2, %v134_v8  ;;  %v5904_v12 = vld [vmem:[%s5879_s17] ss:$0 sm:$0xff]  ;;  %s5872_s14 = sld [smem:[%s8715_s0 + %s7653_s10]]   ;;  %s7654_s15 = smov 5  }
   0xb   :  { %6965 = vmatpush3.bf16.msra.mxu1 %v7698_v5  ;;  %6323 = vmatmul.mubr.msk.f32.vlgmr.msra.gmra.mrb[0].mxu0 %vm144_vm2, %v135_v9  ;;  %v7737_v15 = vld [vmem:[%s7732_s21] ss:$0 sm:$0xff]  ;;  %s5876_s18 = sld [smem:[%s8715_s0 + %s7654_s15]]   ;;  %s7656_s19 = smov 2  }
   0xc   :  { %6966 = vmatprep.subr.bf16.mxu1 %v7639_v0  ;;  %6969 = vmatprep.subr.bf16.mxu0 %v7639_v0  ;;  %s5873_s25 = sld [smem:[%s8715_s0 + %s7656_s19]]   ;;  %s7657_s26 = smov 32  }
   0xd   :  { %6971 = vmatpush3.bf16.msra.mxu0 %v7698_v5  ;;  %6344 = vmatprep.mubr.msk.f32.mxu0 %vm7642_vm0, %v7643_v1  ;;  %s7660_s6 = smov 24   ;;  %s7661_s11 = smov 26  }
   0xe   :  { %6972 = vmatprep.subr.bf16.mxu0 %v7639_v0  ;;  %s8036_s10 = sld [smem:[%s8715_s0 + %s7660_s6]]   ;;  %s7662_s16 = smov 23  }
   0xf   :  { %6968 = vmatpush3.bf16.msra.mxu1 %v7706_v10  ;;  %s8074_s15 = sld [smem:[%s8715_s0 + %s7661_s11]]   ;;  %s7663_s20 = smov 28  }
  0x10   :  { %6975 = vmatprep.subr.bf16.mxu1 %v7639_v0  ;;  %s5894_s19 = sld [smem:[%s8715_s0 + %s7662_s16]]   ;;  %s7664_s28 = smov 25  }
  0x11   :  { %6974 = vmatpush3.bf16.msra.mxu0 %v7706_v10  ;;  %s5896_s2 = sld [smem:[%s8715_s0 + %s7664_s28]]   ;;  %s7665_s3 = smov 27  }
  0x12   :  { %6334 = vmatmul.mubr.f32.vlgmr.msra.gmra.mrb[0].mxu1 %v7643_v1  ;;  %6981 = vmatprep.subr.bf16.mxu0 %v7639_v0  ;;  %s5898_s7 = sld [smem:[%s8715_s0 + %s7665_s3]]   ;;  %s7666_s8 = smov 4  }
  0x13   :  { %6977 = vmatpush3.bf16.msra.mxu1 %v7698_v5  ;;  %6355 = vmatprep.mubr.msk.f32.mxu1 %vm7642_vm0, %v7643_v1  ;;  %s5875_s12 = sld [smem:[%s8715_s0 + %s7666_s8]]   ;;  %s7672_s6 = smov 17  }
  0x14   :  { %6978 = vmatprep.subr.bf16.mxu1 %v7639_v0  ;;  %s7673_s11 = smov 31   ;;  %s7674_s16 = smov 19  }
  0x15   :  { %s7676_s24 = smov 21   ;;  %s7677_s29 = smov 20  }
  0x16   :  { %s5892_s28 = sld [smem:[%s8715_s0 + %s7676_s24]]  }
  0x17   :  { %6980 = vmatpush3.bf16.msra.mxu1 %v7706_v10  ;;  %s5903_s3 = sld [smem:[%s8715_s0 + %s7657_s26]]  }
  0x18   :  { %6987 = vmatprep.subr.bf16.mxu1 %v7639_v0 }
  0xde   :  { %v6324_v11 = vpop.f32.mrb[0].mxu0 }
  0xdf   :  { %v7734_v13 = vadd.f32 %v6324_v11, %v5904_v12  ;;  %v221_v14 = vpop.f32.mrb[1].mxu0 }
  0xe0   :  { %v7741_v19 = vadd.f32 %v5904_v12, %v221_v14 }
  0xe5   :  { %v311_v16 = vpop.f32.mrb[0].mxu1 }
  0xe6   :  { %v312_v17 = vadd.f32 %v7737_v15, %v311_v16  ;;  %v6335_v18 = vpop.f32.mrb[1].mxu1 }
  0xe8   :  { %323 = vrot.lane.b32.xlu0 %v312_v17, %s7646_s22  ;;  %v315_v20 = vadd.f32 %v312_v17, %v7741_v19 }
  0xea   :  { %v5909_v21 = vmul.f32 -1.442695, %v315_v20 }
  0xec   :  { %7376 = vpow2.f32 %v5909_v21 }
  0xf6   :  { %v7377_v22 = vpop.eup %7376 }
  0xf7   :  { %v319_v23 = vadd.f32 1.0, %v7377_v22 }
  0xf9   :  { %7378 = vrcp.f32 %v319_v23 }
 0x103   :  { %v7379_v24 = vpop.eup %7378 }
 0x104   :  { %v333_v30 = vsub.f32 1.0, %v7379_v24  ;;  %v339_v32 = vmul.f32 0.0, %v7379_v24 }
 0x15a   :  { %v324_v25 = vpop.permute.xlu0 %323 }
 0x15b   :  { %v326_v26 = vmul.f32 %v7379_v24, %v324_v25 }
 0x15d   :  { %328 = vrot.lane.b32.xlu0 %v326_v26, %s7646_s22 }
 0x1cf   :  { %v329_v27 = vpop.permute.xlu0 %328 }
 0x1d0   :  { %v331_v28 = vadd.f32 %v329_v27, %v7741_v19 }
 0x1d2   :  { %7380 = vtanh.f32 %v331_v28 }
 0x1dc   :  { %v7381_v29 = vpop.eup %7380 }
 0x1dd   :  { %335 = vrot.lane.b32.xlu1 %v7381_v29, %s7647_s23 }
 0x24f   :  { %v336_v31 = vpop.permute.xlu1 %335 }
 0x250   :  { %v338_v33 = vmul.f32 %v336_v31, %v333_v30 }
 0x252   :  { %v7747_v34 = vadd.f32 %v339_v32, %v338_v33 }
 0x254   :  { %342 = vrot.lane.b32.xlu1 %v7747_v34, %s7647_s23  ;;  %v442_v51 = vrot.slane %v7747_v34, 6 }
 0x2c6   :  { %v343_v35 = vpop.permute.xlu1 %342 }
 0x2c7   :  { %6345 = vmatmul.mubr.msk.f32.vlgmr.msra.gmra.mrb[2].mxu0 %vm241_vm3, %v343_v35 }
 0x2c8   :  { %6983 = vmatpush3.bf16.msra.mxu0 %v7698_v5  ;;  %6366 = vmatprep.mubr.msk.f32.mxu0 %vm7642_vm0, %v7643_v1 }
 0x2c9   :  { %6984 = vmatprep.subr.bf16.mxu0 %v7639_v0 }
 0x2cc   :  { %6986 = vmatpush3.bf16.msra.mxu0 %v7706_v10 }
 0x2cd   :  { %6993 = vmatprep.subr.bf16.mxu0 %v7639_v0 }
 0x39a   :  { %v412_v36 = vpop.f32.mrb[2].mxu0 }
 0x39b   :  { %v413_v37 = vadd.f32 %v7737_v15, %v412_v36  ;;  %v6346_v38 = vpop.f32.mrb[3].mxu0 }
 0x39d   :  { %v417_v39 = vrot.slane %v413_v37, 6 }
 0x39f   :  { %426 = vrot.lane.b32.xlu0 %v417_v39, %s7646_s22  ;;  %v419_v40 = vadd.f32 %v417_v39, %v7741_v19 }
 0x3a1   :  { %v5911_v41 = vmul.f32 -1.442695, %v419_v40 }
 0x3a3   :  { %7382 = vpow2.f32 %v5911_v41 }
 0x3ad   :  { %v7383_v42 = vpop.eup %7382 }
 0x3ae   :  { %v423_v43 = vadd.f32 1.0, %v7383_v42 }
 0x3b0   :  { %7384 = vrcp.f32 %v423_v43 }
 0x3ba   :  { %v7385_v44 = vpop.eup %7384 }
 0x3bb   :  { %v436_v50 = vsub.f32 1.0, %v7385_v44  ;;  %v444_v54 = vmul.f32 %v7385_v44, %v442_v51 }
 0x411   :  { %v427_v45 = vpop.permute.xlu0 %426 }
 0x412   :  { %v429_v46 = vmul.f32 %v7385_v44, %v427_v45 }
 0x414   :  { %431 = vrot.lane.b32.xlu1 %v429_v46, %s7646_s22 }
 0x486   :  { %v432_v47 = vpop.permute.xlu1 %431 }
 0x487   :  { %v434_v48 = vadd.f32 %v432_v47, %v7741_v19 }
 0x489   :  { %7386 = vtanh.f32 %v434_v48 }
 0x493   :  { %v7387_v49 = vpop.eup %7386 }
 0x494   :  { %438 = vrot.lane.b32.xlu0 %v7387_v49, %s7647_s23 }
 0x506   :  { %v439_v52 = vpop.permute.xlu0 %438 }
 0x507   :  { %v441_v53 = vmul.f32 %v439_v52, %v436_v50 }
 0x509   :  { %v445_v55 = vadd.f32 %v444_v54, %v441_v53 }
 0x50b   :  { %v447_v56 = vrot.slane %v445_v55, 2  ;;  %v548_v14 = vrot.slane %v445_v55, 6  ;;  %v973_v21 = vsel %vm972_vm4, %v7747_v34, %v445_v55 }
 0x50d   :  { %448 = vrot.lane.b32.xlu1 %v447_v56, %s7647_s23 }
 0x57f   :  { %v449_v57 = vpop.permute.xlu1 %448 }
 0x580   :  { %6356 = vmatmul.mubr.msk.f32.vlgmr.msra.gmra.mrb[2].mxu1 %vm241_vm3, %v449_v57 }
 0x581   :  { %6989 = vmatpush3.bf16.msra.mxu1 %v7698_v5  ;;  %6377 = vmatprep.mubr.msk.f32.mxu1 %vm7642_vm0, %v7643_v1 }
 0x582   :  { %6990 = vmatprep.subr.bf16.mxu1 %v7639_v0 }
 0x585   :  { %6992 = vmatpush3.bf16.msra.mxu1 %v7706_v10 }
 0x586   :  { %6999 = vmatprep.subr.bf16.mxu1 %v7639_v0 }
 0x653   :  { %v518_v58 = vpop.f32.mrb[2].mxu1 }
 0x654   :  { %v519_v59 = vadd.f32 %v7737_v15, %v518_v58  ;;  %v6357_v60 = vpop.f32.mrb[3].mxu1 }
 0x656   :  { %v523_v61 = vrot.slane %v519_v59, 4 }
 0x658   :  { %532 = vrot.lane.b32.xlu0 %v523_v61, %s7646_s22  ;;  %v525_v62 = vadd.f32 %v523_v61, %v7741_v19 }
 0x65a   :  { %v5913_v63 = vmul.f32 -1.442695, %v525_v62 }
 0x65c   :  { %7388 = vpow2.f32 %v5913_v63 }
 0x666   :  { %v7389_v2 = vpop.eup %7388 }
 0x667   :  { %v529_v3 = vadd.f32 1.0, %v7389_v2 }
 0x669   :  { %7390 = vrcp.f32 %v529_v3 }
 0x673   :  { %v7391_v4 = vpop.eup %7390 }
 0x674   :  { %v542_v12 = vsub.f32 1.0, %v7391_v4  ;;  %v550_v17 = vmul.f32 %v7391_v4, %v548_v14 }
 0x6ca   :  { %v533_v6 = vpop.permute.xlu0 %532 }
 0x6cb   :  { %v535_v7 = vmul.f32 %v7391_v4, %v533_v6 }
 0x6cd   :  { %537 = vrot.lane.b32.xlu1 %v535_v7, %s7646_s22 }
 0x73f   :  { %v538_v8 = vpop.permute.xlu1 %537 }
 0x740   :  { %v540_v9 = vadd.f32 %v538_v8, %v7741_v19 }
 0x742   :  { %7392 = vtanh.f32 %v540_v9 }
 0x74c   :  { %v7393_v11 = vpop.eup %7392 }
 0x74d   :  { %544 = vrot.lane.b32.xlu0 %v7393_v11, %s7647_s23 }
 0x7bf   :  { %v545_v16 = vpop.permute.xlu0 %544 }
 0x7c0   :  { %v547_v18 = vmul.f32 %v545_v16, %v542_v12 }
 0x7c2   :  { %v551_v20 = vadd.f32 %v550_v17, %v547_v18 }
 0x7c4   :  { %v553_v22 = vrot.slane %v551_v20, 4  ;;  %v975_v23 = vsel %vm974_vm5, %v973_v21, %v551_v20  ;;  %v654_v40 = vrot.slane %v551_v20, 6 }
 0x7c6   :  { %554 = vrot.lane.b32.xlu1 %v553_v22, %s7647_s23 }
 0x838   :  { %v555_v24 = vpop.permute.xlu1 %554 }
 0x839   :  { %6367 = vmatmul.mubr.msk.f32.vlgmr.msra.gmra.mrb[4].mxu0 %vm241_vm3, %v555_v24 }
 0x83a   :  { %6995 = vmatpush3.bf16.msra.mxu0 %v7698_v5  ;;  %6388 = vmatprep.mubr.msk.f32.mxu0 %vm7642_vm0, %v7643_v1 }
 0x83b   :  { %6996 = vmatprep.subr.bf16.mxu0 %v7639_v0 }
 0x83e   :  { %6998 = vmatpush3.bf16.msra.mxu0 %v7706_v10 }
 0x90c   :  { %v624_v25 = vpop.f32.mrb[4].mxu0 }
 0x90d   :  { %v625_v26 = vadd.f32 %v7737_v15, %v624_v25  ;;  %v6368_v27 = vpop.f32.mrb[5].mxu0 }
 0x90f   :  { %v629_v28 = vrot.slane %v625_v26, 2 }
 0x911   :  { %638 = vrot.lane.b32.xlu0 %v629_v28, %s7646_s22  ;;  %v631_v29 = vadd.f32 %v629_v28, %v7741_v19 }
 0x913   :  { %v5915_v30 = vmul.f32 -1.442695, %v631_v29 }
 0x915   :  { %7394 = vpow2.f32 %v5915_v30 }
 0x91f   :  { %v7395_v31 = vpop.eup %7394 }
 0x920   :  { %v635_v32 = vadd.f32 1.0, %v7395_v31 }
 0x922   :  { %7396 = vrcp.f32 %v635_v32 }
 0x92c   :  { %v7397_v33 = vpop.eup %7396 }
 0x92d   :  { %v648_v39 = vsub.f32 1.0, %v7397_v33  ;;  %v656_v42 = vmul.f32 %v7397_v33, %v654_v40 }
 0x983   :  { %v639_v34 = vpop.permute.xlu0 %638 }
 0x984   :  { %v641_v35 = vmul.f32 %v7397_v33, %v639_v34 }
 0x986   :  { %643 = vrot.lane.b32.xlu1 %v641_v35, %s7646_s22 }
 0x9f8   :  { %v644_v36 = vpop.permute.xlu1 %643 }
 0x9f9   :  { %v646_v37 = vadd.f32 %v644_v36, %v7741_v19 }
 0x9fb   :  { %7398 = vtanh.f32 %v646_v37 }
 0xa05   :  { %v7399_v38 = vpop.eup %7398 }
 0xa06   :  { %650 = vrot.lane.b32.xlu0 %v7399_v38, %s7647_s23 }
 0xa78   :  { %v651_v41 = vpop.permute.xlu0 %650 }
 0xa79   :  { %v653_v43 = vmul.f32 %v651_v41, %v648_v39 }
 0xa7b   :  { %v657_v44 = vadd.f32 %v656_v42, %v653_v43 }
 0xa7d   :  { %v659_v45 = vrot.slane %v657_v44, 6  ;;  %v7796_v46 = vsel %vm151_vm1, %v975_v23, %v657_v44 }
 0xa7f   :  { %660 = vrot.lane.b32.xlu1 %v659_v45, %s7647_s23 }
 0xaf1   :  { %v661_v47 = vpop.permute.xlu1 %660 }
 0xaf2   :  { %6378 = vmatmul.mubr.msk.f32.vlgmr.msra.gmra.mrb[4].mxu1 %vm241_vm3, %v661_v47  ;;  %v1075_v47 = vld [vmem:[%s5882_s27] sm:$0xff] }
 0xaf3   :  { %7001 = vmatpush3.bf16.msra.mxu1 %v7698_v5  ;;  %6399 = vmatprep.mubr.msk.f32.mxu1 %vm7642_vm0, %v7643_v1 }
 0xaf4   :  { %7002 = vmatprep.subr.bf16.mxu1 %v7639_v0 }
 0xaf7   :  { %7004 = vmatpush3.bf16.msra.mxu1 %v7706_v10 }
 0xaf8   :  { %7013 = vmatprep.subr.bf16.mxu1 %v7639_v0 }
 0xbc5   :  { %v730_v48 = vpop.f32.mrb[4].mxu1 }
 0xbc6   :  { %v731_v49 = vadd.f32 %v7737_v15, %v730_v48  ;;  %v6379_v50 = vpop.f32.mrb[5].mxu1  ;;  %v1077_v48 = vld [vmem:[%s5882_s27 + $0x10] sm:$0xff] }
 0xbc7   :  { %v1078_v50 = vld [vmem:[%s5882_s27 + $0x18] sm:$0xff] }
 0xbc8   :  { %742 = vrot.lane.b32.xlu0 %v731_v49, %s7646_s22  ;;  %v734_v51 = vadd.f32 %v731_v49, %v7734_v13 }
 0xbca   :  { %v5917_v52 = vmul.f32 -1.442695, %v734_v51  ;;  %v979_v51 = vld [vmem:[%s5881_s1] sm:$0xff] }
 0xbcc   :  { %7400 = vpow2.f32 %v5917_v52  ;;  %v980_v52 = vld [vmem:[%s5881_s1 + $0x8] sm:$0xff] }
 0xbd6   :  { %v7401_v53 = vpop.eup %7400 }
 0xbd7   :  { %v738_v54 = vadd.f32 1.0, %v7401_v53  ;;  %v7848_v53 = vpack.c.bf16 %v980_v52, %v979_v51 }
 0xbd9   :  { %7402 = vrcp.f32 %v738_v54  ;;  %v981_v54 = vld [vmem:[%s5881_s1 + $0x10] sm:$0xff]  ;;  %7006 = vmatprep.subr.bf16.mxu0 %v7848_v53 }
 0xbe3   :  { %v7403_v55 = vpop.eup %7402 }
 0xbe4   :  { %v752_v61 = vsub.f32 1.0, %v7403_v55  ;;  %v759_v63 = vmul.f32 %v7403_v55, %v659_v45 }
 0xc3a   :  { %v743_v56 = vpop.permute.xlu0 %742 }
 0xc3b   :  { %v745_v57 = vmul.f32 %v7403_v55, %v743_v56  ;;  %v982_v55 = vld [vmem:[%s5881_s1 + $0x18] sm:$0xff]  ;;  %v7851_v56 = vpack.c.bf16 %v1078_v50, %v1077_v48  ;;  %s7659_s1 = smov 22  }
 0xc3c   :  { %s5893_s4 = sld [smem:[%s8715_s0 + %s7659_s1]]  }
 0xc3d   :  { %747 = vrot.lane.b32.xlu1 %v745_v57, %s7646_s22  ;;  %v7853_v57 = vpack.c.bf16 %v982_v55, %v981_v54 }
 0xcaf   :  { %v748_v58 = vpop.permute.xlu1 %747 }
 0xcb0   :  { %v750_v59 = vadd.f32 %v748_v58, %v7734_v13 }
 0xcb2   :  { %7404 = vtanh.f32 %v750_v59 }
 0xcbc   :  { %v7405_v60 = vpop.eup %7404 }
 0xcbd   :  { %754 = vrot.lane.b32.xlu0 %v7405_v60, %s7647_s23 }
 0xd2f   :  { %v755_v62 = vpop.permute.xlu0 %754 }
 0xd30   :  { %v757_v2 = vmul.f32 %v755_v62, %v752_v61 }
 0xd32   :  { %v7812_v3 = vadd.f32 %v759_v63, %v757_v2 }
 0xd34   :  { %762 = vrot.lane.b32.xlu1 %v7812_v3, %s7647_s23  ;;  %v862_v25 = vrot.slane %v7812_v3, 6 }
 0xda6   :  { %v763_v4 = vpop.permute.xlu1 %762 }
 0xda7   :  { %6389 = vmatmul.mubr.msk.f32.vlgmr.msra.gmra.mrb[6].mxu0 %vm241_vm3, %v763_v4 }
 0xda8   :  { %7008 = vmatpush3.bf16.msra.mxu0 %v7848_v53 }
 0xda9   :  { %7010 = vmatprep.subr.bf16.mxu0 %v7853_v57 }
 0xdac   :  { %7012 = vmatpush3.bf16.msra.mxu0 %v7853_v57 }
 0xdad   :  { %7019 = vmatprep.subr.bf16.mxu0 %v7639_v0 }
 0xe7a   :  { %v832_v6 = vpop.f32.mrb[6].mxu0 }
 0xe7b   :  { %v833_v7 = vadd.f32 %v7737_v15, %v832_v6  ;;  %v6390_v8 = vpop.f32.mrb[7].mxu0  ;;  %v7882_v6 = vld [vmem:[%s7879_s5] ss:$0 sm:$0xff] }
 0xe7d   :  { %v837_v9 = vrot.slane %v833_v7, 6 }
 0xe7f   :  { %846 = vrot.lane.b32.xlu0 %v837_v9, %s7646_s22  ;;  %v839_v11 = vadd.f32 %v837_v9, %v7734_v13 }
 0xe81   :  { %v5919_v12 = vmul.f32 -1.442695, %v839_v11  ;;  %v7899_v11 = vld [vmem:[%s7896_s9] ss:$0 sm:$0xff] }
 0xe83   :  { %7406 = vpow2.f32 %v5919_v12 }
 0xe8d   :  { %v7407_v14 = vpop.eup %7406 }
 0xe8e   :  { %v843_v16 = vadd.f32 1.0, %v7407_v14 }
 0xe90   :  { %7408 = vrcp.f32 %v843_v16 }
 0xe9a   :  { %v7409_v17 = vpop.eup %7408 }
 0xe9b   :  { %v856_v24 = vsub.f32 1.0, %v7409_v17  ;;  %v864_v28 = vmul.f32 %v7409_v17, %v862_v25 }
 0xef1   :  { %v847_v18 = vpop.permute.xlu0 %846 }
 0xef2   :  { %v849_v20 = vmul.f32 %v7409_v17, %v847_v18 }
 0xef4   :  { %851 = vrot.lane.b32.xlu1 %v849_v20, %s7646_s22 }
 0xf66   :  { %v852_v21 = vpop.permute.xlu1 %851 }
 0xf67   :  { %v854_v22 = vadd.f32 %v852_v21, %v7734_v13 }
 0xf69   :  { %7410 = vtanh.f32 %v854_v22 }
 0xf73   :  { %v7411_v23 = vpop.eup %7410 }
 0xf74   :  { %858 = vrot.lane.b32.xlu0 %v7411_v23, %s7647_s23 }
 0xfe6   :  { %v859_v26 = vpop.permute.xlu0 %858 }
 0xfe7   :  { %v861_v27 = vmul.f32 %v859_v26, %v856_v24 }
 0xfe9   :  { %v7824_v29 = vadd.f32 %v864_v28, %v861_v27 }
 0xfeb   :  { %v867_v30 = vrot.slane %v7824_v29, 2  ;;  %v968_v59 = vrot.slane %v7824_v29, 6  ;;  %v977_v2 = vsel %vm972_vm4, %v7812_v3, %v7824_v29 }
 0xfed   :  { %868 = vrot.lane.b32.xlu1 %v867_v30, %s7647_s23 }
0x105f   :  { %v869_v31 = vpop.permute.xlu1 %868 }
0x1060   :  { %6400 = vmatmul.mubr.msk.f32.vlgmr.msra.gmra.mrb[6].mxu1 %vm241_vm3, %v869_v31 }
0x1061   :  { %6421 = vmatprep.mubr.msk.f32.mxu1 %vm7642_vm0, %v7643_v1 }
0x1133   :  { %v938_v32 = vpop.f32.mrb[6].mxu1 }
0x1134   :  { %v939_v33 = vadd.f32 %v7737_v15, %v938_v32  ;;  %v6401_v34 = vpop.f32.mrb[7].mxu1 }
0x1136   :  { %v943_v35 = vrot.slane %v939_v33, 4 }
0x1138   :  { %952 = vrot.lane.b32.xlu0 %v943_v35, %s7646_s22  ;;  %v945_v36 = vadd.f32 %v943_v35, %v7734_v13 }
0x113a   :  { %v5921_v37 = vmul.f32 -1.442695, %v945_v36 }
0x113c   :  { %7412 = vpow2.f32 %v5921_v37 }
0x1146   :  { %v7413_v38 = vpop.eup %7412 }
0x1147   :  { %v949_v39 = vadd.f32 1.0, %v7413_v38 }
0x1149   :  { %7414 = vrcp.f32 %v949_v39 }
0x1153   :  { %v7415_v40 = vpop.eup %7414 }
0x1154   :  { %v962_v58 = vsub.f32 1.0, %v7415_v40  ;;  %v970_v61 = vmul.f32 %v7415_v40, %v968_v59 }
0x11aa   :  { %v953_v41 = vpop.permute.xlu0 %952 }
0x11ab   :  { %v955_v42 = vmul.f32 %v7415_v40, %v953_v41 }
0x11ad   :  { %957 = vrot.lane.b32.xlu1 %v955_v42, %s7646_s22 }
0x11b1   :  { %992 = vrot.lane.b32.xlu1 %v7796_v46, %s7647_s23  ;;  %v1076_v46 = vld [vmem:[%s5882_s27 + $0x8] sm:$0xff]  ;;  %s7658_s27 = smov 3  }
0x11b2   :  { %v7846_v49 = vpack.c.bf16 %v1076_v46, %v1075_v47  ;;  %s8021_s30 = sld [smem:[%s8715_s0 + %s7658_s27]]  }
0x11b3   :  { %s8109_s27 = sld [smem:[%s8715_s0 + %s7663_s20]]  }
0x11b4   :  { %7015 = vmatpush3.bf16.msra.mxu1 %v7846_v49 }
0x11b5   :  { %7016 = vmatprep.subr.bf16.mxu1 %v7639_v0 }
0x11b8   :  { %7018 = vmatpush3.bf16.msra.mxu1 %v7851_v56 }
0x11b9   :  { %7025 = vmatprep.subr.bf16.mxu1 %v7639_v0 }
0x11bb   :  { %6422 = vmatmul.mubr.f32.vlgmr.msra.gmra.mrb[8].mxu1 %v7643_v1 }
0x11bc   :  { %7027 = vmatpush3.bf16.msra.mxu1 %v7846_v49  ;;  %6443 = vmatprep.mubr.msk.f32.mxu1 %vm7642_vm0, %v7643_v1 }
0x11bd   :  { %7028 = vmatprep.subr.bf16.mxu1 %v7639_v0 }
0x11c0   :  { %7030 = vmatpush3.bf16.msra.mxu1 %v7851_v56 }
0x11c1   :  { %7037 = vmatprep.subr.bf16.mxu1 %v7639_v0 }
0x121f   :  { %v958_v15 = vpop.permute.xlu1 %957 }
0x1220   :  { %v960_v43 = vadd.f32 %v958_v15, %v7734_v13 }
0x1222   :  { %7416 = vtanh.f32 %v960_v43 }
0x1223   :  { %v993_v44 = vpop.permute.xlu1 %992 }
0x1224   :  { %6410 = vmatprep.mubr.msk.f32.mxu0 %vm241_vm3, %v993_v44 }
0x122c   :  { %v7417_v45 = vpop.eup %7416 }
0x122d   :  { %964 = vrot.lane.b32.xlu0 %v7417_v45, %s7647_s23 }
0x128e   :  { %v1152_v7 = vpop.f32.mrb[8].mxu1 }
0x128f   :  { %v1153_v8 = vadd.f32 %v7882_v6, %v1152_v7  ;;  %v6423_v9 = vpop.f32.mrb[9].mxu1 }
0x1291   :  { %1164 = vrot.lane.b32.xlu1 %v1153_v8, %s7646_s22 }
0x129f   :  { %v965_v60 = vpop.permute.xlu0 %964 }
0x12a0   :  { %v967_v62 = vmul.f32 %v965_v60, %v962_v58 }
0x12a2   :  { %v971_v63 = vadd.f32 %v970_v61, %v967_v62 }
0x12a4   :  { %v978_v4 = vsel %vm974_vm5, %v977_v2, %v971_v63 }
0x12a5   :  { %994 = vrot.lane.b32.xlu0 %v978_v4, %s7647_s23 }
0x1303   :  { %v1165_v22 = vpop.permute.xlu1 %1164 }
0x1317   :  { %v995_v3 = vpop.permute.xlu0 %994 }
0x1318   :  { %6411 = vmatmul.mubr.msk.f32.vlgmr.msra.gmra.mrb[8].mxu0 %vm241_vm3, %v995_v3 }
0x1319   :  { %7021 = vmatpush3.bf16.msra.mxu0 %v7846_v49  ;;  %6432 = vmatprep.mubr.msk.f32.mxu0 %vm7642_vm0, %v7643_v1 }
0x131a   :  { %7022 = vmatprep.subr.bf16.mxu0 %v7639_v0 }
0x131d   :  { %7024 = vmatpush3.bf16.msra.mxu0 %v7851_v56 }
0x131e   :  { %7031 = vmatprep.subr.bf16.mxu0 %v7639_v0 }
0x13eb   :  { %v7901_v12 = vpop.f32.mrb[8].mxu0 }
0x13ec   :  { %v1066_v14 = vpop.f32.mrb[9].mxu0 }
0x13ed   :  { %v7904_v16 = vadd.f32 %v7899_v11, %v1066_v14 }
0x13ef   :  { %v1156_v17 = vadd.f32 %v1153_v8, %v7904_v16 }
0x13f1   :  { %v5926_v18 = vmul.f32 -1.442695, %v1156_v17 }
0x13f3   :  { %7418 = vpow2.f32 %v5926_v18 }
0x13fd   :  { %v7419_v20 = vpop.eup %7418 }
0x13fe   :  { %v1160_v21 = vadd.f32 1.0, %v7419_v20 }
0x1400   :  { %7420 = vrcp.f32 %v1160_v21 }
0x140a   :  { %v7421_v23 = vpop.eup %7420 }
0x140b   :  { %v1167_v24 = vmul.f32 %v7421_v23, %v1165_v22  ;;  %v1174_v28 = vsub.f32 1.0, %v7421_v23  ;;  %v1180_v30 = vmul.f32 0.0, %v7421_v23 }
0x140d   :  { %1169 = vrot.lane.b32.xlu0 %v1167_v24, %s7646_s22 }
0x147f   :  { %v1170_v25 = vpop.permute.xlu0 %1169 }
0x1480   :  { %v1172_v26 = vadd.f32 %v1170_v25, %v7904_v16 }
0x1482   :  { %7422 = vtanh.f32 %v1172_v26 }
0x148c   :  { %v7423_v27 = vpop.eup %7422 }
0x148d   :  { %1176 = vrot.lane.b32.xlu1 %v7423_v27, %s7647_s23 }
0x14ff   :  { %v1177_v29 = vpop.permute.xlu1 %1176 }
0x1500   :  { %v1179_v31 = vmul.f32 %v1177_v29, %v1174_v28 }
0x1502   :  { %v1181_v32 = vadd.f32 %v1180_v30, %v1179_v31 }
0x1504   :  { %1183 = vrot.lane.b32.xlu0 %v1181_v32, %s7647_s23  ;;  %v1283_v46 = vrot.slane %v1181_v32, 6 }
0x1576   :  { %v1184_v33 = vpop.permute.xlu0 %1183 }
0x1577   :  { %6433 = vmatmul.mubr.msk.f32.vlgmr.msra.gmra.mrb[10].mxu0 %vm241_vm3, %v1184_v33 }
0x1578   :  { %7033 = vmatpush3.bf16.msra.mxu0 %v7846_v49  ;;  %6454 = vmatprep.mubr.msk.f32.mxu0 %vm7642_vm0, %v7643_v1 }
0x1579   :  { %7034 = vmatprep.subr.bf16.mxu0 %v7639_v0 }
0x157c   :  { %7036 = vmatpush3.bf16.msra.mxu0 %v7851_v56 }
0x157d   :  { %7043 = vmatprep.subr.bf16.mxu0 %v7639_v0 }
0x164a   :  { %v1253_v34 = vpop.f32.mrb[10].mxu0 }
0x164b   :  { %v1254_v35 = vadd.f32 %v7882_v6, %v1253_v34  ;;  %v6434_v36 = vpop.f32.mrb[11].mxu0 }
0x164d   :  { %v1258_v37 = vrot.slane %v1254_v35, 6 }
0x164f   :  { %1267 = vrot.lane.b32.xlu1 %v1258_v37, %s7646_s22  ;;  %v1260_v38 = vadd.f32 %v1258_v37, %v7904_v16 }
0x1651   :  { %v5928_v39 = vmul.f32 -1.442695, %v1260_v38 }
0x1653   :  { %7424 = vpow2.f32 %v5928_v39 }
0x165d   :  { %v7425_v40 = vpop.eup %7424 }
0x165e   :  { %v1264_v41 = vadd.f32 1.0, %v7425_v40 }
0x1660   :  { %7426 = vrcp.f32 %v1264_v41 }
0x166a   :  { %v7427_v42 = vpop.eup %7426 }
0x166b   :  { %v1277_v48 = vsub.f32 1.0, %v7427_v42  ;;  %v1285_v52 = vmul.f32 %v7427_v42, %v1283_v46 }
0x16c1   :  { %v1268_v15 = vpop.permute.xlu1 %1267 }
0x16c2   :  { %v1270_v43 = vmul.f32 %v7427_v42, %v1268_v15 }
0x16c4   :  { %1272 = vrot.lane.b32.xlu0 %v1270_v43, %s7646_s22 }
0x1736   :  { %v1273_v44 = vpop.permute.xlu0 %1272 }
0x1737   :  { %v1275_v45 = vadd.f32 %v1273_v44, %v7904_v16 }
0x1739   :  { %7428 = vtanh.f32 %v1275_v45 }
0x1743   :  { %v7429_v47 = vpop.eup %7428 }
0x1744   :  { %1279 = vrot.lane.b32.xlu1 %v7429_v47, %s7647_s23 }
0x17b6   :  { %v1280_v50 = vpop.permute.xlu1 %1279 }
0x17b7   :  { %v1282_v51 = vmul.f32 %v1280_v50, %v1277_v48 }
0x17b9   :  { %v1286_v54 = vadd.f32 %v1285_v52, %v1282_v51  ;;  %v7963_v52 = vadd.f32 %v7901_v12, %v7899_v11 }
0x17bb   :  { %v1288_v55 = vrot.slane %v1286_v54, 2  ;;  %v1389_v20 = vrot.slane %v1286_v54, 6 }
0x17bd   :  { %1289 = vrot.lane.b32.xlu0 %v1288_v55, %s7647_s23 }
0x182f   :  { %v1290_v58 = vpop.permute.xlu0 %1289 }
0x1830   :  { %6444 = vmatmul.mubr.msk.f32.vlgmr.msra.gmra.mrb[10].mxu1 %vm241_vm3, %v1290_v58 }
0x1831   :  { %7039 = vmatpush3.bf16.msra.mxu1 %v7846_v49  ;;  %6465 = vmatprep.mubr.msk.f32.mxu1 %vm7642_vm0, %v7643_v1 }
0x1832   :  { %7040 = vmatprep.subr.bf16.mxu1 %v7639_v0 }
0x1835   :  { %7042 = vmatpush3.bf16.msra.mxu1 %v7851_v56 }
0x1836   :  { %7049 = vmatprep.subr.bf16.mxu1 %v7639_v0 }
0x1903   :  { %v1359_v59 = vpop.f32.mrb[10].mxu1 }
0x1904   :  { %v1360_v60 = vadd.f32 %v7882_v6, %v1359_v59  ;;  %v6445_v61 = vpop.f32.mrb[11].mxu1 }
0x1906   :  { %v1364_v62 = vrot.slane %v1360_v60, 4 }
0x1908   :  { %1373 = vrot.lane.b32.xlu1 %v1364_v62, %s7646_s22  ;;  %v1366_v63 = vadd.f32 %v1364_v62, %v7904_v16 }
0x190a   :  { %v5930_v2 = vmul.f32 -1.442695, %v1366_v63 }
0x190c   :  { %7430 = vpow2.f32 %v5930_v2 }
0x1916   :  { %v7431_v4 = vpop.eup %7430 }
0x1917   :  { %v1370_v7 = vadd.f32 1.0, %v7431_v4 }
0x1919   :  { %7432 = vrcp.f32 %v1370_v7 }
0x1923   :  { %v7433_v8 = vpop.eup %7432 }
0x1924   :  { %v1383_v21 = vsub.f32 1.0, %v7433_v8  ;;  %v1391_v23 = vmul.f32 %v7433_v8, %v1389_v20 }
0x197a   :  { %v1374_v9 = vpop.permute.xlu1 %1373 }
0x197b   :  { %v1376_v3 = vmul.f32 %v7433_v8, %v1374_v9 }
0x197d   :  { %1378 = vrot.lane.b32.xlu0 %v1376_v3, %s7646_s22 }
0x19ef   :  { %v1379_v14 = vpop.permute.xlu0 %1378 }
0x19f0   :  { %v1381_v17 = vadd.f32 %v1379_v14, %v7904_v16 }
0x19f2   :  { %7434 = vtanh.f32 %v1381_v17 }
0x19fc   :  { %v7435_v18 = vpop.eup %7434 }
0x19fd   :  { %1385 = vrot.lane.b32.xlu1 %v7435_v18, %s7647_s23 }
0x1a6f   :  { %v1386_v22 = vpop.permute.xlu1 %1385 }
0x1a70   :  { %v1388_v24 = vmul.f32 %v1386_v22, %v1383_v21 }
0x1a72   :  { %v1392_v25 = vadd.f32 %v1391_v23, %v1388_v24 }
0x1a74   :  { %v1394_v26 = vrot.slane %v1392_v25, 4  ;;  %v1495_v42 = vrot.slane %v1392_v25, 6 }
0x1a76   :  { %1395 = vrot.lane.b32.xlu0 %v1394_v26, %s7647_s23 }
0x1ae8   :  { %v1396_v27 = vpop.permute.xlu0 %1395 }
0x1ae9   :  { %6455 = vmatmul.mubr.msk.f32.vlgmr.msra.gmra.mrb[12].mxu0 %vm241_vm3, %v1396_v27 }
0x1aea   :  { %7045 = vmatpush3.bf16.msra.mxu0 %v7846_v49  ;;  %6476 = vmatprep.mubr.msk.f32.mxu0 %vm7642_vm0, %v7643_v1 }
0x1aeb   :  { %7046 = vmatprep.subr.bf16.mxu0 %v7639_v0 }
0x1aee   :  { %7048 = vmatpush3.bf16.msra.mxu0 %v7851_v56 }
0x1bbc   :  { %v1465_v28 = vpop.f32.mrb[12].mxu0 }
0x1bbd   :  { %v1466_v29 = vadd.f32 %v7882_v6, %v1465_v28  ;;  %v6456_v30 = vpop.f32.mrb[13].mxu0 }
0x1bbe   :  { %v7652_v30 = vmov 0  }
0x1bbf   :  { %v1470_v31 = vrot.slane %v1466_v29, 2  ;;  %7371 = vset.pattern.permute.xlu1 %v7652_v30 }
0x1bc1   :  { %1479 = vrot.lane.b32.xlu1 %v1470_v31, %s7646_s22  ;;  %v1472_v32 = vadd.f32 %v1470_v31, %v7904_v16 }
0x1bc3   :  { %v5932_v33 = vmul.f32 -1.442695, %v1472_v32  ;;  %v1824_v32 = vld [vmem:[%s5872_s14] sm:$0xf]  ;;  %s7667_s14 = smov 29  }
0x1bc4   :  { %s5900_s17 = sld [smem:[%s8715_s0 + %s7667_s14]]  }
0x1bc5   :  { %7436 = vpow2.f32 %v5932_v33 }
0x1bcf   :  { %v7437_v34 = vpop.eup %7436 }
0x1bd0   :  { %v1476_v35 = vadd.f32 1.0, %v7437_v34 }
0x1bd2   :  { %7438 = vrcp.f32 %v1476_v35 }
0x1bdc   :  { %v7439_v36 = vpop.eup %7438 }
0x1bdd   :  { %v1489_v15 = vsub.f32 1.0, %v7439_v36  ;;  %v1497_v44 = vmul.f32 %v7439_v36, %v1495_v42 }
0x1c33   :  { %v1480_v37 = vpop.permute.xlu1 %1479 }
0x1c34   :  { %v1482_v38 = vmul.f32 %v7439_v36, %v1480_v37 }
0x1c36   :  { %1484 = vrot.lane.b32.xlu0 %v1482_v38, %s7646_s22  ;;  %v1832_v38 = vld [vmem:[%s5876_s18 + $0x8] sm:$0x1f] }
0x1c37   :  { %5940 = vmatprep.subr.msk.mxu0 %vm1839_vm6, %v1832_v38 }
0x1ca8   :  { %v1485_v39 = vpop.permute.xlu0 %1484 }
0x1ca9   :  { %v1487_v40 = vadd.f32 %v1485_v39, %v7904_v16  ;;  %v1831_v39 = vld [vmem:[%s5876_s18] sm:$0x1f] }
0x1cab   :  { %7440 = vtanh.f32 %v1487_v40  ;;  %v1834_v40 = vld [vmem:[%s5876_s18 + $0x18] sm:$0x1f] }
0x1cb5   :  { %v7441_v41 = vpop.eup %7440 }
0x1cb6   :  { %1491 = vrot.lane.b32.xlu1 %v7441_v41, %s7647_s23 }
0x1d28   :  { %v1492_v43 = vpop.permute.xlu1 %1491 }
0x1d29   :  { %v1494_v45 = vmul.f32 %v1492_v43, %v1489_v15  ;;  %v1822_v15 = vlaneseq }
0x1d2b   :  { %v1498_v47 = vadd.f32 %v1497_v44, %v1494_v45  ;;  %v7991_v43 = vand.u32 127, %v1822_v15  ;;  %v1833_v45 = vld [vmem:[%s5876_s18 + $0x10] sm:$0x1f] }
0x1d2d   :  { %v1500_v46 = vrot.slane %v1498_v47, 6  ;;  %vm5849_vm12 = vcmp.eq.s32.totalorder %v7991_v43, 0  ;;  %vm5856_vm13 = vcmp.eq.s32.totalorder %v7991_v43, 1  ;;  %vm5863_vm14 = vcmp.eq.s32.totalorder %v7991_v43, 2 }
0x1d2e   :  { %vm5865_vm15 = vcmp.eq.s32.totalorder %v7991_v43, 3 }
0x1d2f   :  { %1501 = vrot.lane.b32.xlu0 %v1500_v46, %s7647_s23 }
0x1da1   :  { %v1502_v48 = vpop.permute.xlu0 %1501 }
0x1da2   :  { %6466 = vmatmul.mubr.msk.f32.vlgmr.msra.gmra.mrb[12].mxu1 %vm241_vm3, %v1502_v48 }
0x1da3   :  { %7051 = vmatpush3.bf16.msra.mxu1 %v7846_v49  ;;  %6487 = vmatprep.mubr.msk.f32.mxu1 %vm7642_vm0, %v7643_v1 }
0x1da4   :  { %7052 = vmatprep.subr.bf16.mxu1 %v7639_v0 }
0x1da7   :  { %7054 = vmatpush3.bf16.msra.mxu1 %v7851_v56 }
0x1da8   :  { %7055 = vmatprep.subr.bf16.mxu1 %v7639_v0 }
0x1e75   :  { %v1571_v16 = vpop.f32.mrb[12].mxu1 }
0x1e76   :  { %v1572_v50 = vadd.f32 %v7882_v6, %v1571_v16  ;;  %v6467_v51 = vpop.f32.mrb[13].mxu1 }
0x1e77   :  { %v7655_v51 = vmov 1  }
0x1e78   :  { %1583 = vrot.lane.b32.xlu1 %v1572_v50, %s7646_s22  ;;  %v1575_v54 = vadd.f32 %v1572_v50, %v7963_v52  ;;  %7372 = vset.pattern.permute.xlu0 %v7655_v51 }
0x1e7a   :  { %v5934_v55 = vmul.f32 -1.442695, %v1575_v54 }
0x1e7c   :  { %7442 = vpow2.f32 %v5934_v55 }
0x1e86   :  { %v7443_v58 = vpop.eup %7442 }
0x1e87   :  { %v1579_v59 = vadd.f32 1.0, %v7443_v58 }
0x1e89   :  { %7444 = vrcp.f32 %v1579_v59 }
0x1e93   :  { %v7445_v60 = vpop.eup %7444 }
0x1e94   :  { %v1593_v11 = vsub.f32 1.0, %v7445_v60  ;;  %v1600_v7 = vmul.f32 %v7445_v60, %v1500_v46 }
0x1eea   :  { %v1584_v61 = vpop.permute.xlu1 %1583 }
0x1eeb   :  { %v1586_v62 = vmul.f32 %v7445_v60, %v1584_v61 }
0x1eed   :  { %1588 = vrot.lane.b32.xlu0 %v1586_v62, %s7646_s22 }
0x1f5f   :  { %v1589_v63 = vpop.permute.xlu0 %1588 }
0x1f60   :  { %v1591_v2 = vadd.f32 %v1589_v63, %v7963_v52 }
0x1f62   :  { %7446 = vtanh.f32 %v1591_v2 }
0x1f6c   :  { %v7447_v4 = vpop.eup %7446 }
0x1f6d   :  { %1595 = vrot.lane.b32.xlu1 %v7447_v4, %s7647_s23 }
0x1fdf   :  { %v1596_v12 = vpop.permute.xlu1 %1595 }
0x1fe0   :  { %v1598_v8 = vmul.f32 %v1596_v12, %v1593_v11  ;;  %v1814_v12 = vld [vmem:[%s5873_s25] sm:$0x3] }
0x1fe2   :  { %v1601_v9 = vadd.f32 %v1600_v7, %v1598_v8  ;;  %v1815_v7 = vmul.f32 0.11168521, %v1814_v12  ;;  %v2119_v12 = vld [vmem:[%s8036_s10 + $0x58] sm:$0xff] }
0x1fe4   :  { %1603 = vrot.lane.b32.xlu0 %v1601_v9, %s7647_s23  ;;  %v1703_v33 = vrot.slane %v1601_v9, 6  ;;  %v1817_v8 = vrot.slane %v1815_v7, 4 }
0x2056   :  { %v1604_v3 = vpop.permute.xlu0 %1603 }
0x2057   :  { %6477 = vmatmul.mubr.msk.f32.vlgmr.msra.gmra.mrb[14].mxu0 %vm241_vm3, %v1604_v3 }
0x2058   :  { %1916 = vmatprep.mubr.f32.mxu0 %v7643_v1  ;;  %5941 = vmatpush1.msk.msra.mxu0 %vm1839_vm6, %v1831_v39 }
0x2059   :  { %5943 = vmatprep.subr.msk.mxu0 %vm1839_vm6, %v1834_v40  ;;  %v2108_v40 = vld [vmem:[%s8036_s10] sm:$0xff] }
0x212a   :  { %v1673_v14 = vpop.f32.mrb[14].mxu0 }
0x212b   :  { %v1674_v17 = vadd.f32 %v7882_v6, %v1673_v14  ;;  %v6478_v18 = vpop.f32.mrb[15].mxu0  ;;  %v1994_v14 = vld [vmem:[%s8021_s30] sm:$0x3] }
0x212d   :  { %v1678_v20 = vrot.slane %v1674_v17, 6 }
0x212f   :  { %1687 = vrot.lane.b32.xlu1 %v1678_v20, %s7646_s22  ;;  %v1680_v21 = vadd.f32 %v1678_v20, %v7963_v52 }
0x2131   :  { %v5936_v22 = vmul.f32 -1.442695, %v1680_v21 }
0x2133   :  { %7448 = vpow2.f32 %v5936_v22  ;;  %v2020_v22 = vld [vmem:[%s5893_s4] sm:$0xff] }
0x213d   :  { %v7449_v23 = vpop.eup %7448 }
0x213e   :  { %v1684_v24 = vadd.f32 1.0, %v7449_v23  ;;  %v2021_v23 = vld [vmem:[%s5893_s4 + $0x8] sm:$0xff] }
0x2140   :  { %7450 = vrcp.f32 %v1684_v24  ;;  %v2022_v24 = vld [vmem:[%s5893_s4 + $0x10] sm:$0xff] }
0x214a   :  { %v7451_v25 = vpop.eup %7450 }
0x214b   :  { %v1697_v34 = vsub.f32 1.0, %v7451_v25  ;;  %v1705_v37 = vmul.f32 %v7451_v25, %v1703_v33 }
0x21a1   :  { %v1688_v26 = vpop.permute.xlu1 %1687 }
0x21a2   :  { %v1690_v27 = vmul.f32 %v7451_v25, %v1688_v26  ;;  %v7056_v25 = vpack.c.bf16 %v2021_v23, %v2020_v22  ;;  %v2204_v22 = vld [vmem:[%s8074_s15 + $0x8] sm:$0xff]  ;;  %v2205_v23 = vld [vmem:[%s8074_s15 + $0x10] sm:$0xff] }
0x21a4   :  { %1692 = vrot.lane.b32.xlu0 %v1690_v27, %s7646_s22 }
0x2216   :  { %v1693_v28 = vpop.permute.xlu0 %1692 }
0x2217   :  { %v1695_v29 = vadd.f32 %v1693_v28, %v7963_v52 }
0x2219   :  { %7452 = vtanh.f32 %v1695_v29 }
0x2223   :  { %v7453_v31 = vpop.eup %7452 }
0x2224   :  { %1699 = vrot.lane.b32.xlu1 %v7453_v31, %s7647_s23 }
0x2228   :  { %1826 = vperm.xlu1 %7371, %v1824_v32  }
0x2296   :  { %v1700_v35 = vpop.permute.xlu1 %1699 }
0x2297   :  { %v1702_v36 = vmul.f32 %v1700_v35, %v1697_v34 }
0x2299   :  { %v7985_v41 = vadd.f32 %v1705_v37, %v1702_v36 }
0x229b   :  { %v1708_v42 = vrot.slane %v7985_v41, 2  ;;  %v1809_v28 = vrot.slane %v7985_v41, 6  ;;  %v2109_v41 = vld [vmem:[%s8036_s10 + $0x8] sm:$0xff] }
0x229d   :  { %1709 = vrot.lane.b32.xlu0 %v1708_v42, %s7647_s23  ;;  %v2110_v42 = vld [vmem:[%s8036_s10 + $0x10] sm:$0xff] }
0x22a7   :  { %v1827_v44 = vpop.permute.xlu1 %1826 }
0x22a8   :  { %vm1828_vm8 = vcmp.eq.s32.totalorder %v7991_v43, %v1827_v44  ;;  %v7062_v44 = vpack.c.bf16 %v2109_v41, %v2108_v40 }
0x22a9   :  { %v5939_v47 = vsel %vm1828_vm8, 1.0, %v7643_v1 }
0x22aa   :  { %5942 = vmatmul.mubr.msk.f32.vlgmr.msra.gmra.mrb[16].mxu0 %vm1835_vm7, %v5939_v47 }
0x22ab   :  { %5944 = vmatpush1.msk.msra.mxu0 %vm1839_vm6, %v1833_v45  ;;  %1987 = vmatprep.mubr.f32.mxu0 %v7643_v1  ;;  %v2111_v45 = vld [vmem:[%s8036_s10 + $0x18] sm:$0xff] }
0x22ac   :  { %7061 = vmatprep.subr.bf16.mxu0 %v7639_v0 }
0x22ae   :  { %5945 = vmatmul.mubr.msk.f32.vlgmr.msra.gmra.mrb[18].mxu0 %vm1835_vm7, %v5939_v47 }
0x22af   :  { %6533 = vmatprep.mubr.msk.f32.mxu0 %vm7642_vm0, %v7643_v1  ;;  %7063 = vmatpush3.bf16.msra.mxu0 %v7062_v44 }
0x22b0   :  { %7064 = vmatprep.subr.bf16.mxu0 %v7639_v0 }
0x230f   :  { %v1710_v46 = vpop.permute.xlu0 %1709 }
0x2310   :  { %6488 = vmatmul.mubr.msk.f32.vlgmr.msra.gmra.mrb[14].mxu1 %vm241_vm3, %v1710_v46 }
0x2311   :  { %6498 = vmatprep.mubr.msk.f32.mxu1 %vm7642_vm0, %v7643_v1  ;;  %7057 = vmatpush3.bf16.msra.mxu1 %v7056_v25  ;;  %v2206_v25 = vld [vmem:[%s8074_s15 + $0x18] sm:$0xff] }
0x2312   :  { %7058 = vmatprep.subr.bf16.mxu1 %v7639_v0 }
0x237d   :  { %v8003_v48 = vpop.f32.mrb[16].mxu0 }
0x237e   :  { %v8005_v16 = vpop.f32.mrb[17].mxu0 }
0x2381   :  { %v8007_v50 = vpop.f32.mrb[18].mxu0 }
0x2382   :  { %v1991_v54 = vpop.f32.mrb[19].mxu0 }
0x23e3   :  { %v1779_v55 = vpop.f32.mrb[14].mxu1 }
0x23e4   :  { %v1780_v58 = vadd.f32 %v7882_v6, %v1779_v55  ;;  %v6489_v59 = vpop.f32.mrb[15].mxu1  ;;  %v2112_v55 = vld [vmem:[%s8036_s10 + $0x20] sm:$0xff] }
0x23e6   :  { %v1784_v60 = vrot.slane %v1780_v58, 4  ;;  %v2113_v58 = vld [vmem:[%s8036_s10 + $0x28] sm:$0xff] }
0x23e8   :  { %1793 = vrot.lane.b32.xlu0 %v1784_v60, %s7646_s22  ;;  %v1786_v61 = vadd.f32 %v1784_v60, %v7963_v52  ;;  %v7068_v60 = vpack.c.bf16 %v2113_v58, %v2112_v55  ;;  %v2218_v55 = vld [vmem:[%s8074_s15 + $0x78] sm:$0xff] }
0x23ea   :  { %v5938_v62 = vmul.f32 -1.442695, %v1786_v61  ;;  %v2114_v61 = vld [vmem:[%s8036_s10 + $0x30] sm:$0xff] }
0x23ec   :  { %2003 = vperm.xlu0 %7372, %v1991_v54   ;;  %7454 = vpow2.f32 %v5938_v62  ;;  %v2115_v62 = vld [vmem:[%s8036_s10 + $0x38] sm:$0xff] }
0x23f0   :  { %7373 = vset.pattern.permute.xlu0 %v7652_v30 }
0x23f1   :  { %1818 = vrot.lane.b32.xlu0 %v1817_v8, %s7657_s26 }
0x23f6   :  { %v7455_v63 = vpop.eup %7454 }
0x23f7   :  { %v1790_v2 = vadd.f32 1.0, %v7455_v63  ;;  %v7071_v63 = vpack.c.bf16 %v2115_v62, %v2114_v61  ;;  %v2301_v62 = vld [vmem:[%s8109_s27 + $0x18] sm:$0xff] }
0x23f9   :  { %7456 = vrcp.f32 %v1790_v2  ;;  %v2116_v2 = vld [vmem:[%s8036_s10 + $0x40] sm:$0xff] }
0x2403   :  { %v7457_v4 = vpop.eup %7456 }
0x2404   :  { %v1803_v29 = vsub.f32 1.0, %v7457_v4  ;;  %v1811_v31 = vmul.f32 %v7457_v4, %v1809_v28 }
0x245a   :  { %v1794_v6 = vpop.permute.xlu0 %1793 }
0x245b   :  { %v1796_v11 = vmul.f32 %v7457_v4, %v1794_v6  ;;  %v2117_v4 = vld [vmem:[%s8036_s10 + $0x48] sm:$0xff] }
0x245c   :  { %v7074_v6 = vpack.c.bf16 %v2117_v4, %v2116_v2  ;;  %v2302_v2 = vld [vmem:[%s8109_s27 + $0x20] sm:$0xff]  ;;  %v2303_v4 = vld [vmem:[%s8109_s27 + $0x28] sm:$0xff] }
0x245d   :  { %1798 = vrot.lane.b32.xlu1 %v1796_v11, %s7646_s22  ;;  %v2118_v11 = vld [vmem:[%s8036_s10 + $0x50] sm:$0xff] }
0x245e   :  { %v7077_v7 = vpack.c.bf16 %v2119_v12, %v2118_v11  ;;  %v2304_v11 = vld [vmem:[%s8109_s27 + $0x30] sm:$0xff]  ;;  %v2305_v12 = vld [vmem:[%s8109_s27 + $0x38] sm:$0xff] }
0x2461   :  { %1997 = vperm.xlu1 %7371, %v1991_v54   ;;  %v7065_v54 = vpack.c.bf16 %v2111_v45, %v2110_v42  ;;  %v2215_v45 = vld [vmem:[%s8074_s15 + $0x60] sm:$0xff] }
0x2463   :  { %7066 = vmatpush3.bf16.msra.mxu0 %v7065_v54  ;;  %v2217_v54 = vld [vmem:[%s8074_s15 + $0x70] sm:$0xff] }
0x2464   :  { %7067 = vmatprep.subr.bf16.mxu0 %v7639_v0  ;;  %v7107_v58 = vpack.c.bf16 %v2218_v55, %v2217_v54 }
0x2467   :  { %7069 = vmatpush3.bf16.msra.mxu0 %v7068_v60  ;;  %v2300_v60 = vld [vmem:[%s8109_s27 + $0x10] sm:$0xff] }
0x2468   :  { %7070 = vmatprep.subr.bf16.mxu0 %v7639_v0 }
0x246b   :  { %v2004_v17 = vpop.permute.xlu0 %2003  ;;  %7072 = vmatpush3.bf16.msra.mxu0 %v7071_v63  ;;  %v7113_v63 = vpack.c.bf16 %v2301_v62, %v2300_v60 }
0x246c   :  { %v2006_v18 = vmul.f32 %v2004_v17, %v1994_v14  ;;  %7073 = vmatprep.subr.bf16.mxu0 %v7639_v0  ;;  %v2122_v17 = vld [vmem:[%s8036_s10 + $0x70] sm:$0xff] }
0x246e   :  { %v2008_v21 = vrot.slane %v2006_v18, 4  ;;  %v2123_v18 = vld [vmem:[%s8036_s10 + $0x78] sm:$0xff] }
0x246f   :  { %v1819_v34 = vpop.permute.xlu0 %1818  ;;  %7075 = vmatpush3.bf16.msra.mxu0 %v7074_v6  ;;  %v7116_v6 = vpack.c.bf16 %v2303_v4, %v2302_v2 }
0x2470   :  { %7076 = vmatprep.subr.bf16.mxu0 %v7639_v0 }
0x2473   :  { %7078 = vmatpush3.bf16.msra.mxu0 %v7077_v7  ;;  %v7119_v7 = vpack.c.bf16 %v2305_v12, %v2304_v11 }
0x2474   :  { %7079 = vmatprep.subr.bf16.mxu0 %v7639_v0 }
0x24cf   :  { %v1799_v9 = vpop.permute.xlu1 %1798 }
0x24d0   :  { %v1801_v3 = vadd.f32 %v1799_v9, %v7963_v52  ;;  %v2023_v52 = vld [vmem:[%s5893_s4 + $0x18] sm:$0xff]  ;;  %v2120_v9 = vld [vmem:[%s8036_s10 + $0x60] sm:$0xff] }
0x24d1   :  { %v7059_v26 = vpack.c.bf16 %v2023_v52, %v2022_v24  ;;  %v7089_v52 = vpack.c.bf16 %v2206_v25, %v2205_v23 }
0x24d2   :  { %7458 = vtanh.f32 %v1801_v3  ;;  %v2121_v3 = vld [vmem:[%s8036_s10 + $0x68] sm:$0xff]  ;;  %s5888_s10 = sld [smem:[%s8715_s0 + %s7672_s6]]  }
0x24d3   :  { %7060 = vmatpush3.bf16.msra.mxu1 %v7059_v26  ;;  %v7080_v14 = vpack.c.bf16 %v2121_v3, %v2120_v9  ;;  %v2207_v26 = vld [vmem:[%s8074_s15 + $0x20] sm:$0xff]  ;;  %v2307_v9 = vld [vmem:[%s8109_s27 + $0x48] sm:$0xff] }
0x24d4   :  { %7085 = vmatprep.subr.bf16.mxu1 %v7639_v0 }
0x24d5   :  { %7081 = vmatpush3.bf16.msra.mxu0 %v7080_v14  ;;  %v2308_v14 = vld [vmem:[%s8109_s27 + $0x50] sm:$0xff] }
0x24d6   :  { %7082 = vmatprep.subr.bf16.mxu0 %v7639_v0 }
0x24dc   :  { %v7459_v20 = vpop.eup %7458 }
0x24dd   :  { %1805 = vrot.lane.b32.xlu1 %v7459_v20, %s7647_s23  ;;  %v7083_v20 = vpack.c.bf16 %v2123_v18, %v2122_v17  ;;  %v2309_v17 = vld [vmem:[%s8109_s27 + $0x58] sm:$0xff] }
0x24de   :  { %v7125_v18 = vpack.c.bf16 %v2309_v17, %v2308_v14 }
0x24df   :  { %7084 = vmatpush3.bf16.msra.mxu0 %v7083_v20  ;;  %v5948_v20 = vld [vmem:[%s5896_s2] ss:$0 sm:$0xff]  ;;  %s5891_s2 = sld [smem:[%s8715_s0 + %s7677_s29]]  }
0x24e0   :  { %v1998_v27 = vpop.permute.xlu1 %1997  ;;  %7109 = vmatprep.subr.bf16.mxu0 %v7639_v0 }
0x24e1   :  { %2009 = vrot.lane.b32.xlu1 %v2008_v21, %s7657_s26  ;;  %v1999_v36 = vrot.slane %v1998_v27, 4  ;;  %v2203_v21 = vld [vmem:[%s8074_s15] sm:$0xff]  ;;  %v2208_v27 = vld [vmem:[%s8074_s15 + $0x28] sm:$0xff] }
0x24e2   :  { %v7086_v24 = vpack.c.bf16 %v2204_v22, %v2203_v21  ;;  %v7092_v28 = vpack.c.bf16 %v2208_v27, %v2207_v26  ;;  %v2311_v26 = vld [vmem:[%s8109_s27 + $0x68] sm:$0xff] }
0x254f   :  { %v1806_v30 = vpop.permute.xlu1 %1805 }
0x2550   :  { %v1808_v32 = vmul.f32 %v1806_v30, %v1803_v29  ;;  %v2209_v29 = vld [vmem:[%s8074_s15 + $0x30] sm:$0xff]  ;;  %v2210_v30 = vld [vmem:[%s8074_s15 + $0x38] sm:$0xff] }
0x2552   :  { %v1812_v33 = vadd.f32 %v1811_v31, %v1808_v32  ;;  %v7095_v31 = vpack.c.bf16 %v2210_v30, %v2209_v29  ;;  %v2211_v32 = vld [vmem:[%s8074_s15 + $0x40] sm:$0xff] }
0x2553   :  { %v2010_v39 = vpop.permute.xlu1 %2009  ;;  %v5949_v30 = vld [vmem:[%s5898_s7] ss:$0 sm:$0xff] }
0x2554   :  { %v1813_v35 = vmul.f32 0.99374366, %v1812_v33  ;;  %v2212_v33 = vld [vmem:[%s8074_s15 + $0x48] sm:$0xff] }
0x2556   :  { %v8038_v37 = vadd.f32 %v1819_v34, %v1813_v35  ;;  %v7098_v34 = vpack.c.bf16 %v2212_v33, %v2211_v32  ;;  %v2213_v35 = vld [vmem:[%s8074_s15 + $0x50] sm:$0xff] }
0x2558   :  { %v2001_v38 = vmul.f32 %v1999_v36, %v8038_v37  ;;  %v2017_v46 = vrot.slane %v8038_v37, 2  ;;  %v2214_v36 = vld [vmem:[%s8074_s15 + $0x58] sm:$0xff] }
0x255a   :  { %v2012_v15 = vadd.f32 %v2010_v39, %v2001_v38  ;;  %v7101_v38 = vpack.c.bf16 %v2214_v36, %v2213_v35  ;;  %v5946_v39 = vld [vmem:[%s5894_s19] ss:$0 sm:$0xff]  ;;  %s7669_s19 = smov 14  }
0x255b   :  { %v2414_v36 = vld [vmem:[%s5875_s12] sm:$0x3]  ;;  %s8412_s25 = sld [smem:[%s8715_s0 + %s7669_s19]]  }
0x255c   :  { %v2014_v47 = vrot.slane %v2012_v15, 4 }
0x255e   :  { %v2019_v59 = vsel %vm972_vm4, %v2014_v47, %v2017_v46  ;;  %v2216_v47 = vld [vmem:[%s8074_s15 + $0x68] sm:$0xff]  ;;  %s8461_s15 = sld [smem:[%s8715_s0 + %s7673_s11]]  }
0x255f   :  { %2032 = vrot.lane.b32.xlu0 %v2019_v59, %s7647_s23  ;;  %v7104_v46 = vpack.c.bf16 %v2216_v47, %v2215_v45  ;;  %v2299_v59 = vld [vmem:[%s8109_s27 + $0x8] sm:$0xff] }
0x25d1   :  { %v2033_v8 = vpop.permute.xlu0 %2032 }
0x25d2   :  { %6499 = vmatmul.mubr.msk.f32.vlgmr.msra.gmra.mrb[16].mxu1 %vm241_vm3, %v2033_v8  ;;  %v2306_v8 = vld [vmem:[%s8109_s27 + $0x40] sm:$0xff] }
0x25d3   :  { %6568 = vmatprep.mubr.msk.f32.mxu1 %vm7642_vm0, %v7643_v1  ;;  %7087 = vmatpush3.bf16.msra.mxu1 %v7086_v24  ;;  %v7122_v3 = vpack.c.bf16 %v2307_v9, %v2306_v8 }
0x25d4   :  { %7088 = vmatprep.subr.bf16.mxu1 %v7639_v0 }
0x25d7   :  { %7090 = vmatpush3.bf16.msra.mxu1 %v7089_v52  ;;  %v2310_v52 = vld [vmem:[%s8109_s27 + $0x60] sm:$0xff] }
0x25d8   :  { %7091 = vmatprep.subr.bf16.mxu1 %v7639_v0  ;;  %v7128_v27 = vpack.c.bf16 %v2311_v26, %v2310_v52 }
0x25db   :  { %7093 = vmatpush3.bf16.msra.mxu1 %v7092_v28  ;;  %v2313_v28 = vld [vmem:[%s8109_s27 + $0x78] sm:$0xff] }
0x25dc   :  { %7094 = vmatprep.subr.bf16.mxu1 %v7639_v0 }
0x25df   :  { %7096 = vmatpush3.bf16.msra.mxu1 %v7095_v31 }
0x25e0   :  { %7097 = vmatprep.subr.bf16.mxu1 %v7639_v0 }
0x25e3   :  { %7099 = vmatpush3.bf16.msra.mxu1 %v7098_v34 }
0x25e4   :  { %7100 = vmatprep.subr.bf16.mxu1 %v7639_v0 }
0x25e7   :  { %7102 = vmatpush3.bf16.msra.mxu1 %v7101_v38 }
0x25e8   :  { %7103 = vmatprep.subr.bf16.mxu1 %v7639_v0 }
0x25eb   :  { %7105 = vmatpush3.bf16.msra.mxu1 %v7104_v46 }
0x25ec   :  { %7106 = vmatprep.subr.bf16.mxu1 %v7639_v0 }
0x25ef   :  { %7108 = vmatpush3.bf16.msra.mxu1 %v7107_v58 }
0x25f0   :  { %7133 = vmatprep.subr.bf16.mxu1 %v7639_v0 }
0x26a5   :  { %v2102_v40 = vpop.f32.mrb[16].mxu1 }
0x26a6   :  { %v2103_v41 = vadd.f32 %v5946_v39, %v2102_v40  ;;  %v6500_v42 = vpop.f32.mrb[17].mxu1  ;;  %v5950_v39 = vld [vmem:[%s5900_s17] ss:$0 sm:$0xff] }
0x26a8   :  { %v2106_v15 = vadd.f32 %v2103_v41, %v8003_v48  ;;  %v2298_v48 = vld [vmem:[%s8109_s27] sm:$0xff] }
0x26a9   :  { %v7110_v61 = vpack.c.bf16 %v2299_v59, %v2298_v48  ;;  %v8176_v59 = vld [vmem:[%s7732_s21] ss:$0 sm:$0xff]  ;;  %s7668_s21 = smov 30  }
0x26aa   :  { %v2107_v44 = vmax.f32 %v2106_v15, 0.0  ;;  %s5901_s18 = sld [smem:[%s8715_s0 + %s7668_s21]]  }
0x26ac   :  { %6534 = vmatmul.mubr.f32.vlgmr.msra.gmra.mrb[20].mxu0 %v2107_v44 }
0x26ad   :  { %6603 = vmatprep.mubr.msk.f32.mxu0 %vm7642_vm0, %v7643_v1  ;;  %7111 = vmatpush3.bf16.msra.mxu0 %v7110_v61 }
0x26ae   :  { %7112 = vmatprep.subr.bf16.mxu0 %v7639_v0 }
0x26b1   :  { %7114 = vmatpush3.bf16.msra.mxu0 %v7113_v63 }
0x26b2   :  { %7115 = vmatprep.subr.bf16.mxu0 %v7639_v0 }
0x26b5   :  { %7117 = vmatpush3.bf16.msra.mxu0 %v7116_v6 }
0x26b6   :  { %7118 = vmatprep.subr.bf16.mxu0 %v7639_v0 }
0x26b9   :  { %7120 = vmatpush3.bf16.msra.mxu0 %v7119_v7 }
0x26ba   :  { %7121 = vmatprep.subr.bf16.mxu0 %v7639_v0 }
0x26bd   :  { %7123 = vmatpush3.bf16.msra.mxu0 %v7122_v3 }
0x26be   :  { %7124 = vmatprep.subr.bf16.mxu0 %v7639_v0 }
0x26c1   :  { %7126 = vmatpush3.bf16.msra.mxu0 %v7125_v18 }
0x26c2   :  { %7127 = vmatprep.subr.bf16.mxu0 %v7639_v0 }
0x26c5   :  { %7129 = vmatpush3.bf16.msra.mxu0 %v7128_v27 }
0x26c6   :  { %7130 = vmatprep.subr.bf16.mxu0 %v7639_v0 }
0x277f   :  { %v2197_v21 = vpop.f32.mrb[20].mxu0 }
0x2780   :  { %v2198_v22 = vadd.f32 %v5948_v20, %v2197_v21  ;;  %v6535_v23 = vpop.f32.mrb[21].mxu0 }
0x2782   :  { %v2201_v24 = vadd.f32 %v2198_v22, %v8005_v16  ;;  %v2312_v16 = vld [vmem:[%s8109_s27 + $0x70] sm:$0xff]  ;;  %s7670_s27 = smov 15  }
0x2783   :  { %v7131_v29 = vpack.c.bf16 %v2313_v28, %v2312_v16  ;;  %s5886_s1 = sld [smem:[%s8715_s0 + %s7670_s27]]  }
0x2784   :  { %v2202_v25 = vmax.f32 %v2201_v24, 0.0 }
0x2785   :  { %7132 = vmatpush3.bf16.msra.mxu0 %v7131_v29 }
0x2786   :  { %6569 = vmatmul.mubr.f32.vlgmr.msra.gmra.mrb[18].mxu1 %v2202_v25  ;;  %7157 = vmatprep.subr.bf16.mxu0 %v7639_v0 }
0x2787   :  { %7135 = vmatpush3.bf16.msra.mxu1 %v7698_v5  ;;  %6614 = vmatprep.mubr.msk.f32.mxu1 %vm7642_vm0, %v7643_v1 }
0x2788   :  { %7136 = vmatprep.subr.bf16.mxu1 %v7639_v0 }
0x278b   :  { %7138 = vmatpush3.bf16.msra.mxu1 %v7706_v10 }
0x278c   :  { %7139 = vmatprep.subr.bf16.mxu1 %v7639_v0 }
0x2859   :  { %v2292_v31 = vpop.f32.mrb[18].mxu1 }
0x285a   :  { %v2293_v32 = vadd.f32 %v5949_v30, %v2292_v31  ;;  %v6570_v33 = vpop.f32.mrb[19].mxu1 }
0x285c   :  { %v2296_v34 = vadd.f32 %v2293_v32, %v8007_v50  ;;  %v2415_v50 = vmul.f32 0.070623375, %v2414_v36 }
0x285e   :  { %v2297_v35 = vmax.f32 %v2296_v34, 0.0  ;;  %v2417_v38 = vrot.slane %v2415_v50, 4 }
0x2860   :  { %6604 = vmatmul.mubr.f32.vlgmr.msra.gmra.mrb[22].mxu0 %v2297_v35  ;;  %2418 = vrot.lane.b32.xlu0 %v2417_v38, %s7657_s26 }
0x2861   :  { %7159 = vmatpush3.bf16.msra.mxu0 %v7698_v5  ;;  %6658 = vmatprep.mubr.msk.f32.mxu0 %vm7642_vm0, %v7643_v1 }
0x2862   :  { %7160 = vmatprep.subr.bf16.mxu0 %v7639_v0 }
0x2865   :  { %7162 = vmatpush3.bf16.msra.mxu0 %v7706_v10 }
0x2866   :  { %7169 = vmatprep.subr.bf16.mxu0 %v7639_v0 }
0x28d2   :  { %v2419_v46 = vpop.permute.xlu0 %2418 }
0x2933   :  { %v2387_v40 = vpop.f32.mrb[22].mxu0 }
0x2934   :  { %v8162_v41 = vadd.f32 %v5950_v39, %v2387_v40  ;;  %v6605_v42 = vpop.f32.mrb[23].mxu0 }
0x2936   :  { %v2406_v15 = vmul.f32 0.04465821, %v8162_v41 }
0x2938   :  { %v2408_v44 = vrot.slane %v2406_v15, 6 }
0x293a   :  { %2409 = vrot.lane.b32.xlu1 %v2408_v44, %s7657_s26 }
0x29ac   :  { %v2410_v45 = vpop.permute.xlu1 %2409 }
0x29ad   :  { %v2412_v47 = vsub.f32 %v8038_v37, %v2410_v45 }
0x29af   :  { %v2413_v54 = vmul.f32 1.0025032, %v2412_v47 }
0x29b1   :  { %v2421_v55 = vadd.f32 %v2419_v46, %v2413_v54 }
0x29b3   :  { %v2423_v58 = vrot.slane %v2421_v55, 4 }
0x29b5   :  { %2424 = vrot.lane.b32.xlu1 %v2423_v58, %s7647_s23 }
0x2a27   :  { %v2425_v48 = vpop.permute.xlu1 %2424 }
0x2a28   :  { %6615 = vmatmul.mubr.msk.f32.vlgmr.msra.gmra.mrb[20].mxu1 %vm241_vm3, %v2425_v48 }
0x2a29   :  { %7141 = vmatpush3.bf16.msra.mxu1 %v7698_v5  ;;  %6625 = vmatprep.mubr.msk.f32.mxu1 %vm7642_vm0, %v7643_v1 }
0x2a2a   :  { %7142 = vmatprep.subr.bf16.mxu1 %v7639_v0 }
0x2a2d   :  { %7144 = vmatpush3.bf16.msra.mxu1 %v7706_v10 }
0x2a2e   :  { %7145 = vmatprep.subr.bf16.mxu1 %v7639_v0 }
0x2afb   :  { %v2494_v37 = vpop.f32.mrb[20].mxu1 }
0x2afc   :  { %v2495_v60 = vadd.f32 %v8176_v59, %v2494_v37  ;;  %v6616_v61 = vpop.f32.mrb[21].mxu1 }
0x2afe   :  { %2506 = vrot.lane.b32.xlu0 %v2495_v60, %s7646_s22  ;;  %v2498_v62 = vadd.f32 %v2495_v60, %v7741_v19 }
0x2b00   :  { %v5952_v63 = vmul.f32 -1.442695, %v2498_v62 }
0x2b02   :  { %7460 = vpow2.f32 %v5952_v63 }
0x2b0c   :  { %v7461_v2 = vpop.eup %7460 }
0x2b0d   :  { %v2502_v4 = vadd.f32 1.0, %v7461_v2 }
0x2b0f   :  { %7462 = vrcp.f32 %v2502_v4 }
0x2b19   :  { %v7463_v6 = vpop.eup %7462 }
0x2b1a   :  { %v2516_v3 = vsub.f32 1.0, %v7463_v6  ;;  %v2523_v17 = vmul.f32 %v7463_v6, %v2423_v58 }
0x2b70   :  { %v2507_v11 = vpop.permute.xlu0 %2506 }
0x2b71   :  { %v2509_v12 = vmul.f32 %v7463_v6, %v2507_v11 }
0x2b73   :  { %2511 = vrot.lane.b32.xlu1 %v2509_v12, %s7646_s22 }
0x2be5   :  { %v2512_v7 = vpop.permute.xlu1 %2511 }
0x2be6   :  { %v2514_v8 = vadd.f32 %v2512_v7, %v7741_v19 }
0x2be8   :  { %7464 = vtanh.f32 %v2514_v8 }
0x2bf2   :  { %v7465_v9 = vpop.eup %7464 }
0x2bf3   :  { %2518 = vrot.lane.b32.xlu0 %v7465_v9, %s7647_s23 }
0x2c65   :  { %v2519_v14 = vpop.permute.xlu0 %2518 }
0x2c66   :  { %v2521_v18 = vmul.f32 %v2519_v14, %v2516_v3 }
0x2c68   :  { %v8184_v20 = vadd.f32 %v2523_v17, %v2521_v18 }
0x2c6a   :  { %2526 = vrot.lane.b32.xlu1 %v8184_v20, %s7647_s23  ;;  %v2626_v35 = vrot.slane %v8184_v20, 6 }
0x2cdc   :  { %v2527_v21 = vpop.permute.xlu1 %2526 }
0x2cdd   :  { %6626 = vmatmul.mubr.msk.f32.vlgmr.msra.gmra.mrb[22].mxu1 %vm241_vm3, %v2527_v21 }
0x2cde   :  { %7147 = vmatpush3.bf16.msra.mxu1 %v7698_v5  ;;  %6636 = vmatprep.mubr.msk.f32.mxu1 %vm7642_vm0, %v7643_v1 }
0x2cdf   :  { %7148 = vmatprep.subr.bf16.mxu1 %v7639_v0 }
0x2ce2   :  { %7150 = vmatpush3.bf16.msra.mxu1 %v7706_v10 }
0x2ce3   :  { %7151 = vmatprep.subr.bf16.mxu1 %v7639_v0 }
0x2db0   :  { %v2596_v22 = vpop.f32.mrb[22].mxu1 }
0x2db1   :  { %v2597_v23 = vadd.f32 %v8176_v59, %v2596_v22  ;;  %v6627_v24 = vpop.f32.mrb[23].mxu1 }
0x2db3   :  { %v2601_v25 = vrot.slane %v2597_v23, 6 }
0x2db5   :  { %2610 = vrot.lane.b32.xlu0 %v2601_v25, %s7646_s22  ;;  %v2603_v52 = vadd.f32 %v2601_v25, %v7741_v19 }
0x2db7   :  { %v5954_v26 = vmul.f32 -1.442695, %v2603_v52 }
0x2db9   :  { %7466 = vpow2.f32 %v5954_v26 }
0x2dc3   :  { %v7467_v27 = vpop.eup %7466 }
0x2dc4   :  { %v2607_v16 = vadd.f32 1.0, %v7467_v27 }
0x2dc6   :  { %7468 = vrcp.f32 %v2607_v16 }
0x2dd0   :  { %v7469_v28 = vpop.eup %7468 }
0x2dd1   :  { %v2620_v34 = vsub.f32 1.0, %v7469_v28  ;;  %v2628_v50 = vmul.f32 %v7469_v28, %v2626_v35 }
0x2e27   :  { %v2611_v29 = vpop.permute.xlu0 %2610 }
0x2e28   :  { %v2613_v30 = vmul.f32 %v7469_v28, %v2611_v29 }
0x2e2a   :  { %2615 = vrot.lane.b32.xlu1 %v2613_v30, %s7646_s22 }
0x2e9c   :  { %v2616_v31 = vpop.permute.xlu1 %2615 }
0x2e9d   :  { %v2618_v32 = vadd.f32 %v2616_v31, %v7741_v19 }
0x2e9f   :  { %7470 = vtanh.f32 %v2618_v32 }
0x2ea9   :  { %v7471_v33 = vpop.eup %7470 }
0x2eaa   :  { %2622 = vrot.lane.b32.xlu0 %v7471_v33, %s7647_s23 }
0x2f1c   :  { %v2623_v36 = vpop.permute.xlu0 %2622 }
0x2f1d   :  { %v2625_v38 = vmul.f32 %v2623_v36, %v2620_v34 }
0x2f1f   :  { %v2629_v39 = vadd.f32 %v2628_v50, %v2625_v38 }
0x2f21   :  { %v2631_v40 = vrot.slane %v2629_v39, 2  ;;  %v2732_v4 = vrot.slane %v2629_v39, 6  ;;  %v3156_v8 = vsel %vm972_vm4, %v8184_v20, %v2629_v39 }
0x2f23   :  { %2632 = vrot.lane.b32.xlu1 %v2631_v40, %s7647_s23 }
0x2f95   :  { %v2633_v42 = vpop.permute.xlu1 %2632 }
0x2f96   :  { %6637 = vmatmul.mubr.msk.f32.vlgmr.msra.gmra.mrb[24].mxu1 %vm241_vm3, %v2633_v42 }
0x2f97   :  { %7153 = vmatpush3.bf16.msra.mxu1 %v7698_v5  ;;  %6647 = vmatprep.mubr.msk.f32.mxu1 %vm7642_vm0, %v7643_v1 }
0x2f98   :  { %7154 = vmatprep.subr.bf16.mxu1 %v7639_v0 }
0x2f9b   :  { %7156 = vmatpush3.bf16.msra.mxu1 %v7706_v10 }
0x2f9c   :  { %7163 = vmatprep.subr.bf16.mxu1 %v7639_v0 }
0x3069   :  { %v2702_v15 = vpop.f32.mrb[24].mxu1 }
0x306a   :  { %v2703_v44 = vadd.f32 %v8176_v59, %v2702_v15  ;;  %v6638_v45 = vpop.f32.mrb[25].mxu1 }
0x306c   :  { %v2707_v47 = vrot.slane %v2703_v44, 4 }
0x306e   :  { %2716 = vrot.lane.b32.xlu0 %v2707_v47, %s7646_s22  ;;  %v2709_v46 = vadd.f32 %v2707_v47, %v7741_v19 }
0x3070   :  { %v5956_v54 = vmul.f32 -1.442695, %v2709_v46 }
0x3072   :  { %7472 = vpow2.f32 %v5956_v54 }
0x307c   :  { %v7473_v55 = vpop.eup %7472 }
0x307d   :  { %v2713_v58 = vadd.f32 1.0, %v7473_v55 }
0x307f   :  { %7474 = vrcp.f32 %v2713_v58 }
0x3089   :  { %v7475_v48 = vpop.eup %7474 }
0x308a   :  { %v2726_v2 = vsub.f32 1.0, %v7475_v48  ;;  %v2734_v11 = vmul.f32 %v7475_v48, %v2732_v4 }
0x30e0   :  { %v2717_v37 = vpop.permute.xlu0 %2716 }
0x30e1   :  { %v2719_v60 = vmul.f32 %v7475_v48, %v2717_v37 }
0x30e3   :  { %2721 = vrot.lane.b32.xlu1 %v2719_v60, %s7646_s22 }
0x3155   :  { %v2722_v61 = vpop.permute.xlu1 %2721 }
0x3156   :  { %v2724_v62 = vadd.f32 %v2722_v61, %v7741_v19 }
0x3158   :  { %7476 = vtanh.f32 %v2724_v62 }
0x3162   :  { %v7477_v63 = vpop.eup %7476 }
0x3163   :  { %2728 = vrot.lane.b32.xlu0 %v7477_v63, %s7647_s23 }
0x31d5   :  { %v2729_v6 = vpop.permute.xlu0 %2728 }
0x31d6   :  { %v2731_v12 = vmul.f32 %v2729_v6, %v2726_v2 }
0x31d8   :  { %v2735_v7 = vadd.f32 %v2734_v11, %v2731_v12 }
0x31da   :  { %v2737_v9 = vrot.slane %v2735_v7, 4  ;;  %v3157_v3 = vsel %vm974_vm5, %v3156_v8, %v2735_v7  ;;  %v2838_v31 = vrot.slane %v2735_v7, 6 }
0x31dc   :  { %2738 = vrot.lane.b32.xlu1 %v2737_v9, %s7647_s23 }
0x324e   :  { %v2739_v14 = vpop.permute.xlu1 %2738 }
0x324f   :  { %6648 = vmatmul.mubr.msk.f32.vlgmr.msra.gmra.mrb[26].mxu1 %vm241_vm3, %v2739_v14 }
0x3250   :  { %7165 = vmatpush3.bf16.msra.mxu1 %v7698_v5  ;;  %6669 = vmatprep.mubr.msk.f32.mxu1 %vm7642_vm0, %v7643_v1 }
0x3251   :  { %7166 = vmatprep.subr.bf16.mxu1 %v7639_v0 }
0x3254   :  { %7168 = vmatpush3.bf16.msra.mxu1 %v7706_v10 }
0x3255   :  { %7176 = vmatprep.subr.bf16.mxu1 %v7848_v53 }
0x3322   :  { %v2808_v17 = vpop.f32.mrb[26].mxu1 }
0x3323   :  { %v2809_v18 = vadd.f32 %v8176_v59, %v2808_v17  ;;  %v6649_v20 = vpop.f32.mrb[27].mxu1 }
0x3325   :  { %v2813_v21 = vrot.slane %v2809_v18, 2 }
0x3327   :  { %2822 = vrot.lane.b32.xlu0 %v2813_v21, %s7646_s22  ;;  %v2815_v22 = vadd.f32 %v2813_v21, %v7741_v19 }
0x3329   :  { %v5958_v23 = vmul.f32 -1.442695, %v2815_v22 }
0x332b   :  { %7478 = vpow2.f32 %v5958_v23 }
0x3335   :  { %v7479_v24 = vpop.eup %7478 }
0x3336   :  { %v2819_v25 = vadd.f32 1.0, %v7479_v24 }
0x3338   :  { %7480 = vrcp.f32 %v2819_v25 }
0x3342   :  { %v7481_v52 = vpop.eup %7480 }
0x3343   :  { %v2832_v30 = vsub.f32 1.0, %v7481_v52  ;;  %v2840_v33 = vmul.f32 %v7481_v52, %v2838_v31 }
0x3399   :  { %v2823_v26 = vpop.permute.xlu0 %2822 }
0x339a   :  { %v2825_v27 = vmul.f32 %v7481_v52, %v2823_v26 }
0x339c   :  { %2827 = vrot.lane.b32.xlu1 %v2825_v27, %s7646_s22 }
0x340e   :  { %v2828_v16 = vpop.permute.xlu1 %2827 }
0x340f   :  { %v2830_v28 = vadd.f32 %v2828_v16, %v7741_v19 }
0x3411   :  { %7482 = vtanh.f32 %v2830_v28 }
0x341b   :  { %v7483_v29 = vpop.eup %7482 }
0x341c   :  { %2834 = vrot.lane.b32.xlu0 %v7483_v29, %s7647_s23 }
0x348e   :  { %v2835_v32 = vpop.permute.xlu0 %2834 }
0x348f   :  { %v2837_v34 = vmul.f32 %v2835_v32, %v2832_v30 }
0x3491   :  { %v2841_v35 = vadd.f32 %v2840_v33, %v2837_v34 }
0x3493   :  { %v2843_v36 = vrot.slane %v2841_v35, 6  ;;  %v8234_v50 = vsel %vm151_vm1, %v3157_v3, %v2841_v35 }
0x3495   :  { %2844 = vrot.lane.b32.xlu1 %v2843_v36, %s7647_s23 }
0x3507   :  { %v2845_v38 = vpop.permute.xlu1 %2844 }
0x3508   :  { %6659 = vmatmul.mubr.msk.f32.vlgmr.msra.gmra.mrb[24].mxu0 %vm241_vm3, %v2845_v38 }
0x3509   :  { %7171 = vmatpush3.bf16.msra.mxu0 %v7698_v5  ;;  %6680 = vmatprep.mubr.msk.f32.mxu0 %vm7642_vm0, %v7643_v1 }
0x350a   :  { %7172 = vmatprep.subr.bf16.mxu0 %v7639_v0 }
0x350d   :  { %7174 = vmatpush3.bf16.msra.mxu0 %v7706_v10 }
0x350e   :  { %7183 = vmatprep.subr.bf16.mxu0 %v7639_v0 }
0x35db   :  { %v2914_v19 = vpop.f32.mrb[24].mxu0 }
0x35dc   :  { %v2915_v39 = vadd.f32 %v8176_v59, %v2914_v19  ;;  %v6660_v40 = vpop.f32.mrb[25].mxu0 }
0x35de   :  { %2926 = vrot.lane.b32.xlu0 %v2915_v39, %s7646_s22  ;;  %v2918_v42 = vadd.f32 %v2915_v39, %v7734_v13 }
0x35e0   :  { %v5960_v15 = vmul.f32 -1.442695, %v2918_v42 }
0x35e2   :  { %7484 = vpow2.f32 %v5960_v15 }
0x35ec   :  { %v7485_v5 = vpop.eup %7484 }
0x35ed   :  { %v2922_v44 = vadd.f32 1.0, %v7485_v5 }
0x35ef   :  { %7486 = vrcp.f32 %v2922_v44 }
0x35f9   :  { %v7487_v45 = vpop.eup %7486 }
0x35fa   :  { %v2936_v58 = vsub.f32 1.0, %v7487_v45  ;;  %v2943_v37 = vmul.f32 %v7487_v45, %v2843_v36 }
0x3650   :  { %v2927_v47 = vpop.permute.xlu0 %2926 }
0x3651   :  { %v2929_v46 = vmul.f32 %v7487_v45, %v2927_v47 }
0x3653   :  { %2931 = vrot.lane.b32.xlu1 %v2929_v46, %s7646_s22 }
0x36c5   :  { %v2932_v10 = vpop.permute.xlu1 %2931 }
0x36c6   :  { %v2934_v54 = vadd.f32 %v2932_v10, %v7734_v13 }
0x36c8   :  { %7488 = vtanh.f32 %v2934_v54  ;;  %v8303_v54 = vld [vmem:[%s7879_s5] ss:$0 sm:$0xff]  ;;  %s5890_s5 = sld [smem:[%s8715_s0 + %s7674_s16]]  }
0x36d2   :  { %v7489_v55 = vpop.eup %7488 }
0x36d3   :  { %2938 = vrot.lane.b32.xlu0 %v7489_v55, %s7647_s23 }
0x3745   :  { %v2939_v48 = vpop.permute.xlu0 %2938 }
0x3746   :  { %v2941_v60 = vmul.f32 %v2939_v48, %v2936_v58 }
0x3748   :  { %v8250_v61 = vadd.f32 %v2943_v37, %v2941_v60  ;;  %v8310_v60 = vld [vmem:[%s7896_s9] ss:$0 sm:$0xff]  ;;  %s7675_s9 = smov 18  }
0x3749   :  { %s5889_s20 = sld [smem:[%s8715_s0 + %s7675_s9]]  }
0x374a   :  { %2946 = vrot.lane.b32.xlu1 %v8250_v61, %s7647_s23  ;;  %v3046_v20 = vrot.slane %v8250_v61, 6 }
0x37bc   :  { %v2947_v62 = vpop.permute.xlu1 %2946 }
0x37bd   :  { %6670 = vmatmul.mubr.msk.f32.vlgmr.msra.gmra.mrb[28].mxu1 %vm241_vm3, %v2947_v62 }
0x37be   :  { %7178 = vmatpush3.bf16.msra.mxu1 %v7848_v53 }
0x37bf   :  { %7180 = vmatprep.subr.bf16.mxu1 %v7853_v57 }
0x37c2   :  { %7182 = vmatpush3.bf16.msra.mxu1 %v7853_v57 }
0x37c3   :  { %7189 = vmatprep.subr.bf16.mxu1 %v7639_v0 }
0x3890   :  { %v3016_v63 = vpop.f32.mrb[28].mxu1 }
0x3891   :  { %v3017_v2 = vadd.f32 %v8176_v59, %v3016_v63  ;;  %v6671_v4 = vpop.f32.mrb[29].mxu1 }
0x3893   :  { %v3021_v6 = vrot.slane %v3017_v2, 6 }
0x3895   :  { %3030 = vrot.lane.b32.xlu0 %v3021_v6, %s7646_s22  ;;  %v3023_v11 = vadd.f32 %v3021_v6, %v7734_v13 }
0x3897   :  { %v5962_v12 = vmul.f32 -1.442695, %v3023_v11 }
0x3899   :  { %7490 = vpow2.f32 %v5962_v12 }
0x38a3   :  { %v7491_v7 = vpop.eup %7490 }
0x38a4   :  { %v3027_v8 = vadd.f32 1.0, %v7491_v7 }
0x38a6   :  { %7492 = vrcp.f32 %v3027_v8 }
0x38b0   :  { %v7493_v53 = vpop.eup %7492 }
0x38b1   :  { %v3040_v18 = vsub.f32 1.0, %v7493_v53  ;;  %v3048_v22 = vmul.f32 %v7493_v53, %v3046_v20 }
0x3907   :  { %v3031_v9 = vpop.permute.xlu0 %3030 }
0x3908   :  { %v3033_v3 = vmul.f32 %v7493_v53, %v3031_v9 }
0x390a   :  { %3035 = vrot.lane.b32.xlu1 %v3033_v3, %s7646_s22 }
0x397c   :  { %v3036_v57 = vpop.permute.xlu1 %3035 }
0x397d   :  { %v3038_v14 = vadd.f32 %v3036_v57, %v7734_v13 }
0x397f   :  { %7494 = vtanh.f32 %v3038_v14 }
0x3989   :  { %v7495_v17 = vpop.eup %7494 }
0x398a   :  { %3042 = vrot.lane.b32.xlu0 %v7495_v17, %s7647_s23 }
0x39fc   :  { %v3043_v21 = vpop.permute.xlu0 %3042 }
0x39fd   :  { %v3045_v23 = vmul.f32 %v3043_v21, %v3040_v18 }
0x39ff   :  { %v3049_v24 = vadd.f32 %v3048_v22, %v3045_v23 }
0x3a01   :  { %v3051_v25 = vrot.slane %v3049_v24, 2  ;;  %v3152_v39 = vrot.slane %v3049_v24, 6 }
0x3a03   :  { %3052 = vrot.lane.b32.xlu1 %v3051_v25, %s7647_s23 }
0x3a75   :  { %v3053_v52 = vpop.permute.xlu1 %3052 }
0x3a76   :  { %6681 = vmatmul.mubr.msk.f32.vlgmr.msra.gmra.mrb[26].mxu0 %vm241_vm3, %v3053_v52 }
0x3a77   :  { %7185 = vmatpush3.bf16.msra.mxu0 %v7846_v49  ;;  %6702 = vmatprep.mubr.msk.f32.mxu0 %vm7642_vm0, %v7643_v1 }
0x3a78   :  { %7186 = vmatprep.subr.bf16.mxu0 %v7639_v0 }
0x3a7b   :  { %7188 = vmatpush3.bf16.msra.mxu0 %v7851_v56 }
0x3a7c   :  { %7195 = vmatprep.subr.bf16.mxu0 %v7639_v0 }
0x3b49   :  { %v3122_v26 = vpop.f32.mrb[26].mxu0 }
0x3b4a   :  { %v3123_v27 = vadd.f32 %v8176_v59, %v3122_v26  ;;  %v6682_v16 = vpop.f32.mrb[27].mxu0 }
0x3b4c   :  { %v3127_v28 = vrot.slane %v3123_v27, 4 }
0x3b4e   :  { %3136 = vrot.lane.b32.xlu0 %v3127_v28, %s7646_s22  ;;  %v3129_v29 = vadd.f32 %v3127_v28, %v7734_v13 }
0x3b50   :  { %v5964_v30 = vmul.f32 -1.442695, %v3129_v29 }
0x3b52   :  { %7496 = vpow2.f32 %v5964_v30 }
0x3b5c   :  { %v7497_v31 = vpop.eup %7496 }
0x3b5d   :  { %v3133_v32 = vadd.f32 1.0, %v7497_v31 }
0x3b5f   :  { %7498 = vrcp.f32 %v3133_v32 }
0x3b69   :  { %v7499_v33 = vpop.eup %7498 }
0x3b6a   :  { %v3146_v19 = vsub.f32 1.0, %v7499_v33  ;;  %v3154_v42 = vmul.f32 %v7499_v33, %v3152_v39 }
0x3bc0   :  { %v3137_v34 = vpop.permute.xlu0 %3136 }
0x3bc1   :  { %v3139_v35 = vmul.f32 %v7499_v33, %v3137_v34 }
0x3bc3   :  { %3141 = vrot.lane.b32.xlu1 %v3139_v35, %s7646_s22 }
0x3c35   :  { %v3142_v36 = vpop.permute.xlu1 %3141 }
0x3c36   :  { %v3144_v38 = vadd.f32 %v3142_v36, %v7734_v13  ;;  %v3159_v13 = vsel %vm972_vm4, %v8250_v61, %v3049_v24 }
0x3c38   :  { %7500 = vtanh.f32 %v3144_v38 }
0x3c42   :  { %v7501_v59 = vpop.eup %7500 }
0x3c43   :  { %3148 = vrot.lane.b32.xlu0 %v7501_v59, %s7647_s23 }
0x3c47   :  { %3163 = vrot.lane.b32.xlu0 %v8234_v50, %s7647_s23 }
0x3cb5   :  { %v3149_v40 = vpop.permute.xlu0 %3148 }
0x3cb6   :  { %v3151_v15 = vmul.f32 %v3149_v40, %v3146_v19 }
0x3cb8   :  { %v3155_v5 = vadd.f32 %v3154_v42, %v3151_v15 }
0x3cb9   :  { %v3164_v44 = vpop.permute.xlu0 %3163 }
0x3cba   :  { %6691 = vmatprep.mubr.msk.f32.mxu1 %vm241_vm3, %v3164_v44  ;;  %v3247_v45 = vrot.slane %v3155_v5, 4  ;;  %v3160_v47 = vsel %vm974_vm5, %v3159_v13, %v3155_v5 }
0x3cbc   :  { %3248 = vrot.lane.b32.xlu1 %v3247_v45, %s7647_s23 }
0x3cc0   :  { %3165 = vrot.lane.b32.xlu1 %v3160_v47, %s7647_s23 }
0x3d2e   :  { %v3249_v50 = vpop.permute.xlu1 %3248 }
0x3d2f   :  { %6703 = vmatmul.mubr.msk.f32.vlgmr.msra.gmra.mrb[28].mxu0 %vm241_vm3, %v3249_v50 }
0x3d30   :  { %7197 = vmatpush3.bf16.msra.mxu0 %v7846_v49  ;;  %6724 = vmatprep.mubr.msk.f32.mxu0 %vm7642_vm0, %v7643_v1 }
0x3d31   :  { %7198 = vmatprep.subr.bf16.mxu0 %v7639_v0 }
0x3d32   :  { %v3166_v46 = vpop.permute.xlu1 %3165 }
0x3d33   :  { %6692 = vmatmul.mubr.msk.f32.vlgmr.msra.gmra.mrb[30].mxu1 %vm241_vm3, %v3166_v46 }
0x3d34   :  { %7191 = vmatpush3.bf16.msra.mxu1 %v7846_v49  ;;  %6713 = vmatprep.mubr.msk.f32.mxu1 %vm7642_vm0, %v7643_v1 }
0x3d35   :  { %7192 = vmatprep.subr.bf16.mxu1 %v7639_v0  ;;  %7200 = vmatpush3.bf16.msra.mxu0 %v7851_v56 }
0x3d36   :  { %7207 = vmatprep.subr.bf16.mxu0 %v7639_v0 }
0x3d38   :  { %7194 = vmatpush3.bf16.msra.mxu1 %v7851_v56 }
0x3d39   :  { %7201 = vmatprep.subr.bf16.mxu1 %v7639_v0 }
0x3e02   :  { %v3318_v10 = vpop.f32.mrb[28].mxu0 }
0x3e03   :  { %v3319_v55 = vadd.f32 %v8303_v54, %v3318_v10  ;;  %v6704_v58 = vpop.f32.mrb[29].mxu0 }
0x3e05   :  { %3330 = vrot.lane.b32.xlu0 %v3319_v55, %s7646_s22 }
0x3e06   :  { %v8307_v48 = vpop.f32.mrb[30].mxu1 }
0x3e07   :  { %v3237_v37 = vpop.f32.mrb[31].mxu1 }
0x3e08   :  { %v8313_v61 = vadd.f32 %v8310_v60, %v3237_v37 }
0x3e0a   :  { %v3322_v62 = vadd.f32 %v3319_v55, %v8313_v61 }
0x3e0c   :  { %v5968_v63 = vmul.f32 -1.442695, %v3322_v62 }
0x3e0e   :  { %7502 = vpow2.f32 %v5968_v63 }
0x3e18   :  { %v7503_v2 = vpop.eup %7502 }
0x3e19   :  { %v3326_v4 = vadd.f32 1.0, %v7503_v2 }
0x3e1b   :  { %7504 = vrcp.f32 %v3326_v4 }
0x3e25   :  { %v7505_v6 = vpop.eup %7504 }
0x3e26   :  { %v3340_v9 = vsub.f32 1.0, %v7505_v6  ;;  %v3347_v57 = vmul.f32 %v7505_v6, %v3247_v45 }
0x3e77   :  { %v3331_v11 = vpop.permute.xlu0 %3330 }
0x3e78   :  { %v3333_v12 = vmul.f32 %v7505_v6, %v3331_v11 }
0x3e7a   :  { %3335 = vrot.lane.b32.xlu1 %v3333_v12, %s7646_s22 }
0x3eec   :  { %v3336_v7 = vpop.permute.xlu1 %3335 }
0x3eed   :  { %v3338_v8 = vadd.f32 %v3336_v7, %v8313_v61 }
0x3eef   :  { %7506 = vtanh.f32 %v3338_v8 }
0x3ef9   :  { %v7507_v53 = vpop.eup %7506 }
0x3efa   :  { %3342 = vrot.lane.b32.xlu0 %v7507_v53, %s7647_s23 }
0x3f6c   :  { %v3343_v3 = vpop.permute.xlu0 %3342 }
0x3f6d   :  { %v3345_v14 = vmul.f32 %v3343_v3, %v3340_v9 }
0x3f6f   :  { %v3348_v17 = vadd.f32 %v3347_v57, %v3345_v14 }
0x3f71   :  { %3350 = vrot.lane.b32.xlu1 %v3348_v17, %s7647_s23  ;;  %v3450_v32 = vrot.slane %v3348_v17, 6 }
0x3fe3   :  { %v3351_v18 = vpop.permute.xlu1 %3350 }
0x3fe4   :  { %6714 = vmatmul.mubr.msk.f32.vlgmr.msra.gmra.mrb[32].mxu1 %vm241_vm3, %v3351_v18 }
0x3fe5   :  { %7203 = vmatpush3.bf16.msra.mxu1 %v7846_v49  ;;  %6735 = vmatprep.mubr.msk.f32.mxu1 %vm7642_vm0, %v7643_v1 }
0x3fe6   :  { %7204 = vmatprep.subr.bf16.mxu1 %v7639_v0 }
0x3fe9   :  { %7206 = vmatpush3.bf16.msra.mxu1 %v7851_v56 }
0x3fea   :  { %7213 = vmatprep.subr.bf16.mxu1 %v7639_v0 }
0x40b7   :  { %v3420_v20 = vpop.f32.mrb[32].mxu1 }
0x40b8   :  { %v3421_v21 = vadd.f32 %v8303_v54, %v3420_v20  ;;  %v6715_v22 = vpop.f32.mrb[33].mxu1 }
0x40ba   :  { %v3425_v23 = vrot.slane %v3421_v21, 6 }
0x40bc   :  { %3434 = vrot.lane.b32.xlu0 %v3425_v23, %s7646_s22  ;;  %v3427_v24 = vadd.f32 %v3425_v23, %v8313_v61 }
0x40be   :  { %v5970_v25 = vmul.f32 -1.442695, %v3427_v24 }
0x40c0   :  { %7508 = vpow2.f32 %v5970_v25 }
0x40ca   :  { %v7509_v52 = vpop.eup %7508 }
0x40cb   :  { %v3431_v26 = vadd.f32 1.0, %v7509_v52 }
0x40cd   :  { %7510 = vrcp.f32 %v3431_v26 }
0x40d7   :  { %v7511_v27 = vpop.eup %7510 }
0x40d8   :  { %v3444_v33 = vsub.f32 1.0, %v7511_v27  ;;  %v3452_v36 = vmul.f32 %v7511_v27, %v3450_v32 }
0x412e   :  { %v3435_v16 = vpop.permute.xlu0 %3434 }
0x412f   :  { %v3437_v28 = vmul.f32 %v7511_v27, %v3435_v16 }
0x4131   :  { %3439 = vrot.lane.b32.xlu1 %v3437_v28, %s7646_s22 }
0x41a3   :  { %v3440_v29 = vpop.permute.xlu1 %3439 }
0x41a4   :  { %v3442_v30 = vadd.f32 %v3440_v29, %v8313_v61 }
0x41a6   :  { %7512 = vtanh.f32 %v3442_v30 }
0x41b0   :  { %v7513_v31 = vpop.eup %7512 }
0x41b1   :  { %3446 = vrot.lane.b32.xlu0 %v7513_v31, %s7647_s23 }
0x4223   :  { %v3447_v34 = vpop.permute.xlu0 %3446 }
0x4224   :  { %v3449_v35 = vmul.f32 %v3447_v34, %v3444_v33  ;;  %v8372_v33 = vadd.f32 %v8310_v60, %v8307_v48 }
0x4226   :  { %v3453_v38 = vadd.f32 %v3452_v36, %v3449_v35 }
0x4228   :  { %v3455_v59 = vrot.slane %v3453_v38, 2  ;;  %v3556_v37 = vrot.slane %v3453_v38, 6 }
0x422a   :  { %3456 = vrot.lane.b32.xlu1 %v3455_v59, %s7647_s23 }
0x429c   :  { %v3457_v19 = vpop.permute.xlu1 %3456 }
0x429d   :  { %6725 = vmatmul.mubr.msk.f32.vlgmr.msra.gmra.mrb[30].mxu0 %vm241_vm3, %v3457_v19 }
0x429e   :  { %7209 = vmatpush3.bf16.msra.mxu0 %v7846_v49  ;;  %6746 = vmatprep.mubr.msk.f32.mxu0 %vm7642_vm0, %v7643_v1 }
0x429f   :  { %7210 = vmatprep.subr.bf16.mxu0 %v7639_v0 }
0x42a2   :  { %7212 = vmatpush3.bf16.msra.mxu0 %v7851_v56 }
0x42a3   :  { %7219 = vmatprep.subr.bf16.mxu0 %v7639_v0 }
0x4370   :  { %v3526_v39 = vpop.f32.mrb[30].mxu0 }
0x4371   :  { %v3527_v40 = vadd.f32 %v8303_v54, %v3526_v39  ;;  %v6726_v42 = vpop.f32.mrb[31].mxu0 }
0x4373   :  { %v3531_v15 = vrot.slane %v3527_v40, 4 }
0x4375   :  { %3540 = vrot.lane.b32.xlu0 %v3531_v15, %s7646_s22  ;;  %v3533_v5 = vadd.f32 %v3531_v15, %v8313_v61 }
0x4377   :  { %v5972_v44 = vmul.f32 -1.442695, %v3533_v5 }
0x4379   :  { %7514 = vpow2.f32 %v5972_v44 }
0x4383   :  { %v7515_v45 = vpop.eup %7514 }
0x4384   :  { %v3537_v13 = vadd.f32 1.0, %v7515_v45 }
0x4386   :  { %7516 = vrcp.f32 %v3537_v13 }
0x4390   :  { %v7517_v47 = vpop.eup %7516 }
0x4391   :  { %v3550_v62 = vsub.f32 1.0, %v7517_v47  ;;  %v3558_v2 = vmul.f32 %v7517_v47, %v3556_v37 }
0x43e7   :  { %v3541_v50 = vpop.permute.xlu0 %3540 }
0x43e8   :  { %v3543_v46 = vmul.f32 %v7517_v47, %v3541_v50 }
0x43ea   :  { %3545 = vrot.lane.b32.xlu1 %v3543_v46, %s7646_s22 }
0x445c   :  { %v3546_v10 = vpop.permute.xlu1 %3545 }
0x445d   :  { %v3548_v55 = vadd.f32 %v3546_v10, %v8313_v61 }
0x445f   :  { %7518 = vtanh.f32 %v3548_v55 }
0x4469   :  { %v7519_v58 = vpop.eup %7518 }
0x446a   :  { %3552 = vrot.lane.b32.xlu0 %v7519_v58, %s7647_s23 }
0x44dc   :  { %v3553_v63 = vpop.permute.xlu0 %3552 }
0x44dd   :  { %v3555_v4 = vmul.f32 %v3553_v63, %v3550_v62 }
0x44df   :  { %v3559_v6 = vadd.f32 %v3558_v2, %v3555_v4 }
0x44e1   :  { %v3561_v11 = vrot.slane %v3559_v6, 4  ;;  %v3662_v25 = vrot.slane %v3559_v6, 6 }
0x44e3   :  { %3562 = vrot.lane.b32.xlu1 %v3561_v11, %s7647_s23 }
0x4555   :  { %v3563_v12 = vpop.permute.xlu1 %3562 }
0x4556   :  { %6736 = vmatmul.mubr.msk.f32.vlgmr.msra.gmra.mrb[34].mxu1 %vm241_vm3, %v3563_v12 }
0x4557   :  { %7215 = vmatpush3.bf16.msra.mxu1 %v7846_v49  ;;  %6757 = vmatprep.mubr.msk.f32.mxu1 %vm7642_vm0, %v7643_v1 }
0x4558   :  { %7216 = vmatprep.subr.bf16.mxu1 %v7639_v0 }
0x455b   :  { %7218 = vmatpush3.bf16.msra.mxu1 %v7851_v56 }
0x455c   :  { %7225 = vmatprep.subr.bf16.mxu1 %v7639_v0 }
0x4629   :  { %v3632_v7 = vpop.f32.mrb[34].mxu1 }
0x462a   :  { %v3633_v8 = vadd.f32 %v8303_v54, %v3632_v7  ;;  %v6737_v53 = vpop.f32.mrb[35].mxu1 }
0x462c   :  { %v3637_v9 = vrot.slane %v3633_v8, 2 }
0x462e   :  { %3646 = vrot.lane.b32.xlu0 %v3637_v9, %s7646_s22  ;;  %v3639_v3 = vadd.f32 %v3637_v9, %v8313_v61 }
0x4630   :  { %v5974_v57 = vmul.f32 -1.442695, %v3639_v3 }
0x4632   :  { %7520 = vpow2.f32 %v5974_v57 }
0x463c   :  { %v7521_v14 = vpop.eup %7520 }
0x463d   :  { %v3643_v17 = vadd.f32 1.0, %v7521_v14  ;;  %v7635_v14 = vld [vmem:[%s7694_s13] sm:$0xff] }
0x463f   :  { %7522 = vrcp.f32 %v3643_v17 }
0x4649   :  { %v7523_v18 = vpop.eup %7522 }
0x464a   :  { %v3656_v52 = vsub.f32 1.0, %v7523_v18  ;;  %v3664_v27 = vmul.f32 %v7523_v18, %v3662_v25 }
0x46a0   :  { %v3647_v20 = vpop.permute.xlu0 %3646 }
0x46a1   :  { %v3649_v21 = vmul.f32 %v7523_v18, %v3647_v20 }
0x46a3   :  { %3651 = vrot.lane.b32.xlu1 %v3649_v21, %s7646_s22 }
0x4715   :  { %v3652_v22 = vpop.permute.xlu1 %3651 }
0x4716   :  { %v3654_v23 = vadd.f32 %v3652_v22, %v8313_v61 }
0x4718   :  { %7524 = vtanh.f32 %v3654_v23 }
0x4722   :  { %v7525_v24 = vpop.eup %7524 }
0x4723   :  { %3658 = vrot.lane.b32.xlu0 %v7525_v24, %s7647_s23 }
0x4795   :  { %v3659_v26 = vpop.permute.xlu0 %3658 }
0x4796   :  { %v3661_v16 = vmul.f32 %v3659_v26, %v3656_v52 }
0x4798   :  { %v3665_v28 = vadd.f32 %v3664_v27, %v3661_v16 }
0x479a   :  { %v3667_v29 = vrot.slane %v3665_v28, 6 }
0x479c   :  { %3668 = vrot.lane.b32.xlu1 %v3667_v29, %s7647_s23 }
0x480e   :  { %v3669_v30 = vpop.permute.xlu1 %3668 }
0x480f   :  { %6747 = vmatmul.mubr.msk.f32.vlgmr.msra.gmra.mrb[32].mxu0 %vm241_vm3, %v3669_v30  ;;  %v3981_v30 = vld [vmem:[%s5901_s18 + $0x8] sm:$0xff] }
0x4810   :  { %7221 = vmatpush3.bf16.msra.mxu0 %v7846_v49  ;;  %6768 = vmatprep.mubr.msk.f32.mxu0 %vm7642_vm0, %v7643_v1 }
0x4811   :  { %7222 = vmatprep.subr.bf16.mxu0 %v7639_v0 }
0x4814   :  { %7224 = vmatpush3.bf16.msra.mxu0 %v7851_v56 }
0x48e2   :  { %v3738_v61 = vpop.f32.mrb[32].mxu0 }
0x48e3   :  { %v3739_v31 = vadd.f32 %v8303_v54, %v3738_v61  ;;  %v6748_v32 = vpop.f32.mrb[33].mxu0  ;;  %v3982_v61 = vld [vmem:[%s5901_s18 + $0x10] sm:$0xff] }
0x48e4   :  { %v3983_v32 = vld [vmem:[%s5901_s18 + $0x18] sm:$0xff] }
0x48e5   :  { %3750 = vrot.lane.b32.xlu0 %v3739_v31, %s7646_s22  ;;  %v3742_v34 = vadd.f32 %v3739_v31, %v8372_v33 }
0x48e7   :  { %v5976_v49 = vmul.f32 -1.442695, %v3742_v34  ;;  %v8404_v34 = vpack.c.bf16 %v3983_v32, %v3982_v61 }
0x48e9   :  { %7526 = vpow2.f32 %v5976_v49 }
0x48f3   :  { %v7527_v35 = vpop.eup %7526 }
0x48f4   :  { %v3746_v36 = vadd.f32 1.0, %v7527_v35 }
0x48f6   :  { %7528 = vrcp.f32 %v3746_v36 }
0x4900   :  { %v7529_v38 = vpop.eup %7528 }
0x4901   :  { %v3760_v48 = vsub.f32 1.0, %v7529_v38  ;;  %v3767_v42 = vmul.f32 %v7529_v38, %v3667_v29  ;;  %v3980_v29 = vld [vmem:[%s5901_s18] sm:$0xff] }
0x4902   :  { %v8401_v31 = vpack.c.bf16 %v3981_v30, %v3980_v29 }
0x4957   :  { %v3751_v59 = vpop.permute.xlu0 %3750 }
0x4958   :  { %v3753_v56 = vmul.f32 %v7529_v38, %v3751_v59  ;;  %v4078_v59 = vld [vmem:[%s8412_s25] sm:$0x3f] }
0x4959   :  { %6782 = vmatprep.subr.msk.mxu0 %vm151_vm1, %v4078_v59 }
0x495a   :  { %3755 = vrot.lane.b32.xlu1 %v3753_v56, %s7646_s22  ;;  %v4164_v56 = vld [vmem:[%s5886_s1] sm:$0xff] }
0x49cc   :  { %v3756_v19 = vpop.permute.xlu1 %3755 }
0x49cd   :  { %v3758_v39 = vadd.f32 %v3756_v19, %v8372_v33  ;;  %v4165_v19 = vld [vmem:[%s5886_s1 + $0x8] sm:$0xff] }
0x49cf   :  { %7530 = vtanh.f32 %v3758_v39  ;;  %v8419_v39 = vpack.c.bf16 %v4165_v19, %v4164_v56 }
0x49d9   :  { %v7531_v40 = vpop.eup %7530 }
0x49da   :  { %3762 = vrot.lane.b32.xlu0 %v7531_v40, %s7647_s23  ;;  %v4166_v40 = vld [vmem:[%s5886_s1 + $0x10] sm:$0xff] }
0x4a4c   :  { %v3763_v60 = vpop.permute.xlu0 %3762 }
0x4a4d   :  { %v3765_v15 = vmul.f32 %v3763_v60, %v3760_v48  ;;  %v4167_v48 = vld [vmem:[%s5886_s1 + $0x18] sm:$0xff] }
0x4a4f   :  { %v3768_v5 = vadd.f32 %v3767_v42, %v3765_v15  ;;  %v7636_v42 = vld [vmem:[%s7694_s13 + $0x8] sm:$0x3f]  ;;  %s7671_s13 = smov 16  }
0x4a50   :  { %s5887_s4 = sld [smem:[%s8715_s0 + %s7671_s13]]  }
0x4a51   :  { %3770 = vrot.lane.b32.xlu1 %v3768_v5, %s7647_s23  ;;  %v3870_v11 = vrot.slane %v3768_v5, 6  ;;  %v8426_v5 = vpack.c.bf16 %v4167_v48, %v4166_v40 }
0x4ac3   :  { %v3771_v44 = vpop.permute.xlu1 %3770 }
0x4ac4   :  { %6758 = vmatmul.mubr.msk.f32.vlgmr.msra.gmra.mrb[36].mxu1 %vm241_vm3, %v3771_v44 }
0x4ac5   :  { %6779 = vmatprep.mubr.msk.f32.mxu1 %vm7642_vm0, %v7643_v1  ;;  %7227 = vmatpush3.bf16.msra.mxu1 %v8401_v31 }
0x4ac6   :  { %7228 = vmatprep.subr.bf16.mxu1 %v7639_v0 }
0x4ac9   :  { %7230 = vmatpush3.bf16.msra.mxu1 %v8404_v34 }
0x4aca   :  { %7237 = vmatprep.subr.bf16.mxu1 %v7639_v0 }
0x4b97   :  { %v3840_v45 = vpop.f32.mrb[36].mxu1 }
0x4b98   :  { %v3841_v13 = vadd.f32 %v8303_v54, %v3840_v45  ;;  %v6759_v47 = vpop.f32.mrb[37].mxu1 }
0x4b9a   :  { %v3845_v50 = vrot.slane %v3841_v13, 6  ;;  %v5984_v13 = vld [vmem:[%s5887_s4] ss:$0 sm:$0xff] }
0x4b9c   :  { %3854 = vrot.lane.b32.xlu0 %v3845_v50, %s7646_s22  ;;  %v3847_v46 = vadd.f32 %v3845_v50, %v8372_v33 }
0x4b9e   :  { %v5978_v10 = vmul.f32 -1.442695, %v3847_v46  ;;  %v8454_v46 = vld [vmem:[%s5888_s10] ss:$0 sm:$0xff] }
0x4ba0   :  { %7532 = vpow2.f32 %v5978_v10 }
0x4baa   :  { %v7533_v55 = vpop.eup %7532 }
0x4bab   :  { %v3851_v58 = vadd.f32 1.0, %v7533_v55 }
0x4bad   :  { %7534 = vrcp.f32 %v3851_v58 }
0x4bb7   :  { %v7535_v37 = vpop.eup %7534 }
0x4bb8   :  { %v3864_v12 = vsub.f32 1.0, %v7535_v37  ;;  %v3872_v53 = vmul.f32 %v7535_v37, %v3870_v11 }
0x4c0e   :  { %v3855_v62 = vpop.permute.xlu0 %3854 }
0x4c0f   :  { %v3857_v63 = vmul.f32 %v7535_v37, %v3855_v62  ;;  %v5981_v37 = vld [vmem:[%s8461_s15] ss:$0 sm:$0xff] }
0x4c11   :  { %3859 = vrot.lane.b32.xlu1 %v3857_v63, %s7646_s22 }
0x4c83   :  { %v3860_v2 = vpop.permute.xlu1 %3859 }
0x4c84   :  { %v3862_v4 = vadd.f32 %v3860_v2, %v8372_v33 }
0x4c86   :  { %7536 = vtanh.f32 %v3862_v4  ;;  %v5983_v4 = vld [vmem:[%s8412_s25 + $0x1] ss:$0 sm:$0xff] }
0x4c90   :  { %v7537_v6 = vpop.eup %7536 }
0x4c91   :  { %3866 = vrot.lane.b32.xlu0 %v7537_v6, %s7647_s23 }
0x4d03   :  { %v3867_v7 = vpop.permute.xlu0 %3866 }
0x4d04   :  { %v3869_v8 = vmul.f32 %v3867_v7, %v3864_v12 }
0x4d06   :  { %v3873_v9 = vadd.f32 %v3872_v53, %v3869_v8 }
0x4d08   :  { %v3875_v3 = vrot.slane %v3873_v9, 2 }
0x4d0a   :  { %3876 = vrot.lane.b32.xlu1 %v3875_v3, %s7647_s23 }
0x4d7c   :  { %v3877_v57 = vpop.permute.xlu1 %3876 }
0x4d7d   :  { %6769 = vmatmul.mubr.msk.f32.vlgmr.msra.gmra.mrb[34].mxu0 %vm241_vm3, %v3877_v57 }
0x4d7e   :  { %6784 = vmatprep.mubr.msk.f32.mxu0 %vm144_vm2, %v7635_v14  ;;  %6783 = vmatpush3.msk.msra.mxu0 %vm151_vm1, %v4078_v59 }
0x4d7f   :  { %7231 = vmatprep.subr.bf16.mxu0 %v7639_v0 }
0x4d81   :  { %6785 = vmatmul.mubr.msk.f32.vlgmr.msra.gmra.mrb[36].mxu0 %vm144_vm2, %v7636_v42 }
0x4d82   :  { %7233 = vmatpush3.bf16.msra.mxu0 %v8419_v39  ;;  %6795 = vmatprep.mubr.msk.f32.mxu0 %vm7642_vm0, %v7643_v1 }
0x4d83   :  { %7234 = vmatprep.subr.bf16.mxu0 %v7639_v0 }
0x4d86   :  { %7236 = vmatpush3.bf16.msra.mxu0 %v8426_v5 }
0x4d87   :  { %7243 = vmatprep.subr.bf16.mxu0 %v7639_v0 }
0x4d89   :  { %6796 = vmatmul.mubr.f32.vlgmr.msra.gmra.mrb[38].mxu0 %v7643_v1 }
0x4d8a   :  { %7245 = vmatpush3.bf16.msra.mxu0 %v8419_v39  ;;  %6817 = vmatprep.mubr.msk.f32.mxu0 %vm7642_vm0, %v7643_v1 }
0x4d8b   :  { %7246 = vmatprep.subr.bf16.mxu0 %v7639_v0 }
0x4d8e   :  { %7248 = vmatpush3.bf16.msra.mxu0 %v8426_v5 }
0x4d8f   :  { %7255 = vmatprep.subr.bf16.mxu0 %v7639_v0 }
0x4e50   :  { %v3946_v17 = vpop.f32.mrb[34].mxu0 }
0x4e51   :  { %v3947_v18 = vadd.f32 %v8303_v54, %v3946_v17  ;;  %v6770_v20 = vpop.f32.mrb[35].mxu0 }
0x4e53   :  { %v3951_v21 = vrot.slane %v3947_v18, 4 }
0x4e54   :  { %v6786_v45 = vpop.f32.mrb[36].mxu0 }
0x4e55   :  { %3960 = vrot.lane.b32.xlu0 %v3951_v21, %s7646_s22  ;;  %v3953_v22 = vadd.f32 %v3951_v21, %v8372_v33  ;;  %v4161_v47 = vadd.f32 %v6786_v45, %v5984_v13  ;;  %v4155_v50 = vpop.f32.mrb[37].mxu0 }
0x4e56   :  { %v4156_v11 = vadd.f32 %v5984_v13, %v4155_v50 }
0x4e57   :  { %v5980_v23 = vmul.f32 -1.442695, %v3953_v22 }
0x4e59   :  { %7538 = vpow2.f32 %v5980_v23 }
0x4e5c   :  { %v4242_v10 = vpop.f32.mrb[38].mxu0 }
0x4e5d   :  { %v4243_v55 = vadd.f32 %v8454_v46, %v4242_v10  ;;  %v6797_v58 = vpop.f32.mrb[39].mxu0 }
0x4e63   :  { %v7539_v24 = vpop.eup %7538 }
0x4e64   :  { %v3957_v25 = vadd.f32 1.0, %v7539_v24 }
0x4e66   :  { %7540 = vrcp.f32 %v3957_v25 }
0x4e70   :  { %v7541_v52 = vpop.eup %7540 }
0x4e71   :  { %v3970_v49 = vsub.f32 1.0, %v7541_v52 }
0x4ec7   :  { %v3961_v26 = vpop.permute.xlu0 %3960 }
0x4ec8   :  { %v3963_v27 = vmul.f32 %v7541_v52, %v3961_v26 }
0x4eca   :  { %3965 = vrot.lane.b32.xlu1 %v3963_v27, %s7646_s22 }
0x4f3c   :  { %v3966_v16 = vpop.permute.xlu1 %3965 }
0x4f3d   :  { %v3968_v28 = vadd.f32 %v3966_v16, %v8372_v33  ;;  %v3976_v33 = vrot.slane %v3873_v9, 6 }
0x4f3f   :  { %7542 = vtanh.f32 %v3968_v28  ;;  %v3978_v36 = vmul.f32 %v7541_v52, %v3976_v33 }
0x4f49   :  { %v7543_v54 = vpop.eup %7542 }
0x4f4a   :  { %3972 = vrot.lane.b32.xlu0 %v7543_v54, %s7647_s23 }
0x4fbc   :  { %v3973_v35 = vpop.permute.xlu0 %3972 }
0x4fbd   :  { %v3975_v38 = vmul.f32 %v3973_v35, %v3970_v49 }
0x4fbf   :  { %v3979_v60 = vadd.f32 %v3978_v36, %v3975_v38 }
0x4fc1   :  { %v3992_v15 = vrot.slane %v3979_v60, 4 }
0x4fc3   :  { %3993 = vrot.lane.b32.xlu1 %v3992_v15, %s7647_s23 }
0x4fc7   :  { %4254 = vrot.lane.b32.xlu1 %v4243_v55, %s7646_s22 }
0x5035   :  { %v3994_v44 = vpop.permute.xlu1 %3993 }
0x5036   :  { %6780 = vmatmul.mubr.msk.f32.vlgmr.msra.gmra.mrb[38].mxu1 %vm241_vm3, %v3994_v44 }
0x5037   :  { %7239 = vmatpush3.bf16.msra.mxu1 %v8419_v39  ;;  %6806 = vmatprep.mubr.msk.f32.mxu1 %vm7642_vm0, %v7643_v1 }
0x5038   :  { %7240 = vmatprep.subr.bf16.mxu1 %v7639_v0 }
0x5039   :  { %v4255_v24 = vpop.permute.xlu1 %4254 }
0x503b   :  { %7242 = vmatpush3.bf16.msra.mxu1 %v8426_v5 }
0x503c   :  { %7249 = vmatprep.subr.bf16.mxu1 %v7639_v0 }
0x5109   :  { %v4063_v62 = vpop.f32.mrb[38].mxu1 }
0x510a   :  { %v4064_v63 = vadd.f32 %v5981_v37, %v4063_v62  ;;  %v6781_v2 = vpop.f32.mrb[39].mxu1 }
0x510c   :  { %4070 = vperm.xlu0 %7373, %v4064_v63  }
0x5110   :  { %7374 = vset.pattern.permute.xlu0 %v7655_v51 }
0x518b   :  { %v8466_v6 = vpop.permute.xlu0 %4070 }
0x518c   :  { %v4077_v12 = vmul.f32 %v5983_v4, %v8466_v6 }
0x518e   :  { %v4169_v7 = vsub.f32 %v4156_v11, %v4077_v12  ;;  %v4273_v8 = vrot.slane %v4077_v12, 6  ;;  %v4381_v53 = vrot.slane %v4077_v12, 4  ;;  %v4490_v9 = vrot.slane %v4077_v12, 2 }
0x518f   :  { %v8469_v3 = vsub.f32 %v4161_v47, %v4077_v12 }
0x5190   :  { %v4246_v57 = vadd.f32 %v4243_v55, %v4169_v7  ;;  %v4275_v14 = vsub.f32 %v4156_v11, %v4273_v8  ;;  %v8471_v17 = vsub.f32 %v4156_v11, %v4381_v53  ;;  %v8473_v18 = vsub.f32 %v4156_v11, %v4490_v9 }
0x5191   :  { %v8475_v20 = vsub.f32 %v4161_v47, %v4273_v8  ;;  %v8477_v51 = vsub.f32 %v4161_v47, %v4381_v53 }
0x5192   :  { %v5989_v21 = vmul.f32 -1.442695, %v4246_v57 }
0x5194   :  { %7544 = vpow2.f32 %v5989_v21 }
0x519e   :  { %v7545_v22 = vpop.eup %7544 }
0x519f   :  { %v4250_v23 = vadd.f32 1.0, %v7545_v22 }
0x51a1   :  { %7546 = vrcp.f32 %v4250_v23 }
0x51ab   :  { %v7547_v25 = vpop.eup %7546 }
0x51ac   :  { %v4257_v52 = vmul.f32 %v7547_v25, %v4255_v24  ;;  %v4264_v28 = vsub.f32 1.0, %v7547_v25  ;;  %v4270_v29 = vmul.f32 0.0, %v7547_v25 }
0x51ae   :  { %4259 = vrot.lane.b32.xlu1 %v4257_v52, %s7646_s22 }
0x5220   :  { %v4260_v26 = vpop.permute.xlu1 %4259 }
0x5221   :  { %v4262_v27 = vadd.f32 %v4260_v26, %v4169_v7 }
0x5223   :  { %7548 = vtanh.f32 %v4262_v27 }
0x522d   :  { %v7549_v16 = vpop.eup %7548 }
0x522e   :  { %4266 = vrot.lane.b32.xlu0 %v7549_v16, %s7647_s23 }
0x52a0   :  { %v4267_v54 = vpop.permute.xlu0 %4266 }
0x52a1   :  { %v4269_v30 = vmul.f32 %v4267_v54, %v4264_v28 }
0x52a3   :  { %v8481_v61 = vadd.f32 %v4270_v29, %v4269_v30 }
0x52a5   :  { %4277 = vrot.lane.b32.xlu1 %v8481_v61, %s7647_s23  ;;  %v4377_v13 = vrot.slane %v8481_v61, 6 }
0x5317   :  { %v4278_v32 = vpop.permute.xlu1 %4277 }
0x5318   :  { %6807 = vmatmul.mubr.msk.f32.vlgmr.msra.gmra.mrb[40].mxu1 %vm241_vm3, %v4278_v32 }
0x5319   :  { %7251 = vmatpush3.bf16.msra.mxu1 %v8419_v39  ;;  %6828 = vmatprep.mubr.msk.f32.mxu1 %vm7642_vm0, %v7643_v1 }
0x531a   :  { %7252 = vmatprep.subr.bf16.mxu1 %v7639_v0 }
0x531d   :  { %7254 = vmatpush3.bf16.msra.mxu1 %v8426_v5 }
0x531e   :  { %7261 = vmatprep.subr.bf16.mxu1 %v7639_v0 }
0x53eb   :  { %v4347_v33 = vpop.f32.mrb[40].mxu1 }
0x53ec   :  { %v4348_v49 = vadd.f32 %v8454_v46, %v4347_v33  ;;  %v6808_v35 = vpop.f32.mrb[41].mxu1 }
0x53ee   :  { %v4352_v36 = vrot.slane %v4348_v49, 6 }
0x53f0   :  { %4361 = vrot.lane.b32.xlu0 %v4352_v36, %s7646_s22  ;;  %v4354_v38 = vadd.f32 %v4352_v36, %v4275_v14 }
0x53f2   :  { %v5991_v59 = vmul.f32 -1.442695, %v4354_v38 }
0x53f4   :  { %7550 = vpow2.f32 %v5991_v59 }
0x53fe   :  { %v7551_v56 = vpop.eup %7550 }
0x53ff   :  { %v4358_v19 = vadd.f32 1.0, %v7551_v56 }
0x5401   :  { %7552 = vrcp.f32 %v4358_v19 }
0x540b   :  { %v7553_v40 = vpop.eup %7552 }
0x540c   :  { %v4371_v45 = vsub.f32 1.0, %v7553_v40  ;;  %v4379_v10 = vmul.f32 %v7553_v40, %v4377_v13 }
0x5462   :  { %v4362_v48 = vpop.permute.xlu0 %4361 }
0x5463   :  { %v4364_v60 = vmul.f32 %v7553_v40, %v4362_v48 }
0x5465   :  { %4366 = vrot.lane.b32.xlu1 %v4364_v60, %s7646_s22 }
0x54d7   :  { %v4367_v42 = vpop.permute.xlu1 %4366 }
0x54d8   :  { %v4369_v15 = vadd.f32 %v4367_v42, %v4275_v14 }
0x54da   :  { %7554 = vtanh.f32 %v4369_v15 }
0x54e4   :  { %v7555_v44 = vpop.eup %7554 }
0x54e5   :  { %4373 = vrot.lane.b32.xlu0 %v7555_v44, %s7647_s23 }
0x5557   :  { %v4374_v47 = vpop.permute.xlu0 %4373 }
0x5558   :  { %v4376_v50 = vmul.f32 %v4374_v47, %v4371_v45 }
0x555a   :  { %v4380_v55 = vadd.f32 %v4379_v10, %v4376_v50 }
0x555c   :  { %v4385_v58 = vrot.slane %v4380_v55, 2  ;;  %v4486_v24 = vrot.slane %v4380_v55, 6  ;;  %v4916_v16 = vsel %vm972_vm4, %v8481_v61, %v4380_v55 }
0x555e   :  { %4386 = vrot.lane.b32.xlu1 %v4385_v58, %s7647_s23 }
0x55d0   :  { %v4387_v37 = vpop.permute.xlu1 %4386 }
0x55d1   :  { %6818 = vmatmul.mubr.msk.f32.vlgmr.msra.gmra.mrb[40].mxu0 %vm241_vm3, %v4387_v37 }
0x55d2   :  { %7257 = vmatpush3.bf16.msra.mxu0 %v8419_v39  ;;  %6839 = vmatprep.mubr.msk.f32.mxu0 %vm7642_vm0, %v7643_v1 }
0x55d3   :  { %7258 = vmatprep.subr.bf16.mxu0 %v7639_v0 }
0x55d6   :  { %7260 = vmatpush3.bf16.msra.mxu0 %v8426_v5 }
0x55d7   :  { %7267 = vmatprep.subr.bf16.mxu0 %v7639_v0 }
0x56a4   :  { %v4456_v62 = vpop.f32.mrb[40].mxu0 }
0x56a5   :  { %v4457_v63 = vadd.f32 %v8454_v46, %v4456_v62  ;;  %v6819_v2 = vpop.f32.mrb[41].mxu0 }
0x56a7   :  { %v4461_v4 = vrot.slane %v4457_v63, 4 }
0x56a9   :  { %4470 = vrot.lane.b32.xlu0 %v4461_v4, %s7646_s22  ;;  %v4463_v11 = vadd.f32 %v4461_v4, %v8471_v17 }
0x56ab   :  { %v5993_v12 = vmul.f32 -1.442695, %v4463_v11 }
0x56ad   :  { %7556 = vpow2.f32 %v5993_v12 }
0x56b7   :  { %v7557_v7 = vpop.eup %7556 }
0x56b8   :  { %v4467_v8 = vadd.f32 1.0, %v7557_v7 }
0x56ba   :  { %7558 = vrcp.f32 %v4467_v8 }
0x56c4   :  { %v7559_v53 = vpop.eup %7558 }
0x56c5   :  { %v4480_v23 = vsub.f32 1.0, %v7559_v53  ;;  %v4488_v52 = vmul.f32 %v7559_v53, %v4486_v24 }
0x571b   :  { %v4471_v9 = vpop.permute.xlu0 %4470 }
0x571c   :  { %v4473_v57 = vmul.f32 %v7559_v53, %v4471_v9 }
0x571e   :  { %4475 = vrot.lane.b32.xlu1 %v4473_v57, %s7646_s22 }
0x5790   :  { %v4476_v14 = vpop.permute.xlu1 %4475 }
0x5791   :  { %v4478_v21 = vadd.f32 %v4476_v14, %v8471_v17 }
0x5793   :  { %7560 = vtanh.f32 %v4478_v21 }
0x579d   :  { %v7561_v22 = vpop.eup %7560 }
0x579e   :  { %4482 = vrot.lane.b32.xlu0 %v7561_v22, %s7647_s23 }
0x5810   :  { %v4483_v25 = vpop.permute.xlu0 %4482 }
0x5811   :  { %v4485_v26 = vmul.f32 %v4483_v25, %v4480_v23 }
0x5813   :  { %v4489_v27 = vadd.f32 %v4488_v52, %v4485_v26 }
0x5815   :  { %v4494_v28 = vrot.slane %v4489_v27, 4  ;;  %v4917_v54 = vsel %vm974_vm5, %v4916_v16, %v4489_v27  ;;  %v4595_v42 = vrot.slane %v4489_v27, 6 }
0x5817   :  { %4495 = vrot.lane.b32.xlu1 %v4494_v28, %s7647_s23 }
0x5889   :  { %v4496_v29 = vpop.permute.xlu1 %4495 }
0x588a   :  { %6829 = vmatmul.mubr.msk.f32.vlgmr.msra.gmra.mrb[42].mxu1 %vm241_vm3, %v4496_v29 }
0x588b   :  { %7263 = vmatpush3.bf16.msra.mxu1 %v8419_v39  ;;  %6850 = vmatprep.mubr.msk.f32.mxu1 %vm7642_vm0, %v7643_v1 }
0x588c   :  { %7264 = vmatprep.subr.bf16.mxu1 %v7639_v0 }
0x588f   :  { %7266 = vmatpush3.bf16.msra.mxu1 %v8426_v5 }
0x595d   :  { %v4565_v17 = vpop.f32.mrb[42].mxu1 }
0x595e   :  { %v4566_v30 = vadd.f32 %v8454_v46, %v4565_v17  ;;  %v6830_v61 = vpop.f32.mrb[43].mxu1 }
0x5960   :  { %v4570_v32 = vrot.slane %v4566_v30, 2 }
0x5962   :  { %4579 = vrot.lane.b32.xlu0 %v4570_v32, %s7646_s22  ;;  %v4572_v33 = vadd.f32 %v4570_v32, %v8473_v18 }
0x5964   :  { %v5995_v49 = vmul.f32 -1.442695, %v4572_v33 }
0x5966   :  { %7562 = vpow2.f32 %v5995_v49 }
0x5970   :  { %v7563_v35 = vpop.eup %7562 }
0x5971   :  { %v4576_v36 = vadd.f32 1.0, %v7563_v35 }
0x5973   :  { %7564 = vrcp.f32 %v4576_v36 }
0x597d   :  { %v7565_v38 = vpop.eup %7564 }
0x597e   :  { %v4589_v60 = vsub.f32 1.0, %v7565_v38  ;;  %v4597_v44 = vmul.f32 %v7565_v38, %v4595_v42 }
0x59d4   :  { %v4580_v59 = vpop.permute.xlu0 %4579 }
0x59d5   :  { %v4582_v56 = vmul.f32 %v7565_v38, %v4580_v59 }
0x59d7   :  { %4584 = vrot.lane.b32.xlu1 %v4582_v56, %s7646_s22 }
0x5a49   :  { %v4585_v19 = vpop.permute.xlu1 %4584 }
0x5a4a   :  { %v4587_v40 = vadd.f32 %v4585_v19, %v8473_v18 }
0x5a4c   :  { %7566 = vtanh.f32 %v4587_v40 }
0x5a56   :  { %v7567_v48 = vpop.eup %7566 }
0x5a57   :  { %4591 = vrot.lane.b32.xlu0 %v7567_v48, %s7647_s23 }
0x5ac9   :  { %v4592_v15 = vpop.permute.xlu0 %4591 }
0x5aca   :  { %v4594_v45 = vmul.f32 %v4592_v15, %v4589_v60 }
0x5acc   :  { %v4598_v13 = vadd.f32 %v4597_v44, %v4594_v45 }
0x5ace   :  { %v4601_v47 = vrot.slane %v4598_v13, 6  ;;  %v8528_v50 = vsel %vm151_vm1, %v4917_v54, %v4598_v13 }
0x5ad0   :  { %4602 = vrot.lane.b32.xlu1 %v4601_v47, %s7647_s23 }
0x5b42   :  { %v4603_v10 = vpop.permute.xlu1 %4602 }
0x5b43   :  { %6840 = vmatmul.mubr.msk.f32.vlgmr.msra.gmra.mrb[42].mxu0 %vm241_vm3, %v4603_v10 }
0x5b44   :  { %7269 = vmatpush3.bf16.msra.mxu0 %v8419_v39  ;;  %6861 = vmatprep.mubr.msk.f32.mxu0 %vm7642_vm0, %v7643_v1 }
0x5b45   :  { %7270 = vmatprep.subr.bf16.mxu0 %v7639_v0 }
0x5b48   :  { %7272 = vmatpush3.bf16.msra.mxu0 %v8426_v5 }
0x5b49   :  { %7281 = vmatprep.subr.bf16.mxu0 %v7639_v0 }
0x5c16   :  { %v4672_v18 = vpop.f32.mrb[42].mxu0 }
0x5c17   :  { %v4673_v55 = vadd.f32 %v8454_v46, %v4672_v18  ;;  %v6841_v58 = vpop.f32.mrb[43].mxu0 }
0x5c18   :  { %v5019_v58 = vld [vmem:[%s5890_s5 + $0x10] sm:$0xff] }
0x5c19   :  { %4684 = vrot.lane.b32.xlu0 %v4673_v55, %s7646_s22  ;;  %v4676_v37 = vadd.f32 %v4673_v55, %v8469_v3  ;;  %v5017_v55 = vld [vmem:[%s5890_s5] sm:$0xff] }
0x5c1b   :  { %v5997_v62 = vmul.f32 -1.442695, %v4676_v37  ;;  %v5020_v37 = vld [vmem:[%s5890_s5 + $0x18] sm:$0xff] }
0x5c1d   :  { %7568 = vpow2.f32 %v5997_v62  ;;  %v4921_v62 = vld [vmem:[%s5889_s20] sm:$0xff] }
0x5c27   :  { %v7569_v39 = vpop.eup %7568 }
0x5c28   :  { %v4680_v63 = vadd.f32 1.0, %v7569_v39  ;;  %v4922_v39 = vld [vmem:[%s5889_s20 + $0x8] sm:$0xff] }
0x5c2a   :  { %7570 = vrcp.f32 %v4680_v63  ;;  %v7273_v63 = vpack.c.bf16 %v4922_v39, %v4921_v62 }
0x5c2c   :  { %7274 = vmatprep.subr.bf16.mxu1 %v7273_v63 }
0x5c34   :  { %v7571_v2 = vpop.eup %7570 }
0x5c35   :  { %v4694_v8 = vsub.f32 1.0, %v7571_v2  ;;  %v4701_v9 = vmul.f32 %v7571_v2, %v4601_v47 }
0x5c8b   :  { %v4685_v4 = vpop.permute.xlu0 %4684 }
0x5c8c   :  { %v4687_v11 = vmul.f32 %v7571_v2, %v4685_v4  ;;  %v4923_v2 = vld [vmem:[%s5889_s20 + $0x10] sm:$0xff]  ;;  %v4924_v4 = vld [vmem:[%s5889_s20 + $0x18] sm:$0xff] }
0x5c8e   :  { %4689 = vrot.lane.b32.xlu1 %v4687_v11, %s7646_s22  ;;  %v8581_v11 = vpack.c.bf16 %v5020_v37, %v5019_v58 }
0x5d00   :  { %v4690_v5 = vpop.permute.xlu1 %4689 }
0x5d01   :  { %v4692_v12 = vadd.f32 %v4690_v5, %v8469_v3  ;;  %v7277_v5 = vpack.c.bf16 %v4924_v4, %v4923_v2 }
0x5d03   :  { %7572 = vtanh.f32 %v4692_v12 }
0x5d0d   :  { %v7573_v7 = vpop.eup %7572 }
0x5d0e   :  { %4696 = vrot.lane.b32.xlu0 %v7573_v7, %s7647_s23 }
0x5d80   :  { %v4697_v53 = vpop.permute.xlu0 %4696 }
0x5d81   :  { %v4699_v57 = vmul.f32 %v4697_v53, %v4694_v8 }
0x5d83   :  { %v8544_v14 = vadd.f32 %v4701_v9, %v4699_v57 }
0x5d85   :  { %4705 = vrot.lane.b32.xlu1 %v8544_v14, %s7647_s23  ;;  %v4805_v32 = vrot.slane %v8544_v14, 6 }
0x5df7   :  { %v4706_v21 = vpop.permute.xlu1 %4705 }
0x5df8   :  { %6851 = vmatmul.mubr.msk.f32.vlgmr.msra.gmra.mrb[44].mxu1 %vm241_vm3, %v4706_v21 }
0x5df9   :  { %7276 = vmatpush3.bf16.msra.mxu1 %v7273_v63 }
0x5dfa   :  { %7278 = vmatprep.subr.bf16.mxu1 %v7277_v5 }
0x5dfd   :  { %7280 = vmatpush3.bf16.msra.mxu1 %v7277_v5 }
0x5dfe   :  { %7287 = vmatprep.subr.bf16.mxu1 %v7639_v0 }
0x5ecb   :  { %v4775_v22 = vpop.f32.mrb[44].mxu1 }
0x5ecc   :  { %v4776_v23 = vadd.f32 %v8454_v46, %v4775_v22  ;;  %v6852_v3 = vpop.f32.mrb[45].mxu1 }
0x5ece   :  { %v4780_v24 = vrot.slane %v4776_v23, 6  ;;  %v8603_v23 = vld [vmem:[%s5892_s28] ss:$0 sm:$0xff] }
0x5ed0   :  { %4789 = vrot.lane.b32.xlu0 %v4780_v24, %s7646_s22  ;;  %v4782_v25 = vadd.f32 %v4780_v24, %v8475_v20 }
0x5ed2   :  { %v5999_v52 = vmul.f32 -1.442695, %v4782_v25 }
0x5ed4   :  { %7574 = vpow2.f32 %v5999_v52 }
0x5ede   :  { %v7575_v26 = vpop.eup %7574 }
0x5edf   :  { %v4786_v27 = vadd.f32 1.0, %v7575_v26 }
0x5ee1   :  { %7576 = vrcp.f32 %v4786_v27 }
0x5eeb   :  { %v7577_v16 = vpop.eup %7576 }
0x5eec   :  { %v4799_v61 = vsub.f32 1.0, %v7577_v16  ;;  %v4807_v35 = vmul.f32 %v7577_v16, %v4805_v32 }
0x5f42   :  { %v4790_v28 = vpop.permute.xlu0 %4789 }
0x5f43   :  { %v4792_v54 = vmul.f32 %v7577_v16, %v4790_v28 }
0x5f45   :  { %4794 = vrot.lane.b32.xlu1 %v4792_v54, %s7646_s22 }
0x5fb7   :  { %v4795_v29 = vpop.permute.xlu1 %4794 }
0x5fb8   :  { %v4797_v17 = vadd.f32 %v4795_v29, %v8475_v20 }
0x5fba   :  { %7578 = vtanh.f32 %v4797_v17 }
0x5fc4   :  { %v7579_v30 = vpop.eup %7578 }
0x5fc5   :  { %4801 = vrot.lane.b32.xlu0 %v7579_v30, %s7647_s23 }
0x6037   :  { %v4802_v33 = vpop.permute.xlu0 %4801 }
0x6038   :  { %v4804_v49 = vmul.f32 %v4802_v33, %v4799_v61 }
0x603a   :  { %v8556_v36 = vadd.f32 %v4807_v35, %v4804_v49 }
0x603c   :  { %v4811_v38 = vrot.slane %v8556_v36, 2  ;;  %v4912_v7 = vrot.slane %v8556_v36, 6  ;;  %v4919_v21 = vsel %vm972_vm4, %v8544_v14, %v8556_v36  ;;  %v6002_v14 = vld [vmem:[%s5891_s2] ss:$0 sm:$0xff] }
0x603e   :  { %4812 = vrot.lane.b32.xlu1 %v4811_v38, %s7647_s23 }
0x60b0   :  { %v4813_v59 = vpop.permute.xlu1 %4812 }
0x60b1   :  { %6862 = vmatmul.mubr.msk.f32.vlgmr.msra.gmra.mrb[44].mxu0 %vm241_vm3, %v4813_v59 }
0x60b2   :  { %6883 = vmatprep.mubr.msk.f32.mxu0 %vm7642_vm0, %v7643_v1 }
0x6184   :  { %v4882_v20 = vpop.f32.mrb[44].mxu0 }
0x6185   :  { %v4883_v56 = vadd.f32 %v8454_v46, %v4882_v20  ;;  %v6863_v19 = vpop.f32.mrb[45].mxu0 }
0x6187   :  { %v4887_v40 = vrot.slane %v4883_v56, 4 }
0x6189   :  { %4896 = vrot.lane.b32.xlu0 %v4887_v40, %s7646_s22  ;;  %v4889_v48 = vadd.f32 %v4887_v40, %v8477_v51 }
0x618b   :  { %v6001_v60 = vmul.f32 -1.442695, %v4889_v48 }
0x618d   :  { %7580 = vpow2.f32 %v6001_v60 }
0x6197   :  { %v7581_v42 = vpop.eup %7580 }
0x6198   :  { %v4893_v15 = vadd.f32 1.0, %v7581_v42 }
0x619a   :  { %7582 = vrcp.f32 %v4893_v15 }
0x61a4   :  { %v7583_v44 = vpop.eup %7582 }
0x61a5   :  { %v4906_v12 = vsub.f32 1.0, %v7583_v44  ;;  %v4914_v53 = vmul.f32 %v7583_v44, %v4912_v7 }
0x61fb   :  { %v4897_v45 = vpop.permute.xlu0 %4896 }
0x61fc   :  { %v4899_v13 = vmul.f32 %v7583_v44, %v4897_v45 }
0x61fe   :  { %4901 = vrot.lane.b32.xlu1 %v4899_v13, %s7646_s22 }
0x6202   :  { %4934 = vrot.lane.b32.xlu1 %v8528_v50, %s7647_s23  ;;  %v5018_v50 = vld [vmem:[%s5890_s5 + $0x8] sm:$0xff] }
0x6270   :  { %v4902_v46 = vpop.permute.xlu1 %4901 }
0x6271   :  { %v4904_v47 = vadd.f32 %v4902_v46, %v8477_v51  ;;  %v8578_v51 = vpack.c.bf16 %v5018_v50, %v5017_v55 }
0x6273   :  { %7584 = vtanh.f32 %v4904_v47  ;;  %7283 = vmatpush3.bf16.msra.mxu0 %v8578_v51 }
0x6274   :  { %v4935_v10 = vpop.permute.xlu1 %4934  ;;  %7284 = vmatprep.subr.bf16.mxu0 %v7639_v0 }
0x6275   :  { %6872 = vmatprep.mubr.msk.f32.mxu1 %vm241_vm3, %v4935_v10 }
0x6277   :  { %7286 = vmatpush3.bf16.msra.mxu0 %v8581_v11 }
0x6278   :  { %7293 = vmatprep.subr.bf16.mxu0 %v7639_v0 }
0x627a   :  { %6884 = vmatmul.mubr.f32.vlgmr.msra.gmra.mrb[46].mxu0 %v7643_v1 }
0x627b   :  { %7295 = vmatpush3.bf16.msra.mxu0 %v8578_v51  ;;  %6905 = vmatprep.mubr.msk.f32.mxu0 %vm7642_vm0, %v7643_v1 }
0x627c   :  { %7296 = vmatprep.subr.bf16.mxu0 %v7639_v0 }
0x627d   :  { %v7585_v18 = vpop.eup %7584 }
0x627e   :  { %4908 = vrot.lane.b32.xlu0 %v7585_v18, %s7647_s23 }
0x627f   :  { %7298 = vmatpush3.bf16.msra.mxu0 %v8581_v11 }
0x6280   :  { %7305 = vmatprep.subr.bf16.mxu0 %v7639_v0 }
0x62f0   :  { %v4909_v8 = vpop.permute.xlu0 %4908 }
0x62f1   :  { %v4911_v9 = vmul.f32 %v4909_v8, %v4906_v12 }
0x62f3   :  { %v4915_v57 = vadd.f32 %v4914_v53, %v4911_v9 }
0x62f5   :  { %v4920_v22 = vsel %vm974_vm5, %v4919_v21, %v4915_v57 }
0x62f6   :  { %4936 = vrot.lane.b32.xlu0 %v4920_v22, %s7647_s23 }
0x634d   :  { %v5094_v3 = vpop.f32.mrb[46].mxu0 }
0x634e   :  { %v5095_v24 = vadd.f32 %v8603_v23, %v5094_v3  ;;  %v6885_v25 = vpop.f32.mrb[47].mxu0 }
0x6350   :  { %5106 = vrot.lane.b32.xlu1 %v5095_v24, %s7646_s22 }
0x6368   :  { %v4937_v52 = vpop.permute.xlu0 %4936 }
0x6369   :  { %6873 = vmatmul.mubr.msk.f32.vlgmr.msra.gmra.mrb[46].mxu1 %vm241_vm3, %v4937_v52 }
0x636a   :  { %7289 = vmatpush3.bf16.msra.mxu1 %v8578_v51  ;;  %6894 = vmatprep.mubr.msk.f32.mxu1 %vm7642_vm0, %v7643_v1 }
0x636b   :  { %7290 = vmatprep.subr.bf16.mxu1 %v7639_v0 }
0x636e   :  { %7292 = vmatpush3.bf16.msra.mxu1 %v8581_v11 }
0x636f   :  { %7299 = vmatprep.subr.bf16.mxu1 %v7639_v0 }
0x63c2   :  { %v5107_v61 = vpop.permute.xlu1 %5106 }
0x643c   :  { %v6874_v26 = vpop.f32.mrb[46].mxu1 }
0x643d   :  { %v8617_v27 = vadd.f32 %v6874_v26, %v6002_v14  ;;  %v5008_v16 = vpop.f32.mrb[47].mxu1 }
0x643e   :  { %v8619_v28 = vadd.f32 %v6002_v14, %v5008_v16 }
0x6440   :  { %v5098_v54 = vadd.f32 %v5095_v24, %v8619_v28 }
0x6442   :  { %v6006_v29 = vmul.f32 -1.442695, %v5098_v54 }
0x6444   :  { %7586 = vpow2.f32 %v6006_v29 }
0x644e   :  { %v7587_v17 = vpop.eup %7586 }
0x644f   :  { %v5102_v30 = vadd.f32 1.0, %v7587_v17 }
0x6451   :  { %7588 = vrcp.f32 %v5102_v30 }
0x645b   :  { %v7589_v32 = vpop.eup %7588 }
0x645c   :  { %v5109_v33 = vmul.f32 %v7589_v32, %v5107_v61  ;;  %v5116_v38 = vsub.f32 1.0, %v7589_v32  ;;  %v5122_v20 = vmul.f32 0.0, %v7589_v32 }
0x645e   :  { %5111 = vrot.lane.b32.xlu0 %v5109_v33, %s7646_s22 }
0x64d0   :  { %v5112_v49 = vpop.permute.xlu0 %5111 }
0x64d1   :  { %v5114_v35 = vadd.f32 %v5112_v49, %v8619_v28 }
0x64d3   :  { %7590 = vtanh.f32 %v5114_v35 }
0x64dd   :  { %v7591_v36 = vpop.eup %7590 }
0x64de   :  { %5118 = vrot.lane.b32.xlu1 %v7591_v36, %s7647_s23 }
0x6550   :  { %v5119_v59 = vpop.permute.xlu1 %5118 }
0x6551   :  { %v5121_v56 = vmul.f32 %v5119_v59, %v5116_v38 }
0x6553   :  { %v5123_v19 = vadd.f32 %v5122_v20, %v5121_v56 }
0x6555   :  { %5125 = vrot.lane.b32.xlu0 %v5123_v19, %s7647_s23  ;;  %v5225_v37 = vrot.slane %v5123_v19, 6 }
0x65c7   :  { %v5126_v40 = vpop.permute.xlu0 %5125 }
0x65c8   :  { %6895 = vmatmul.mubr.msk.f32.vlgmr.msra.gmra.mrb[48].mxu1 %vm241_vm3, %v5126_v40 }
0x65c9   :  { %7301 = vmatpush3.bf16.msra.mxu1 %v8578_v51  ;;  %6916 = vmatprep.mubr.msk.f32.mxu1 %vm7642_vm0, %v7643_v1 }
0x65ca   :  { %7302 = vmatprep.subr.bf16.mxu1 %v7639_v0 }
0x65cd   :  { %7304 = vmatpush3.bf16.msra.mxu1 %v8581_v11 }
0x65ce   :  { %7311 = vmatprep.subr.bf16.mxu1 %v7639_v0 }
0x669b   :  { %v5195_v48 = vpop.f32.mrb[48].mxu1 }
0x669c   :  { %v5196_v60 = vadd.f32 %v8603_v23, %v5195_v48  ;;  %v6896_v42 = vpop.f32.mrb[49].mxu1 }
0x669e   :  { %v5200_v15 = vrot.slane %v5196_v60, 6 }
0x66a0   :  { %5209 = vrot.lane.b32.xlu1 %v5200_v15, %s7646_s22  ;;  %v5202_v44 = vadd.f32 %v5200_v15, %v8619_v28 }
0x66a2   :  { %v6008_v45 = vmul.f32 -1.442695, %v5202_v44 }
0x66a4   :  { %7592 = vpow2.f32 %v6008_v45 }
0x66ae   :  { %v7593_v13 = vpop.eup %7592 }
0x66af   :  { %v5206_v46 = vadd.f32 1.0, %v7593_v13 }
0x66b1   :  { %7594 = vrcp.f32 %v5206_v46 }
0x66bb   :  { %v7595_v47 = vpop.eup %7594 }
0x66bc   :  { %v5219_v62 = vsub.f32 1.0, %v7595_v47  ;;  %v5227_v2 = vmul.f32 %v7595_v47, %v5225_v37 }
0x6712   :  { %v5210_v10 = vpop.permute.xlu1 %5209 }
0x6713   :  { %v5212_v18 = vmul.f32 %v7595_v47, %v5210_v10 }
0x6715   :  { %5214 = vrot.lane.b32.xlu0 %v5212_v18, %s7646_s22 }
0x6787   :  { %v5215_v55 = vpop.permute.xlu0 %5214 }
0x6788   :  { %v5217_v50 = vadd.f32 %v5215_v55, %v8619_v28 }
0x678a   :  { %7596 = vtanh.f32 %v5217_v50 }
0x6794   :  { %v7597_v58 = vpop.eup %7596 }
0x6795   :  { %5221 = vrot.lane.b32.xlu1 %v7597_v58, %s7647_s23 }
0x6807   :  { %v5222_v39 = vpop.permute.xlu1 %5221 }
0x6808   :  { %v5224_v63 = vmul.f32 %v5222_v39, %v5219_v62 }
0x680a   :  { %v5228_v4 = vadd.f32 %v5227_v2, %v5224_v63 }
0x680c   :  { %v5230_v5 = vrot.slane %v5228_v4, 2  ;;  %v5331_v54 = vrot.slane %v5228_v4, 6 }
0x680e   :  { %5231 = vrot.lane.b32.xlu0 %v5230_v5, %s7647_s23 }
0x6880   :  { %v5232_v12 = vpop.permute.xlu0 %5231 }
0x6881   :  { %6906 = vmatmul.mubr.msk.f32.vlgmr.msra.gmra.mrb[48].mxu0 %vm241_vm3, %v5232_v12 }
0x6882   :  { %7307 = vmatpush3.bf16.msra.mxu0 %v8578_v51  ;;  %6927 = vmatprep.mubr.msk.f32.mxu0 %vm7642_vm0, %v7643_v1 }
0x6883   :  { %7308 = vmatprep.subr.bf16.mxu0 %v7639_v0 }
0x6886   :  { %7310 = vmatpush3.bf16.msra.mxu0 %v8581_v11 }
0x6887   :  { %7317 = vmatprep.subr.bf16.mxu0 %v7639_v0 }
0x6954   :  { %v5301_v7 = vpop.f32.mrb[48].mxu0 }
0x6955   :  { %v5302_v8 = vadd.f32 %v8603_v23, %v5301_v7  ;;  %v6907_v53 = vpop.f32.mrb[49].mxu0 }
0x6957   :  { %v5306_v9 = vrot.slane %v5302_v8, 4 }
0x6959   :  { %5315 = vrot.lane.b32.xlu1 %v5306_v9, %s7646_s22  ;;  %v5308_v57 = vadd.f32 %v5306_v9, %v8619_v28 }
0x695b   :  { %v6010_v21 = vmul.f32 -1.442695, %v5308_v57 }
0x695d   :  { %7598 = vpow2.f32 %v6010_v21 }
0x6967   :  { %v7599_v22 = vpop.eup %7598 }
0x6968   :  { %v5312_v3 = vadd.f32 1.0, %v7599_v22 }
0x696a   :  { %7600 = vrcp.f32 %v5312_v3 }
0x6974   :  { %v7601_v24 = vpop.eup %7600 }
0x6975   :  { %v5325_v29 = vsub.f32 1.0, %v7601_v24  ;;  %v5333_v30 = vmul.f32 %v7601_v24, %v5331_v54 }
0x69cb   :  { %v5316_v25 = vpop.permute.xlu1 %5315 }
0x69cc   :  { %v5318_v52 = vmul.f32 %v7601_v24, %v5316_v25 }
0x69ce   :  { %5320 = vrot.lane.b32.xlu0 %v5318_v52, %s7646_s22 }
0x6a40   :  { %v5321_v14 = vpop.permute.xlu0 %5320 }
0x6a41   :  { %v5323_v26 = vadd.f32 %v5321_v14, %v8619_v28 }
0x6a43   :  { %7602 = vtanh.f32 %v5323_v26 }
0x6a4d   :  { %v7603_v16 = vpop.eup %7602 }
0x6a4e   :  { %5327 = vrot.lane.b32.xlu1 %v7603_v16, %s7647_s23 }
0x6ac0   :  { %v5328_v17 = vpop.permute.xlu1 %5327 }
0x6ac1   :  { %v5330_v61 = vmul.f32 %v5328_v17, %v5325_v29 }
0x6ac3   :  { %v5334_v32 = vadd.f32 %v5333_v30, %v5330_v61 }
0x6ac5   :  { %v5336_v33 = vrot.slane %v5334_v32, 4  ;;  %v5437_v13 = vrot.slane %v5334_v32, 6 }
0x6ac7   :  { %5337 = vrot.lane.b32.xlu0 %v5336_v33, %s7647_s23 }
0x6b39   :  { %v5338_v49 = vpop.permute.xlu0 %5337 }
0x6b3a   :  { %6917 = vmatmul.mubr.msk.f32.vlgmr.msra.gmra.mrb[50].mxu1 %vm241_vm3, %v5338_v49 }
0x6b3b   :  { %7313 = vmatpush3.bf16.msra.mxu1 %v8578_v51  ;;  %6938 = vmatprep.mubr.msk.f32.mxu1 %vm7642_vm0, %v7643_v1 }
0x6b3c   :  { %7314 = vmatprep.subr.bf16.mxu1 %v7639_v0 }
0x6b3f   :  { %7316 = vmatpush3.bf16.msra.mxu1 %v8581_v11 }
0x6b40   :  { %7323 = vmatprep.subr.bf16.mxu1 %v7639_v0 }
0x6c0d   :  { %v5407_v35 = vpop.f32.mrb[50].mxu1 }
0x6c0e   :  { %v5408_v36 = vadd.f32 %v8603_v23, %v5407_v35  ;;  %v6918_v38 = vpop.f32.mrb[51].mxu1 }
0x6c10   :  { %v5412_v59 = vrot.slane %v5408_v36, 2 }
0x6c12   :  { %5421 = vrot.lane.b32.xlu1 %v5412_v59, %s7646_s22  ;;  %v5414_v20 = vadd.f32 %v5412_v59, %v8619_v28 }
0x6c14   :  { %v6012_v56 = vmul.f32 -1.442695, %v5414_v20 }
0x6c16   :  { %7604 = vpow2.f32 %v6012_v56 }
0x6c20   :  { %v7605_v19 = vpop.eup %7604 }
0x6c21   :  { %v5418_v40 = vadd.f32 1.0, %v7605_v19 }
0x6c23   :  { %7606 = vrcp.f32 %v5418_v40 }
0x6c2d   :  { %v7607_v48 = vpop.eup %7606 }
0x6c2e   :  { %v5431_v46 = vsub.f32 1.0, %v7607_v48  ;;  %v5439_v10 = vmul.f32 %v7607_v48, %v5437_v13 }
0x6c84   :  { %v5422_v60 = vpop.permute.xlu1 %5421 }
0x6c85   :  { %v5424_v42 = vmul.f32 %v7607_v48, %v5422_v60 }
0x6c87   :  { %5426 = vrot.lane.b32.xlu0 %v5424_v42, %s7646_s22 }
0x6cf9   :  { %v5427_v15 = vpop.permute.xlu0 %5426 }
0x6cfa   :  { %v5429_v44 = vadd.f32 %v5427_v15, %v8619_v28 }
0x6cfc   :  { %7608 = vtanh.f32 %v5429_v44 }
0x6d06   :  { %v7609_v45 = vpop.eup %7608 }
0x6d07   :  { %5433 = vrot.lane.b32.xlu1 %v7609_v45, %s7647_s23 }
0x6d79   :  { %v5434_v47 = vpop.permute.xlu1 %5433 }
0x6d7a   :  { %v5436_v18 = vmul.f32 %v5434_v47, %v5431_v46 }
0x6d7c   :  { %v5440_v55 = vadd.f32 %v5439_v10, %v5436_v18  ;;  %v7637_v10 = vld [vmem:[%s8021_s30] sm:$0x3] }
0x6d7d   :  { %v2391_v18 = vsub.f32 %v7637_v10, %v8162_v41 }
0x6d7e   :  { %v5442_v50 = vrot.slane %v5440_v55, 6 }
0x6d7f   :  { %v2392_v55 = vmul.f32 %v2391_v18, %v2391_v18 }
0x6d80   :  { %5443 = vrot.lane.b32.xlu0 %v5442_v50, %s7647_s23 }
0x6df2   :  { %v5444_v58 = vpop.permute.xlu0 %5443 }
0x6df3   :  { %6928 = vmatmul.mubr.msk.f32.vlgmr.msra.gmra.mrb[50].mxu0 %vm241_vm3, %v5444_v58 }
0x6df4   :  { %7319 = vmatpush3.bf16.msra.mxu0 %v8578_v51  ;;  %6949 = vmatprep.mubr.msk.f32.mxu0 %vm7642_vm0, %v7643_v1 }
0x6df5   :  { %7320 = vmatprep.subr.bf16.mxu0 %v7639_v0 }
0x6df8   :  { %7322 = vmatpush3.bf16.msra.mxu0 %v8581_v11 }
0x6ec6   :  { %v5513_v28 = vpop.f32.mrb[50].mxu0 }
0x6ec7   :  { %v5514_v37 = vadd.f32 %v8603_v23, %v5513_v28  ;;  %v6929_v62 = vpop.f32.mrb[51].mxu0 }
0x6ec9   :  { %5525 = vrot.lane.b32.xlu1 %v5514_v37, %s7646_s22  ;;  %v5517_v39 = vadd.f32 %v5514_v37, %v8617_v27 }
0x6ecb   :  { %v6014_v63 = vmul.f32 -1.442695, %v5517_v39 }
0x6ecd   :  { %7610 = vpow2.f32 %v6014_v63 }
0x6ed7   :  { %v7611_v2 = vpop.eup %7610 }
0x6ed8   :  { %v5521_v4 = vadd.f32 1.0, %v7611_v2 }
0x6eda   :  { %7612 = vrcp.f32 %v5521_v4 }
0x6ee4   :  { %v7613_v51 = vpop.eup %7612 }
0x6ee5   :  { %v5535_v53 = vsub.f32 1.0, %v7613_v51  ;;  %v5542_v57 = vmul.f32 %v7613_v51, %v5442_v50  ;;  %v2394_v50 = vsel %vm2393_vm9, %v2392_v55, 0.0 }
0x6f3b   :  { %v5526_v5 = vpop.permute.xlu1 %5525 }
0x6f3c   :  { %v5528_v12 = vmul.f32 %v7613_v51, %v5526_v5 }
0x6f3e   :  { %5530 = vrot.lane.b32.xlu0 %v5528_v12, %s7646_s22 }
0x6fb0   :  { %v5531_v7 = vpop.permute.xlu0 %5530 }
0x6fb1   :  { %v5533_v11 = vadd.f32 %v5531_v7, %v8617_v27 }
0x6fb3   :  { %7614 = vtanh.f32 %v5533_v11 }
0x6fbd   :  { %v7615_v8 = vpop.eup %7614 }
0x6fbe   :  { %5537 = vrot.lane.b32.xlu1 %v7615_v8, %s7647_s23 }
0x7030   :  { %v5538_v9 = vpop.permute.xlu1 %5537 }
0x7031   :  { %v5540_v21 = vmul.f32 %v5538_v9, %v5535_v53  ;;  %v7638_v53 = vld [vmem:[%s8461_s15] ss:$0 sm:$0xff] }
0x7033   :  { %v5543_v22 = vadd.f32 %v5542_v57, %v5540_v21 }
0x7035   :  { %5545 = vrot.lane.b32.xlu0 %v5543_v22, %s7647_s23  ;;  %v5645_v61 = vrot.slane %v5543_v22, 6 }
0x70a7   :  { %v5546_v3 = vpop.permute.xlu0 %5545 }
0x70a8   :  { %6939 = vmatmul.mubr.msk.f32.vlgmr.msra.gmra.mrb[52].mxu1 %vm241_vm3, %v5546_v3 }
0x70a9   :  { %7325 = vmatpush3.bf16.msra.mxu1 %v8401_v31  ;;  %6960 = vmatprep.mubr.msk.f32.mxu1 %vm7642_vm0, %v7643_v1 }
0x70aa   :  { %7326 = vmatprep.subr.bf16.mxu1 %v7639_v0 }
0x70ad   :  { %7328 = vmatpush3.bf16.msra.mxu1 %v8404_v34 }
0x717b   :  { %v5615_v24 = vpop.f32.mrb[52].mxu1 }
0x717c   :  { %v5616_v25 = vadd.f32 %v8603_v23, %v5615_v24  ;;  %v6940_v52 = vpop.f32.mrb[53].mxu1  ;;  %v7678_v24 = vmov 2  }
0x717e   :  { %v5620_v14 = vrot.slane %v5616_v25, 6 }
0x7180   :  { %5629 = vrot.lane.b32.xlu1 %v5620_v14, %s7646_s22  ;;  %v5622_v26 = vadd.f32 %v5620_v14, %v8617_v27 }
0x7182   :  { %v6016_v16 = vmul.f32 -1.442695, %v5622_v26 }
0x7184   :  { %7616 = vpow2.f32 %v6016_v16 }
0x718e   :  { %v7617_v54 = vpop.eup %7616 }
0x718f   :  { %v5626_v31 = vadd.f32 1.0, %v7617_v54 }
0x7191   :  { %7618 = vrcp.f32 %v5626_v31 }
0x719b   :  { %v7619_v29 = vpop.eup %7618 }
0x719c   :  { %v5639_v32 = vsub.f32 1.0, %v7619_v29  ;;  %v5647_v35 = vmul.f32 %v7619_v29, %v5645_v61 }
0x71f2   :  { %v5630_v1 = vpop.permute.xlu1 %5629 }
0x71f3   :  { %v5632_v17 = vmul.f32 %v7619_v29, %v5630_v1 }
0x71f5   :  { %5634 = vrot.lane.b32.xlu0 %v5632_v17, %s7646_s22 }
0x7267   :  { %v5635_v0 = vpop.permute.xlu0 %5634 }
0x7268   :  { %v5637_v34 = vadd.f32 %v5635_v0, %v8617_v27 }
0x726a   :  { %7620 = vtanh.f32 %v5637_v34 }
0x7274   :  { %v7621_v30 = vpop.eup %7620 }
0x7275   :  { %5641 = vrot.lane.b32.xlu1 %v7621_v30, %s7647_s23 }
0x72e7   :  { %v5642_v33 = vpop.permute.xlu1 %5641 }
0x72e8   :  { %v5644_v49 = vmul.f32 %v5642_v33, %v5639_v32 }
0x72ea   :  { %v5648_v36 = vadd.f32 %v5647_v35, %v5644_v49 }
0x72ec   :  { %v5650_v38 = vrot.slane %v5648_v36, 2  ;;  %v5751_v58 = vrot.slane %v5648_v36, 6 }
0x72ee   :  { %5651 = vrot.lane.b32.xlu0 %v5650_v38, %s7647_s23 }
0x7360   :  { %v5652_v59 = vpop.permute.xlu0 %5651 }
0x7361   :  { %6950 = vmatmul.mubr.msk.f32.vlgmr.msra.gmra.mrb[52].mxu0 %vm241_vm3, %v5652_v59 }
0x7434   :  { %v5721_v20 = vpop.f32.mrb[52].mxu0 }
0x7435   :  { %v5722_v56 = vadd.f32 %v8603_v23, %v5721_v20  ;;  %v6951_v19 = vpop.f32.mrb[53].mxu0 }
0x7437   :  { %v5726_v40 = vrot.slane %v5722_v56, 4 }
0x7439   :  { %5735 = vrot.lane.b32.xlu1 %v5726_v40, %s7646_s22  ;;  %v5728_v48 = vadd.f32 %v5726_v40, %v8617_v27 }
0x743b   :  { %v6018_v60 = vmul.f32 -1.442695, %v5728_v48 }
0x743d   :  { %7622 = vpow2.f32 %v6018_v60 }
0x7447   :  { %v7623_v42 = vpop.eup %7622 }
0x7448   :  { %v5732_v15 = vadd.f32 1.0, %v7623_v42 }
0x744a   :  { %7624 = vrcp.f32 %v5732_v15 }
0x7454   :  { %v7625_v44 = vpop.eup %7624 }
0x7455   :  { %v5745_v28 = vsub.f32 1.0, %v7625_v44  ;;  %v5753_v62 = vmul.f32 %v7625_v44, %v5751_v58 }
0x74ab   :  { %v5736_v45 = vpop.permute.xlu1 %5735 }
0x74ac   :  { %v5738_v13 = vmul.f32 %v7625_v44, %v5736_v45 }
0x74ae   :  { %5740 = vrot.lane.b32.xlu0 %v5738_v13, %s7646_s22 }
0x7520   :  { %v5741_v46 = vpop.permute.xlu0 %5740 }
0x7521   :  { %v5743_v23 = vadd.f32 %v5741_v46, %v8617_v27 }
0x7523   :  { %7626 = vtanh.f32 %v5743_v23 }
0x752d   :  { %v7627_v47 = vpop.eup %7626 }
0x752e   :  { %5747 = vrot.lane.b32.xlu1 %v7627_v47, %s7647_s23 }
0x7552   :  { %2395 = vadd.xlane.f32.xlu1 %v2394_v50 }
0x75a0   :  { %v5748_v37 = vpop.permute.xlu1 %5747 }
0x75a1   :  { %v5750_v39 = vmul.f32 %v5748_v37, %v5745_v28 }
0x75a3   :  { %v5754_v63 = vadd.f32 %v5753_v62, %v5750_v39 }
0x75a5   :  { %v5756_v2 = vrot.slane %v5754_v63, 4 }
0x75a7   :  { %5757 = vrot.lane.b32.xlu0 %v5756_v2, %s7647_s23 }
0x75df   :  { %v2396_v27 = vpop.xlane.xlu1 %2395 }
0x75e0   :  { %v2397_v4 = vrot.slane %v2396_v27, 4 }
0x75e2   :  { %v2398_v51 = vadd.f32 %v2397_v4, %v2396_v27 }
0x75e4   :  { %v2399_v5 = vrot.slane %v2398_v51, 2 }
0x75e6   :  { %v2400_v12 = vadd.f32 %v2399_v5, %v2398_v51 }
0x75e8   :  { %v2401_v41 = vrot.slane %v2400_v12, 1 }
0x75ea   :  { %v2402_v7 = vadd.f32 %v2401_v41, %v2400_v12 }
0x75ec   :  { %7329 = vpush %v2402_v7 }
0x7619   :  { %v5758_v11 = vpop.permute.xlu0 %5757 }
0x761a   :  { %6961 = vmatmul.mubr.msk.f32.vlgmr.msra.gmra.mrb[54].mxu1 %vm241_vm3, %v5758_v11 }
0x761d   :  { %s7330_s22 = spop %7329 }
0x761e   :  { %v2404_v61 = vstv %s7330_s22 }
0x761f   :  { %v2405_v49 = vmul.f32 0.015625, %v2404_v61 }
0x76ed   :  { %v5827_v8 = vpop.f32.mrb[54].mxu1 }
0x76ee   :  { %v5828_v9 = vadd.f32 %v7638_v53, %v5827_v8  ;;  %v6962_v57 = vpop.f32.mrb[55].mxu1 }
0x76f0   :  { %v5834_v21 = vand.u32 2147483647, %v5828_v9  ;;  %5852 = vperm.xlu0 %7374, %v5828_v9   ;;  %v5831_v1 = vmax.f32 %v5828_v9, 0.0  ;;  %vm5832_vm11 = vcmp.ne.f32.partialorder %v5828_v9, %v5828_v9 }
0x76f2   :  { %v5835_v22 = vsub.f32 0.0, %v5834_v21 }
0x76f4   :  { %v5836_v3 = vmul.f32 1.442695, %v5835_v22  ;;  %7375 = vset.pattern.permute.xlu0 %v7678_v24 }
0x76f6   :  { %7628 = vpow2.f32 %v5836_v3 }
0x7700   :  { %v7629_v25 = vpop.eup %7628 }
0x7701   :  { %v5838_v52 = vadd.f32 1.0, %v7629_v25  ;;  %v5841_v14 = vmul.f32 -0.5, %v7629_v25  ;;  %v5844_v16 = vand.u32 2147483647, %v7629_v25 }
0x7703   :  { %7630 = vlog2.f32 %v5838_v52  ;;  %v5842_v26 = vadd.f32 1.0, %v5841_v14  ;;  %vm5845_vm10 = vcmp.lt.f32.partialorder %v5844_v16, 0.0004427343 }
0x7705   :  { %v5843_v29 = vmul.f32 %v7629_v25, %v5842_v26 }
0x770d   :  { %v7631_v54 = vpop.eup %7630 }
0x770e   :  { %v5840_v31 = vmul.f32 0.6931472, %v7631_v54 }
0x7710   :  { %v5846_v17 = vsel %vm5845_vm10, %v5843_v29, %v5840_v31 }
0x7711   :  { %v5847_v0 = vadd.f32 %v5846_v17, %v5831_v1 }
0x7713   :  { %v5848_v34 = vsel %vm5832_vm11, %v5828_v9, %v5847_v0 }
0x7714   :  { %5859 = vperm.xlu0 %7375, %v5848_v34  }
0x776f   :  { %v5853_v30 = vpop.permute.xlu0 %5852 }
0x7770   :  { %v5855_v32 = vsel %vm5849_vm12, %v5853_v30, 0.0 }
0x7793   :  { %v5860_v33 = vpop.permute.xlu0 %5859 }
0x7794   :  { %v5862_v35 = vsel %vm5856_vm13, %v5860_v33, %v5855_v32 }
0x7795   :  { %v5864_v36 = vsel %vm5863_vm14, %v8466_v6, %v5862_v35 }
0x7796   :  { %v5866_v38 = vsel %vm5865_vm15, %v2405_v49, %v5864_v36 }
0x7797   :  { %5867 = vst [vmem:[%s5903_s3] sm:$0x3] %v5866_v38 }

</bundles_post_ra>
